<compile_context>
chip_gen: v6e
topology: v6e:2x2x1
jax: 0.10.0
libtpu: 0.0.40
codegen_flags: <defaults>
</compile_context>

<pallas_src>
import functools
import math

import jax
import jax.numpy as jnp
from jax.experimental import pallas as pl
from jax.experimental.pallas import tpu as pltpu

_PARALLEL_1D = pltpu.CompilerParams(dimension_semantics=("parallel",))


# ------------------------------------------------------------------ helpers
def _gelu_tanh(y):
    c = math.sqrt(2.0 / math.pi)
    return 0.5 * y * (1.0 + jnp.tanh(c * (y + 0.044715 * y * y * y)))


def _layernorm_math(x, g, b, eps):
    mu = jnp.mean(x, axis=-1, keepdims=True)
    xc = x - mu
    var = jnp.mean(xc * xc, axis=-1, keepdims=True)
    return xc * jax.lax.rsqrt(var + eps) * g + b


# ------------------------------------------------------------------ generic linear kernel
def _linear_kernel(x_ref, w_ref, b_ref, o_ref, *, act, pre_gelu):
    x = x_ref[...]                                  # f32
    if pre_gelu:
        x = _gelu_tanh(x)
    y = jnp.dot(x.astype(jnp.bfloat16), w_ref[...],
                preferred_element_type=jnp.float32) + b_ref[...]
    if act == "gelu":
        y = _gelu_tanh(y)
    elif act == "tanh":
        y = jnp.tanh(y)
    o_ref[...] = y


def linear(x, w, b, act="none", pre_gelu=False, block_m=256):
    """x: (N, Din) f32, w: (Din, Dout), b: (Dout,) -> (N, Dout) f32."""
    n, din = x.shape
    dout = w.shape[1]
    w = w.astype(jnp.bfloat16)
    b2 = b.reshape(1, dout).astype(jnp.float32)
    if n <= block_m:
        bm, xp = n, x
    else:
        bm = block_m
        pad = (-n) % bm
        xp = jnp.pad(x, ((0, pad), (0, 0))) if pad else x
    grid = (xp.shape[0] // bm,)
    out = pl.pallas_call(
        functools.partial(_linear_kernel, act=act, pre_gelu=pre_gelu),
        out_shape=jax.ShapeDtypeStruct((xp.shape[0], dout), jnp.float32),
        grid=grid,
        in_specs=[pl.BlockSpec((bm, din), lambda i: (i, 0)),
                  pl.BlockSpec((din, dout), lambda i: (0, 0)),
                  pl.BlockSpec((1, dout), lambda i: (0, 0))],
        out_specs=pl.BlockSpec((bm, dout), lambda i: (i, 0)),
        compiler_params=_PARALLEL_1D,
    )(xp, w, b2)
    return out[:n]


# ------------------------------------------------------------------ plain layernorm kernel
def _layernorm_kernel(x_ref, g_ref, b_ref, o_ref, *, eps):
    o_ref[...] = _layernorm_math(x_ref[...], g_ref[...], b_ref[...], eps)


def layernorm(x, g, b, eps, block_m=512):
    n, d = x.shape
    if n <= block_m:
        bm, xp = n, x
    else:
        bm = block_m
        pad = (-n) % bm
        xp = jnp.pad(x, ((0, pad), (0, 0))) if pad else x
    grid = (xp.shape[0] // bm,)
    out = pl.pallas_call(
        functools.partial(_layernorm_kernel, eps=eps),
        out_shape=jax.ShapeDtypeStruct((xp.shape[0], d), jnp.float32),
        grid=grid,
        in_specs=[pl.BlockSpec((bm, d), lambda i: (i, 0)),
                  pl.BlockSpec((1, d), lambda i: (0, 0)),
                  pl.BlockSpec((1, d), lambda i: (0, 0))],
        out_specs=pl.BlockSpec((bm, d), lambda i: (i, 0)),
        compiler_params=_PARALLEL_1D,
    )(xp, g.reshape(1, d), b.reshape(1, d))
    return out[:n]


# ------------------------------------------------------------------ fused BERT encoder layer
def _bert_layer_kernel(x_ref, bias_ref, wqkv_ref, bqkv_ref, wo_ref, bo_ref,
                       ln1g_ref, ln1b_ref, wi_ref, bi_ref, wo2_ref, bo2_ref,
                       ln2g_ref, ln2b_ref, o_ref, *, num_heads, eps, scale):
    bn, s, hdim = x_ref.shape
    dh = hdim // num_heads

    x3 = x_ref[...]                                  # (bn, S, H) f32
    x2 = x3.reshape(bn * s, hdim)                    # (bn*S, H)
    xb = x2.astype(jnp.bfloat16)

    # Fused QKV projection: one MXU matmul, 3H-wide output.
    qkv = jnp.dot(xb, wqkv_ref[...], preferred_element_type=jnp.float32) + bqkv_ref[...]

    bias = bias_ref[...]                             # (bn, 1, S) additive mask bias

    ctx_heads = []
    for hh in range(num_heads):
        q = qkv[:, hh * dh:(hh + 1) * dh].reshape(bn, s, dh)
        k = qkv[:, hdim + hh * dh: hdim + (hh + 1) * dh].reshape(bn, s, dh)
        v = qkv[:, 2 * hdim + hh * dh: 2 * hdim + (hh + 1) * dh].reshape(bn, s, dh)

        scores = jnp.einsum("bqd,bkd->bqk",
                            q.astype(jnp.bfloat16), k.astype(jnp.bfloat16),
                            preferred_element_type=jnp.float32) * scale + bias
        scores = scores - jnp.max(scores, axis=-1, keepdims=True)
        p = jnp.exp(scores)
        p = p * pl.reciprocal(jnp.sum(p, axis=-1, keepdims=True), approx=True)
        ctx = jnp.einsum("bqk,bkd->bqd",
                         p.astype(jnp.bfloat16), v.astype(jnp.bfloat16),
                         preferred_element_type=jnp.float32)
        ctx_heads.append(ctx.reshape(bn * s, dh))
    ctx_all = jnp.concatenate(ctx_heads, axis=-1)    # (bn*S, H)

    attn_out = jnp.dot(ctx_all.astype(jnp.bfloat16), wo_ref[...],
                       preferred_element_type=jnp.float32) + bo_ref[...]
    h1 = _layernorm_math(attn_out + x2, ln1g_ref[...], ln1b_ref[...], eps)

    inter = jnp.dot(h1.astype(jnp.bfloat16), wi_ref[...],
                    preferred_element_type=jnp.float32) + bi_ref[...]
    inter = _gelu_tanh(inter)
    ffn = jnp.dot(inter.astype(jnp.bfloat16), wo2_ref[...],
                  preferred_element_type=jnp.float32) + bo2_ref[...]
    h2 = _layernorm_math(ffn + h1, ln2g_ref[...], ln2b_ref[...], eps)

    o_ref[...] = h2.reshape(bn, s, hdim)


def bert_layer(lp, h, mask_bias, num_heads, eps):
    """One post-LN BERT encoder layer, fully fused. h: (N, S, H); mask_bias: (N, 1, S)."""
    n, s, hdim = h.shape
    inter = lp["wi"].shape[1]
    dh = hdim // num_heads
    bn = n // 2 if (n % 2 == 0 and n >= 2) else n     # >=2 grid steps -> both TCs on v7x
    kernel = functools.partial(_bert_layer_kernel, num_heads=num_heads,
                               eps=eps, scale=1.0 / math.sqrt(dh))
    return pl.pallas_call(
        kernel,
        out_shape=jax.ShapeDtypeStruct((n, s, hdim), jnp.float32),
        grid=(n // bn,),
        in_specs=[
            pl.BlockSpec((bn, s, hdim), lambda i: (i, 0, 0)),
            pl.BlockSpec((bn, 1, s), lambda i: (i, 0, 0)),
            pl.BlockSpec((hdim, 3 * hdim), lambda i: (0, 0)),
            pl.BlockSpec((1, 3 * hdim), lambda i: (0, 0)),
            pl.BlockSpec((hdim, hdim), lambda i: (0, 0)),
            pl.BlockSpec((1, hdim), lambda i: (0, 0)),
            pl.BlockSpec((1, hdim), lambda i: (0, 0)),
            pl.BlockSpec((1, hdim), lambda i: (0, 0)),
            pl.BlockSpec((hdim, inter), lambda i: (0, 0)),
            pl.BlockSpec((1, inter), lambda i: (0, 0)),
            pl.BlockSpec((inter, hdim), lambda i: (0, 0)),
            pl.BlockSpec((1, hdim), lambda i: (0, 0)),
            pl.BlockSpec((1, hdim), lambda i: (0, 0)),
            pl.BlockSpec((1, hdim), lambda i: (0, 0)),
        ],
        out_specs=pl.BlockSpec((bn, s, hdim), lambda i: (i, 0, 0)),
        compiler_params=_PARALLEL_1D,
    )(h, mask_bias, lp["wqkv"], lp["bqkv"], lp["wo"], lp["bo"],
      lp["ln1_g"], lp["ln1_b"], lp["wi"], lp["bi"], lp["wo2"], lp["bo2"],
      lp["ln2_g"], lp["ln2_b"])


# -------------------------------------------------------------- model pieces
def bert_cell_forward(cp, cfg, input_ids, attention_mask):
    """Tiny stand-in for bertModel_cell; returns pooler_output: (N, Hc)."""
    n, s = input_ids.shape
    hc = cfg["bert_cell_hidden"]
    eps = cfg["eps"]

    emb = (cp["word_emb"][input_ids]
           + cp["pos_emb"][:s][None, :, :]
           + cp["type_emb"][0][None, None, :])
    h = layernorm(emb.reshape(n * s, hc), cp["emb_ln_g"], cp["emb_ln_b"], eps).reshape(n, s, hc)

    mask_bias = ((1.0 - attention_mask) * (-1e9)).reshape(n, 1, s)
    for lp in cp["layers"]:
        h = bert_layer(lp, h, mask_bias, cfg["num_heads"], eps)

    cls = h[:, 0, :]
    return linear(cls, cp["pool_w"], cp["pool_b"], act="tanh")


def bert_pre_tiny_forward(params, cfg, input_ids, attention_mask):
    """input_ids, attention_mask: (B, rows, cols, seq) -> S_cube: (B, rows, cols)."""
    b, r, c, s = input_ids.shape
    hc = cfg["bert_cell_hidden"]
    hs = cfg["hidden_size"]

    # 1) per-cell BERT (vectorized over cells; identical semantics to the python loop)
    ids_flat = input_ids.reshape(b * r * c, s)
    mask_flat = attention_mask.reshape(b * r * c, s).astype(jnp.float32)
    pooled = bert_cell_forward(params["cell"], cfg, ids_flat, mask_flat)
    pooled = pooled.reshape(b, r * c, hc)

    # add row / col sinusoidal positional encodings
    pe = params["pos_enc"]
    cell_idx = jnp.arange(r * c)
    pos_ctx = pooled + pe[cell_idx // c][None] + pe[cell_idx % c][None]

    # 2) proj_spatial + spatial BertEncoder (no attention mask)
    h = linear(pos_ctx.reshape(b * r * c, hc), params["proj_w"], params["proj_b"])
    h = h.reshape(b, r * c, hs)
    zero_bias = jnp.zeros((b, 1, r * c), jnp.float32)
    for lp in params["spatial_layers"]:
        h = bert_layer(lp, h, zero_bias, cfg["num_heads"], cfg["eps"])

    # 3) binary classifier: Dropout(identity) -> GELU -> Linear(H, 1)
    #    (weight padded to 128 lanes for dense stores; real logit is column 0)
    logits = linear(h.reshape(b * r * c, hs), params["cls_w"], params["cls_b"], pre_gelu=True)
    return logits[:, 0].reshape(b, r, c)


# ----------------------------------------------------------------- init
def sinusoidal_pos_encoding(max_dim, d):
    pos = jnp.arange(max_dim, dtype=jnp.float32)[:, None]
    div = jnp.exp(jnp.arange(0, d, 2, dtype=jnp.float32) * (-math.log(10000.0) / d))
    pe = jnp.zeros((max_dim, d), jnp.float32)
    pe = pe.at[:, 0::2].set(jnp.sin(pos * div))
    pe = pe.at[:, 1::2].set(jnp.cos(pos * div))
    return pe


def _dense(key, shape, std):
    return (jax.random.normal(key, shape, jnp.float32) * std).astype(jnp.float32)


def init_layer(key, h, inter, std):
    ks = jax.random.split(key, 6)
    wq = _dense(ks[0], (h, h), std)
    wk = _dense(ks[1], (h, h), std)
    wv = _dense(ks[2], (h, h), std)
    return dict(
        wqkv=jnp.concatenate([wq, wk, wv], axis=1).astype(jnp.bfloat16),
        bqkv=jnp.zeros((1, 3 * h), jnp.float32),
        wo=_dense(ks[3], (h, h), std).astype(jnp.bfloat16),
        bo=jnp.zeros((1, h), jnp.float32),
        ln1_g=jnp.ones((1, h), jnp.float32), ln1_b=jnp.zeros((1, h), jnp.float32),
        wi=_dense(ks[4], (h, inter), std).astype(jnp.bfloat16),
        bi=jnp.zeros((1, inter), jnp.float32),
        wo2=_dense(ks[5], (inter, h), std).astype(jnp.bfloat16),
        bo2=jnp.zeros((1, h), jnp.float32),
        ln2_g=jnp.ones((1, h), jnp.float32), ln2_b=jnp.zeros((1, h), jnp.float32),
    )


def init_params(key, cfg):
    std = cfg["initializer_range"]
    hc, hs, inter = cfg["bert_cell_hidden"], cfg["hidden_size"], cfg["intermediate_size"]
    k = jax.random.split(key, 8)

    cell = dict(
        word_emb=_dense(k[0], (cfg["vocab_size"], hc), std),
        pos_emb=_dense(k[1], (cfg["max_position_embeddings"], hc), std),
        type_emb=_dense(k[2], (cfg["type_vocab_size"], hc), std),
        emb_ln_g=jnp.ones((hc,), jnp.float32), emb_ln_b=jnp.zeros((hc,), jnp.float32),
        layers=[init_layer(kk, hc, inter, std)
                for kk in jax.random.split(k[3], cfg["cell_num_layers"])],
        pool_w=_dense(k[4], (hc, hc), std), pool_b=jnp.zeros((hc,), jnp.float32),
    )
    # classifier: real weight in column 0, zero-padded to 128 lanes for dense stores
    cls_w = jnp.pad(_dense(k[7], (hs, 1), std), ((0, 0), (0, 127)))
    return dict(
        cell=cell,
        pos_enc=sinusoidal_pos_encoding(max(cfg["rows"], cfg["cols"]), hc),
        proj_w=_dense(k[5], (hc, hs), std), proj_b=jnp.zeros((hs,), jnp.float32),
        spatial_layers=[init_layer(kk, hs, inter, std)
                        for kk in jax.random.split(k[6], cfg["num_hidden_layers"])],
        cls_w=cls_w, cls_b=jnp.zeros((128,), jnp.float32),
    )


# ----------------------------------------------------------------- main
if __name__ == "__main__":
    cfg = dict(
        rows=2, cols=2, tokens=8,
        vocab_size=64,
        bert_cell_hidden=32,       # bertModel_cell.config.hidden_size
        hidden_size=32,
        intermediate_size=64,
        num_hidden_layers=1,       # spatial BertEncoder layers
        cell_num_layers=1,         # tiny cell-BERT layers
        num_heads=2,
        max_position_embeddings=16,
        type_vocab_size=2,
        eps=1e-12,
        initializer_range=0.02,
    )

    key = jax.random.PRNGKey(0)
    kp, ki, km = jax.random.split(key, 3)
    params = init_params(kp, cfg)

    B, R, C, S = 2, cfg["rows"], cfg["cols"], cfg["tokens"]
    input_ids = jax.random.randint(ki, (B, R, C, S), 0, cfg["vocab_size"], dtype=jnp.int32)
    lengths = jax.random.randint(km, (B, R, C), 3, S + 1)
    attention_mask = (jnp.arange(S)[None, None, None, :] < lengths[..., None]).astype(jnp.int32)

    fwd = jax.jit(lambda ids, mask: bert_pre_tiny_forward(params, cfg, ids, mask))
    s_cube = fwd(input_ids, attention_mask)
    jax.block_until_ready(s_cube)

    assert s_cube.shape == (B, R, C), s_cube.shape
    assert s_cube.dtype == jnp.float32
    assert bool(jnp.all(jnp.isfinite(s_cube)))
    print("KERNEL_OK")
</pallas_src>

<mosaic_0001>
module attributes {stable_mosaic.version = 11 : i64} {
  func.func @_linear_kernel(%arg0: i32, %arg1: memref<8x32xf32, #tpu.memory_space<vmem>>, %arg2: memref<32x32xbf16, #tpu.memory_space<vmem>>, %arg3: memref<1x32xf32, #tpu.memory_space<vmem>>, %arg4: memref<8x32xf32, #tpu.memory_space<vmem>>) attributes {dimension_semantics = [#tpu.dimension_semantics<parallel>], iteration_bounds = array<i64: 1>, scalar_prefetch = 0 : i64, scratch_operands = 0 : i64, tpu.core_type = #tpu.core_type<tc>, window_params = [{transform_indices = @transform_0, window_bounds = array<i64: 8, 32>}, {pipeline_mode = #tpu.pipeline_mode<synchronous>, transform_indices = @transform_1, window_bounds = array<i64: 32, 32>}, {pipeline_mode = #tpu.pipeline_mode<synchronous>, transform_indices = @transform_2, window_bounds = array<i64: 1, 32>}, {transform_indices = @transform_3, window_bounds = array<i64: 8, 32>}]} {
    %c0 = arith.constant 0 : index
    %c0_0 = arith.constant 0 : index
    %0 = vector.load %arg1[%c0, %c0_0] : memref<8x32xf32, #tpu.memory_space<vmem>>, vector<8x32xf32>
    %1 = arith.truncf %0 : vector<8x32xf32> to vector<8x32xbf16>
    %c0_1 = arith.constant 0 : index
    %c0_2 = arith.constant 0 : index
    %2 = vector.load %arg2[%c0_1, %c0_2] : memref<32x32xbf16, #tpu.memory_space<vmem>>, vector<32x32xbf16>
    %cst = arith.constant dense<0.000000e+00> : vector<8x32xf32>
    %3 = tpu.matmul %1, %2, %cst {dimension_numbers = #tpu.dot_dimension_numbers<[1], [0], [0], [1], [0, 0, 1, 1], [], []>} : vector<8x32xbf16>, vector<32x32xbf16>, vector<8x32xf32> -> vector<8x32xf32>
    %c0_3 = arith.constant 0 : index
    %c0_4 = arith.constant 0 : index
    %4 = vector.load %arg3[%c0_3, %c0_4] : memref<1x32xf32, #tpu.memory_space<vmem>>, vector<1x32xf32>
    %5 = vector.broadcast %4 : vector<1x32xf32> to vector<8x32xf32>
    %6 = arith.addf %3, %5 : vector<8x32xf32>
    %7 = math.tanh %6 : vector<8x32xf32>
    %c0_5 = arith.constant 0 : index
    %c0_6 = arith.constant 0 : index
    %8 = vector.load %arg4[%c0_5, %c0_6] : memref<8x32xf32, #tpu.memory_space<vmem>>, vector<8x32xf32>
    tpu.vector_store %arg4[%c0_5, %c0_6], %7 {strides = array<i32>} : memref<8x32xf32, #tpu.memory_space<vmem>>, vector<8x32xf32>,
    return
  }
  func.func @transform_0(%arg0: i32) -> (i32, i32) {
    %c0_i32 = arith.constant 0 : i32
    %c0_i32_0 = arith.constant 0 : i32
    return %arg0, %c0_i32 : i32, i32
  }
  func.func @transform_1(%arg0: i32) -> (i32, i32) {
    %c0_i32 = arith.constant 0 : i32
    %c0_i32_0 = arith.constant 0 : i32
    %c0_i32_1 = arith.constant 0 : i32
    return %c0_i32, %c0_i32_0 : i32, i32
  }
  func.func @transform_2(%arg0: i32) -> (i32, i32) {
    %c0_i32 = arith.constant 0 : i32
    %c0_i32_0 = arith.constant 0 : i32
    %c0_i32_1 = arith.constant 0 : i32
    return %c0_i32, %c0_i32_0 : i32, i32
  }
  func.func @transform_3(%arg0: i32) -> (i32, i32) {
    %c0_i32 = arith.constant 0 : i32
    %c0_i32_0 = arith.constant 0 : i32
    return %arg0, %c0_i32 : i32, i32
  }
}

module attributes {stable_mosaic.version = 11 : i64} {
  func.func @_layernorm_kernel(%arg0: i32, %arg1: memref<64x32xf32, #tpu.memory_space<vmem>>, %arg2: memref<1x32xf32, #tpu.memory_space<vmem>>, %arg3: memref<1x32xf32, #tpu.memory_space<vmem>>, %arg4: memref<64x32xf32, #tpu.memory_space<vmem>>) attributes {dimension_semantics = [#tpu.dimension_semantics<parallel>], iteration_bounds = array<i64: 1>, scalar_prefetch = 0 : i64, scratch_operands = 0 : i64, tpu.core_type = #tpu.core_type<tc>, window_params = [{transform_indices = @transform_0, window_bounds = array<i64: 64, 32>}, {pipeline_mode = #tpu.pipeline_mode<synchronous>, transform_indices = @transform_1, window_bounds = array<i64: 1, 32>}, {pipeline_mode = #tpu.pipeline_mode<synchronous>, transform_indices = @transform_2, window_bounds = array<i64: 1, 32>}, {transform_indices = @transform_3, window_bounds = array<i64: 64, 32>}]} {
    %c0 = arith.constant 0 : index
    %c0_0 = arith.constant 0 : index
    %0 = vector.load %arg1[%c0, %c0_0] : memref<64x32xf32, #tpu.memory_space<vmem>>, vector<64x32xf32>
    %c0_1 = arith.constant 0 : index
    %c0_2 = arith.constant 0 : index
    %1 = vector.load %arg2[%c0_1, %c0_2] : memref<1x32xf32, #tpu.memory_space<vmem>>, vector<1x32xf32>
    %c0_3 = arith.constant 0 : index
    %c0_4 = arith.constant 0 : index
    %2 = vector.load %arg3[%c0_3, %c0_4] : memref<1x32xf32, #tpu.memory_space<vmem>>, vector<1x32xf32>
    %cst = arith.constant dense<0.000000e+00> : vector<64xf32>
    %3 = vector.multi_reduction <add>, %0, %cst [1] : vector<64x32xf32> to vector<64xf32>
    %4 = vector.shape_cast %3 : vector<64xf32> to vector<64x1xf32>
    %cst_5 = arith.constant 3.200000e+01 : f32
    %5 = vector.broadcast %cst_5 : f32 to vector<64x1xf32>
    %6 = arith.divf %4, %5 : vector<64x1xf32>
    %7 = vector.broadcast %6 : vector<64x1xf32> to vector<64x32xf32>
    %8 = arith.subf %0, %7 : vector<64x32xf32>
    %9 = arith.mulf %8, %8 : vector<64x32xf32>
    %cst_6 = arith.constant dense<0.000000e+00> : vector<64xf32>
    %10 = vector.multi_reduction <add>, %9, %cst_6 [1] : vector<64x32xf32> to vector<64xf32>
    %11 = vector.shape_cast %10 : vector<64xf32> to vector<64x1xf32>
    %cst_7 = arith.constant 3.200000e+01 : f32
    %12 = vector.broadcast %cst_7 : f32 to vector<64x1xf32>
    %13 = arith.divf %11, %12 : vector<64x1xf32>
    %cst_8 = arith.constant 9.99999996E-13 : f32
    %14 = vector.broadcast %cst_8 : f32 to vector<64x1xf32>
    %15 = arith.addf %13, %14 : vector<64x1xf32>
    %16 = math.rsqrt %15 : vector<64x1xf32>
    %17 = vector.broadcast %16 : vector<64x1xf32> to vector<64x32xf32>
    %18 = arith.mulf %8, %17 : vector<64x32xf32>
    %19 = vector.broadcast %1 : vector<1x32xf32> to vector<64x32xf32>
    %20 = arith.mulf %18, %19 : vector<64x32xf32>
    %21 = vector.broadcast %2 : vector<1x32xf32> to vector<64x32xf32>
    %22 = arith.addf %20, %21 : vector<64x32xf32>
    %c0_9 = arith.constant 0 : index
    %c0_10 = arith.constant 0 : index
    %23 = vector.load %arg4[%c0_9, %c0_10] : memref<64x32xf32, #tpu.memory_space<vmem>>, vector<64x32xf32>
    tpu.vector_store %arg4[%c0_9, %c0_10], %22 {strides = array<i32>} : memref<64x32xf32, #tpu.memory_space<vmem>>, vector<64x32xf32>,
    return
  }
  func.func @transform_0(%arg0: i32) -> (i32, i32) {
    %c0_i32 = arith.constant 0 : i32
    %c0_i32_0 = arith.constant 0 : i32
    return %arg0, %c0_i32 : i32, i32
  }
  func.func @transform_1(%arg0: i32) -> (i32, i32) {
    %c0_i32 = arith.constant 0 : i32
    %c0_i32_0 = arith.constant 0 : i32
    %c0_i32_1 = arith.constant 0 : i32
    return %c0_i32, %c0_i32_0 : i32, i32
  }
  func.func @transform_2(%arg0: i32) -> (i32, i32) {
    %c0_i32 = arith.constant 0 : i32
    %c0_i32_0 = arith.constant 0 : i32
    %c0_i32_1 = arith.constant 0 : i32
    return %c0_i32, %c0_i32_0 : i32, i32
  }
  func.func @transform_3(%arg0: i32) -> (i32, i32) {
    %c0_i32 = arith.constant 0 : i32
    %c0_i32_0 = arith.constant 0 : i32
    return %arg0, %c0_i32 : i32, i32
  }
}

module attributes {stable_mosaic.version = 11 : i64} {
  func.func @_bert_layer_kernel(%arg0: i32, %arg1: memref<4x8x32xf32, #tpu.memory_space<vmem>>, %arg2: memref<4x1x8xf32, #tpu.memory_space<vmem>>, %arg3: memref<32x96xbf16, #tpu.memory_space<vmem>>, %arg4: memref<1x96xf32, #tpu.memory_space<vmem>>, %arg5: memref<32x32xbf16, #tpu.memory_space<vmem>>, %arg6: memref<1x32xf32, #tpu.memory_space<vmem>>, %arg7: memref<1x32xf32, #tpu.memory_space<vmem>>, %arg8: memref<1x32xf32, #tpu.memory_space<vmem>>, %arg9: memref<32x64xbf16, #tpu.memory_space<vmem>>, %arg10: memref<1x64xf32, #tpu.memory_space<vmem>>, %arg11: memref<64x32xbf16, #tpu.memory_space<vmem>>, %arg12: memref<1x32xf32, #tpu.memory_space<vmem>>, %arg13: memref<1x32xf32, #tpu.memory_space<vmem>>, %arg14: memref<1x32xf32, #tpu.memory_space<vmem>>, %arg15: memref<4x8x32xf32, #tpu.memory_space<vmem>>) attributes {dimension_semantics = [#tpu.dimension_semantics<parallel>], iteration_bounds = array<i64: 2>, scalar_prefetch = 0 : i64, scratch_operands = 0 : i64, tpu.core_type = #tpu.core_type<tc>, window_params = [{transform_indices = @transform_0, window_bounds = array<i64: 4, 8, 32>}, {transform_indices = @transform_1, window_bounds = array<i64: 4, 1, 8>}, {pipeline_mode = #tpu.pipeline_mode<synchronous>, transform_indices = @transform_2, window_bounds = array<i64: 32, 96>}, {pipeline_mode = #tpu.pipeline_mode<synchronous>, transform_indices = @transform_3, window_bounds = array<i64: 1, 96>}, {pipeline_mode = #tpu.pipeline_mode<synchronous>, transform_indices = @transform_4, window_bounds = array<i64: 32, 32>}, {pipeline_mode = #tpu.pipeline_mode<synchronous>, transform_indices = @transform_5, window_bounds = array<i64: 1, 32>}, {pipeline_mode = #tpu.pipeline_mode<synchronous>, transform_indices = @transform_6, window_bounds = array<i64: 1, 32>}, {pipeline_mode = #tpu.pipeline_mode<synchronous>, transform_indices = @transform_7, window_bounds = array<i64: 1, 32>}, {pipeline_mode = #tpu.pipeline_mode<synchronous>, transform_indices = @transform_8, window_bounds = array<i64: 32, 64>}, {pipeline_mode = #tpu.pipeline_mode<synchronous>, transform_indices = @transform_9, window_bounds = array<i64: 1, 64>}, {pipeline_mode = #tpu.pipeline_mode<synchronous>, transform_indices = @transform_10, window_bounds = array<i64: 64, 32>}, {pipeline_mode = #tpu.pipeline_mode<synchronous>, transform_indices = @transform_11, window_bounds = array<i64: 1, 32>}, {pipeline_mode = #tpu.pipeline_mode<synchronous>, transform_indices = @transform_12, window_bounds = array<i64: 1, 32>}, {pipeline_mode = #tpu.pipeline_mode<synchronous>, transform_indices = @transform_13, window_bounds = array<i64: 1, 32>}, {transform_indices = @transform_14, window_bounds = array<i64: 4, 8, 32>}]} {
    %c0 = arith.constant 0 : index
    %c0_0 = arith.constant 0 : index
    %c0_1 = arith.constant 0 : index
    %0 = vector.load %arg1[%c0, %c0_0, %c0_1] : memref<4x8x32xf32, #tpu.memory_space<vmem>>, vector<4x8x32xf32>
    %1 = vector.shape_cast %0 : vector<4x8x32xf32> to vector<32x32xf32>
    %2 = arith.truncf %1 : vector<32x32xf32> to vector<32x32xbf16>
    %c0_2 = arith.constant 0 : index
    %c0_3 = arith.constant 0 : index
    %3 = vector.load %arg3[%c0_2, %c0_3] : memref<32x96xbf16, #tpu.memory_space<vmem>>, vector<32x96xbf16>
    %cst = arith.constant dense<0.000000e+00> : vector<32x96xf32>
    %4 = tpu.matmul %2, %3, %cst {dimension_numbers = #tpu.dot_dimension_numbers<[1], [0], [0], [1], [0, 0, 1, 1], [], []>} : vector<32x32xbf16>, vector<32x96xbf16>, vector<32x96xf32> -> vector<32x96xf32>
    %c0_4 = arith.constant 0 : index
    %c0_5 = arith.constant 0 : index
    %5 = vector.load %arg4[%c0_4, %c0_5] : memref<1x96xf32, #tpu.memory_space<vmem>>, vector<1x96xf32>
    %6 = vector.broadcast %5 : vector<1x96xf32> to vector<32x96xf32>
    %7 = arith.addf %4, %6 : vector<32x96xf32>
    %c0_6 = arith.constant 0 : index
    %c0_7 = arith.constant 0 : index
    %c0_8 = arith.constant 0 : index
    %8 = vector.load %arg2[%c0_6, %c0_7, %c0_8] : memref<4x1x8xf32, #tpu.memory_space<vmem>>, vector<4x1x8xf32>
    %9 = vector.extract_strided_slice %7 {offsets = [0, 0], sizes = [32, 16], strides = [1, 1]} : vector<32x96xf32> to vector<32x16xf32>
    %10 = vector.shape_cast %9 : vector<32x16xf32> to vector<4x8x16xf32>
    %11 = vector.extract_strided_slice %7 {offsets = [0, 32], sizes = [32, 16], strides = [1, 1]} : vector<32x96xf32> to vector<32x16xf32>
    %12 = vector.shape_cast %11 : vector<32x16xf32> to vector<4x8x16xf32>
    %13 = vector.extract_strided_slice %7 {offsets = [0, 64], sizes = [32, 16], strides = [1, 1]} : vector<32x96xf32> to vector<32x16xf32>
    %14 = vector.shape_cast %13 : vector<32x16xf32> to vector<4x8x16xf32>
    %15 = arith.truncf %10 : vector<4x8x16xf32> to vector<4x8x16xbf16>
    %16 = arith.truncf %12 : vector<4x8x16xf32> to vector<4x8x16xbf16>
    "tpu.trace_start"() <{level = 10 : i32, message = "bqd,bkd->bqk"}> : () -> ()
    %cst_9 = arith.constant dense<0.000000e+00> : vector<4x8x8xf32>
    %17 = tpu.matmul %15, %16, %cst_9 {dimension_numbers = #tpu.dot_dimension_numbers<[2], [2], [1], [1], [0, 0, 0, 1, 1, 1], [0], [0]>} : vector<4x8x16xbf16>, vector<4x8x16xbf16>, vector<4x8x8xf32> -> vector<4x8x8xf32>
    "tpu.trace_stop"() : () -> ()
    %cst_10 = arith.constant 2.500000e-01 : f32
    %18 = vector.broadcast %cst_10 : f32 to vector<4x8x8xf32>
    %19 = arith.mulf %17, %18 : vector<4x8x8xf32>
    %20 = vector.broadcast %8 : vector<4x1x8xf32> to vector<4x8x8xf32>
    %21 = arith.addf %19, %20 : vector<4x8x8xf32>
    %cst_11 = arith.constant dense<0xFF800000> : vector<4x8xf32>
    %22 = vector.multi_reduction <maximumf>, %21, %cst_11 [2] : vector<4x8x8xf32> to vector<4x8xf32>
    %23 = vector.shape_cast %22 : vector<4x8xf32> to vector<4x8x1xf32>
    %24 = vector.broadcast %23 : vector<4x8x1xf32> to vector<4x8x8xf32>
    %25 = arith.subf %21, %24 : vector<4x8x8xf32>
    %26 = math.exp %25 : vector<4x8x8xf32>
    %cst_12 = arith.constant dense<0.000000e+00> : vector<4x8xf32>
    %27 = vector.multi_reduction <add>, %26, %cst_12 [2] : vector<4x8x8xf32> to vector<4x8xf32>
    %28 = vector.shape_cast %27 : vector<4x8xf32> to vector<4x8x1xf32>
    %29 = tpu.reciprocal %28 {approx = true} : vector<4x8x1xf32> -> vector<4x8x1xf32>
    %30 = vector.broadcast %29 : vector<4x8x1xf32> to vector<4x8x8xf32>
    %31 = arith.mulf %26, %30 : vector<4x8x8xf32>
    %32 = arith.truncf %31 : vector<4x8x8xf32> to vector<4x8x8xbf16>
    %33 = arith.truncf %14 : vector<4x8x16xf32> to vector<4x8x16xbf16>
    "tpu.trace_start"() <{level = 10 : i32, message = "bqk,bkd->bqd"}> : () -> ()
    %cst_13 = arith.constant dense<0.000000e+00> : vector<4x8x16xf32>
    %34 = tpu.matmul %32, %33, %cst_13 {dimension_numbers = #tpu.dot_dimension_numbers<[2], [1], [1], [2], [0, 0, 0, 1, 1, 2], [0], [0]>} : vector<4x8x8xbf16>, vector<4x8x16xbf16>, vector<4x8x16xf32> -> vector<4x8x16xf32>
    "tpu.trace_stop"() : () -> ()
    %35 = vector.shape_cast %34 : vector<4x8x16xf32> to vector<32x16xf32>
    %36 = vector.extract_strided_slice %7 {offsets = [0, 16], sizes = [32, 16], strides = [1, 1]} : vector<32x96xf32> to vector<32x16xf32>
    %37 = vector.shape_cast %36 : vector<32x16xf32> to vector<4x8x16xf32>
    %38 = vector.extract_strided_slice %7 {offsets = [0, 48], sizes = [32, 16], strides = [1, 1]} : vector<32x96xf32> to vector<32x16xf32>
    %39 = vector.shape_cast %38 : vector<32x16xf32> to vector<4x8x16xf32>
    %40 = vector.extract_strided_slice %7 {offsets = [0, 80], sizes = [32, 16], strides = [1, 1]} : vector<32x96xf32> to vector<32x16xf32>
    %41 = vector.shape_cast %40 : vector<32x16xf32> to vector<4x8x16xf32>
    %42 = arith.truncf %37 : vector<4x8x16xf32> to vector<4x8x16xbf16>
    %43 = arith.truncf %39 : vector<4x8x16xf32> to vector<4x8x16xbf16>
    "tpu.trace_start"() <{level = 10 : i32, message = "bqd,bkd->bqk"}> : () -> ()
    %cst_14 = arith.constant dense<0.000000e+00> : vector<4x8x8xf32>
    %44 = tpu.matmul %42, %43, %cst_14 {dimension_numbers = #tpu.dot_dimension_numbers<[2], [2], [1], [1], [0, 0, 0, 1, 1, 1], [0], [0]>} : vector<4x8x16xbf16>, vector<4x8x16xbf16>, vector<4x8x8xf32> -> vector<4x8x8xf32>
    "tpu.trace_stop"() : () -> ()
    %cst_15 = arith.constant 2.500000e-01 : f32
    %45 = vector.broadcast %cst_15 : f32 to vector<4x8x8xf32>
    %46 = arith.mulf %44, %45 : vector<4x8x8xf32>
    %47 = vector.broadcast %8 : vector<4x1x8xf32> to vector<4x8x8xf32>
    %48 = arith.addf %46, %47 : vector<4x8x8xf32>
    %cst_16 = arith.constant dense<0xFF800000> : vector<4x8xf32>
    %49 = vector.multi_reduction <maximumf>, %48, %cst_16 [2] : vector<4x8x8xf32> to vector<4x8xf32>
    %50 = vector.shape_cast %49 : vector<4x8xf32> to vector<4x8x1xf32>
    %51 = vector.broadcast %50 : vector<4x8x1xf32> to vector<4x8x8xf32>
    %52 = arith.subf %48, %51 : vector<4x8x8xf32>
    %53 = math.exp %52 : vector<4x8x8xf32>
    %cst_17 = arith.constant dense<0.000000e+00> : vector<4x8xf32>
    %54 = vector.multi_reduction <add>, %53, %cst_17 [2] : vector<4x8x8xf32> to vector<4x8xf32>
    %55 = vector.shape_cast %54 : vector<4x8xf32> to vector<4x8x1xf32>
    %56 = tpu.reciprocal %55 {approx = true} : vector<4x8x1xf32> -> vector<4x8x1xf32>
    %57 = vector.broadcast %56 : vector<4x8x1xf32> to vector<4x8x8xf32>
    %58 = arith.mulf %53, %57 : vector<4x8x8xf32>
    %59 = arith.truncf %58 : vector<4x8x8xf32> to vector<4x8x8xbf16>
    %60 = arith.truncf %41 : vector<4x8x16xf32> to vector<4x8x16xbf16>
    "tpu.trace_start"() <{level = 10 : i32, message = "bqk,bkd->bqd"}> : () -> ()
    %cst_18 = arith.constant dense<0.000000e+00> : vector<4x8x16xf32>
    %61 = tpu.matmul %59, %60, %cst_18 {dimension_numbers = #tpu.dot_dimension_numbers<[2], [1], [1], [2], [0, 0, 0, 1, 1, 2], [0], [0]>} : vector<4x8x8xbf16>, vector<4x8x16xbf16>, vector<4x8x16xf32> -> vector<4x8x16xf32>
    "tpu.trace_stop"() : () -> ()
    %62 = vector.shape_cast %61 : vector<4x8x16xf32> to vector<32x16xf32>
    %63 = tpu.concatenate %35, %62 in 1 : vector<32x16xf32>, vector<32x16xf32> -> vector<32x32xf32>
    %64 = arith.truncf %63 : vector<32x32xf32> to vector<32x32xbf16>
    %c0_19 = arith.constant 0 : index
    %c0_20 = arith.constant 0 : index
    %65 = vector.load %arg5[%c0_19, %c0_20] : memref<32x32xbf16, #tpu.memory_space<vmem>>, vector<32x32xbf16>
    %cst_21 = arith.constant dense<0.000000e+00> : vector<32x32xf32>
    %66 = tpu.matmul %64, %65, %cst_21 {dimension_numbers = #tpu.dot_dimension_numbers<[1], [0], [0], [1], [0, 0, 1, 1], [], []>} : vector<32x32xbf16>, vector<32x32xbf16>, vector<32x32xf32> -> vector<32x32xf32>
    %c0_22 = arith.constant 0 : index
    %c0_23 = arith.constant 0 : index
    %67 = vector.load %arg6[%c0_22, %c0_23] : memref<1x32xf32, #tpu.memory_space<vmem>>, vector<1x32xf32>
    %68 = vector.broadcast %67 : vector<1x32xf32> to vector<32x32xf32>
    %69 = arith.addf %66, %68 : vector<32x32xf32>
    %70 = arith.addf %69, %1 : vector<32x32xf32>
    %c0_24 = arith.constant 0 : index
    %c0_25 = arith.constant 0 : index
    %71 = vector.load %arg7[%c0_24, %c0_25] : memref<1x32xf32, #tpu.memory_space<vmem>>, vector<1x32xf32>
    %c0_26 = arith.constant 0 : index
    %c0_27 = arith.constant 0 : index
    %72 = vector.load %arg8[%c0_26, %c0_27] : memref<1x32xf32, #tpu.memory_space<vmem>>, vector<1x32xf32>
    %cst_28 = arith.constant dense<0.000000e+00> : vector<32xf32>
    %73 = vector.multi_reduction <add>, %70, %cst_28 [1] : vector<32x32xf32> to vector<32xf32>
    %74 = vector.shape_cast %73 : vector<32xf32> to vector<32x1xf32>
    %cst_29 = arith.constant 3.200000e+01 : f32
    %75 = vector.broadcast %cst_29 : f32 to vector<32x1xf32>
    %76 = arith.divf %74, %75 : vector<32x1xf32>
    %77 = vector.broadcast %76 : vector<32x1xf32> to vector<32x32xf32>
    %78 = arith.subf %70, %77 : vector<32x32xf32>
    %79 = arith.mulf %78, %78 : vector<32x32xf32>
    %cst_30 = arith.constant dense<0.000000e+00> : vector<32xf32>
    %80 = vector.multi_reduction <add>, %79, %cst_30 [1] : vector<32x32xf32> to vector<32xf32>
    %81 = vector.shape_cast %80 : vector<32xf32> to vector<32x1xf32>
    %cst_31 = arith.constant 3.200000e+01 : f32
    %82 = vector.broadcast %cst_31 : f32 to vector<32x1xf32>
    %83 = arith.divf %81, %82 : vector<32x1xf32>
    %cst_32 = arith.constant 9.99999996E-13 : f32
    %84 = vector.broadcast %cst_32 : f32 to vector<32x1xf32>
    %85 = arith.addf %83, %84 : vector<32x1xf32>
    %86 = math.rsqrt %85 : vector<32x1xf32>
    %87 = vector.broadcast %86 : vector<32x1xf32> to vector<32x32xf32>
    %88 = arith.mulf %78, %87 : vector<32x32xf32>
    %89 = vector.broadcast %71 : vector<1x32xf32> to vector<32x32xf32>
    %90 = arith.mulf %88, %89 : vector<32x32xf32>
    %91 = vector.broadcast %72 : vector<1x32xf32> to vector<32x32xf32>
    %92 = arith.addf %90, %91 : vector<32x32xf32>
    %93 = arith.truncf %92 : vector<32x32xf32> to vector<32x32xbf16>
    %c0_33 = arith.constant 0 : index
    %c0_34 = arith.constant 0 : index
    %94 = vector.load %arg9[%c0_33, %c0_34] : memref<32x64xbf16, #tpu.memory_space<vmem>>, vector<32x64xbf16>
    %cst_35 = arith.constant dense<0.000000e+00> : vector<32x64xf32>
    %95 = tpu.matmul %93, %94, %cst_35 {dimension_numbers = #tpu.dot_dimension_numbers<[1], [0], [0], [1], [0, 0, 1, 1], [], []>} : vector<32x32xbf16>, vector<32x64xbf16>, vector<32x64xf32> -> vector<32x64xf32>
    %c0_36 = arith.constant 0 : index
    %c0_37 = arith.constant 0 : index
    %96 = vector.load %arg10[%c0_36, %c0_37] : memref<1x64xf32, #tpu.memory_space<vmem>>, vector<1x64xf32>
    %97 = vector.broadcast %96 : vector<1x64xf32> to vector<32x64xf32>
    %98 = arith.addf %95, %97 : vector<32x64xf32>
    %cst_38 = arith.constant 5.000000e-01 : f32
    %99 = vector.broadcast %cst_38 : f32 to vector<32x64xf32>
    %100 = arith.mulf %99, %98 : vector<32x64xf32>
    %cst_39 = arith.constant 4.471500e-02 : f32
    %101 = vector.broadcast %cst_39 : f32 to vector<32x64xf32>
    %102 = arith.mulf %101, %98 : vector<32x64xf32>
    %103 = arith.mulf %102, %98 : vector<32x64xf32>
    %104 = arith.mulf %103, %98 : vector<32x64xf32>
    %105 = arith.addf %98, %104 : vector<32x64xf32>
    %cst_40 = arith.constant 0.797884583 : f32
    %106 = vector.broadcast %cst_40 : f32 to vector<32x64xf32>
    %107 = arith.mulf %106, %105 : vector<32x64xf32>
    %108 = math.tanh %107 : vector<32x64xf32>
    %cst_41 = arith.constant 1.000000e+00 : f32
    %109 = vector.broadcast %cst_41 : f32 to vector<32x64xf32>
    %110 = arith.addf %109, %108 : vector<32x64xf32>
    %111 = arith.mulf %100, %110 : vector<32x64xf32>
    %112 = arith.truncf %111 : vector<32x64xf32> to vector<32x64xbf16>
    %c0_42 = arith.constant 0 : index
    %c0_43 = arith.constant 0 : index
    %113 = vector.load %arg11[%c0_42, %c0_43] : memref<64x32xbf16, #tpu.memory_space<vmem>>, vector<64x32xbf16>
    %cst_44 = arith.constant dense<0.000000e+00> : vector<32x32xf32>
    %114 = tpu.matmul %112, %113, %cst_44 {dimension_numbers = #tpu.dot_dimension_numbers<[1], [0], [0], [1], [0, 0, 1, 1], [], []>} : vector<32x64xbf16>, vector<64x32xbf16>, vector<32x32xf32> -> vector<32x32xf32>
    %c0_45 = arith.constant 0 : index
    %c0_46 = arith.constant 0 : index
    %115 = vector.load %arg12[%c0_45, %c0_46] : memref<1x32xf32, #tpu.memory_space<vmem>>, vector<1x32xf32>
    %116 = vector.broadcast %115 : vector<1x32xf32> to vector<32x32xf32>
    %117 = arith.addf %114, %116 : vector<32x32xf32>
    %118 = arith.addf %117, %92 : vector<32x32xf32>
    %c0_47 = arith.constant 0 : index
    %c0_48 = arith.constant 0 : index
    %119 = vector.load %arg13[%c0_47, %c0_48] : memref<1x32xf32, #tpu.memory_space<vmem>>, vector<1x32xf32>
    %c0_49 = arith.constant 0 : index
    %c0_50 = arith.constant 0 : index
    %120 = vector.load %arg14[%c0_49, %c0_50] : memref<1x32xf32, #tpu.memory_space<vmem>>, vector<1x32xf32>
    %cst_51 = arith.constant dense<0.000000e+00> : vector<32xf32>
    %121 = vector.multi_reduction <add>, %118, %cst_51 [1] : vector<32x32xf32> to vector<32xf32>
    %122 = vector.shape_cast %121 : vector<32xf32> to vector<32x1xf32>
    %cst_52 = arith.constant 3.200000e+01 : f32
    %123 = vector.broadcast %cst_52 : f32 to vector<32x1xf32>
    %124 = arith.divf %122, %123 : vector<32x1xf32>
    %125 = vector.broadcast %124 : vector<32x1xf32> to vector<32x32xf32>
    %126 = arith.subf %118, %125 : vector<32x32xf32>
    %127 = arith.mulf %126, %126 : vector<32x32xf32>
    %cst_53 = arith.constant dense<0.000000e+00> : vector<32xf32>
    %128 = vector.multi_reduction <add>, %127, %cst_53 [1] : vector<32x32xf32> to vector<32xf32>
    %129 = vector.shape_cast %128 : vector<32xf32> to vector<32x1xf32>
    %cst_54 = arith.constant 3.200000e+01 : f32
    %130 = vector.broadcast %cst_54 : f32 to vector<32x1xf32>
    %131 = arith.divf %129, %130 : vector<32x1xf32>
    %cst_55 = arith.constant 9.99999996E-13 : f32
    %132 = vector.broadcast %cst_55 : f32 to vector<32x1xf32>
    %133 = arith.addf %131, %132 : vector<32x1xf32>
    %134 = math.rsqrt %133 : vector<32x1xf32>
    %135 = vector.broadcast %134 : vector<32x1xf32> to vector<32x32xf32>
    %136 = arith.mulf %126, %135 : vector<32x32xf32>
    %137 = vector.broadcast %119 : vector<1x32xf32> to vector<32x32xf32>
    %138 = arith.mulf %136, %137 : vector<32x32xf32>
    %139 = vector.broadcast %120 : vector<1x32xf32> to vector<32x32xf32>
    %140 = arith.addf %138, %139 : vector<32x32xf32>
    %141 = vector.shape_cast %140 : vector<32x32xf32> to vector<4x8x32xf32>
    %c0_56 = arith.constant 0 : index
    %c0_57 = arith.constant 0 : index
    %c0_58 = arith.constant 0 : index
    %142 = vector.load %arg15[%c0_56, %c0_57, %c0_58] : memref<4x8x32xf32, #tpu.memory_space<vmem>>, vector<4x8x32xf32>
    tpu.vector_store %arg15[%c0_56, %c0_57, %c0_58], %141 {strides = array<i32>} : memref<4x8x32xf32, #tpu.memory_space<vmem>>, vector<4x8x32xf32>,
    return
  }
  func.func @transform_0(%arg0: i32) -> (i32, i32, i32) {
    %c0_i32 = arith.constant 0 : i32
    %c0_i32_0 = arith.constant 0 : i32
    %c0_i32_1 = arith.constant 0 : i32
    return %arg0, %c0_i32, %c0_i32_0 : i32, i32, i32
  }
  func.func @transform_1(%arg0: i32) -> (i32, i32, i32) {
    %c0_i32 = arith.constant 0 : i32
    %c0_i32_0 = arith.constant 0 : i32
    %c0_i32_1 = arith.constant 0 : i32
    return %arg0, %c0_i32, %c0_i32_0 : i32, i32, i32
  }
  func.func @transform_2(%arg0: i32) -> (i32, i32) {
    %c0_i32 = arith.constant 0 : i32
    %c0_i32_0 = arith.constant 0 : i32
    %c0_i32_1 = arith.constant 0 : i32
    return %c0_i32, %c0_i32_0 : i32, i32
  }
  func.func @transform_3(%arg0: i32) -> (i32, i32) {
    %c0_i32 = arith.constant 0 : i32
    %c0_i32_0 = arith.constant 0 : i32
    %c0_i32_1 = arith.constant 0 : i32
    return %c0_i32, %c0_i32_0 : i32, i32
  }
  func.func @transform_4(%arg0: i32) -> (i32, i32) {
    %c0_i32 = arith.constant 0 : i32
    %c0_i32_0 = arith.constant 0 : i32
    %c0_i32_1 = arith.constant 0 : i32
    return %c0_i32, %c0_i32_0 : i32, i32
  }
  func.func @transform_5(%arg0: i32) -> (i32, i32) {
    %c0_i32 = arith.constant 0 : i32
    %c0_i32_0 = arith.constant 0 : i32
    %c0_i32_1 = arith.constant 0 : i32
    return %c0_i32, %c0_i32_0 : i32, i32
  }
  func.func @transform_6(%arg0: i32) -> (i32, i32) {
    %c0_i32 = arith.constant 0 : i32
    %c0_i32_0 = arith.constant 0 : i32
    %c0_i32_1 = arith.constant 0 : i32
    return %c0_i32, %c0_i32_0 : i32, i32
  }
  func.func @transform_7(%arg0: i32) -> (i32, i32) {
    %c0_i32 = arith.constant 0 : i32
    %c0_i32_0 = arith.constant 0 : i32
    %c0_i32_1 = arith.constant 0 : i32
    return %c0_i32, %c0_i32_0 : i32, i32
  }
  func.func @transform_8(%arg0: i32) -> (i32, i32) {
    %c0_i32 = arith.constant 0 : i32
    %c0_i32_0 = arith.constant 0 : i32
    %c0_i32_1 = arith.constant 0 : i32
    return %c0_i32, %c0_i32_0 : i32, i32
  }
  func.func @transform_9(%arg0: i32) -> (i32, i32) {
    %c0_i32 = arith.constant 0 : i32
    %c0_i32_0 = arith.constant 0 : i32
    %c0_i32_1 = arith.constant 0 : i32
    return %c0_i32, %c0_i32_0 : i32, i32
  }
  func.func @transform_10(%arg0: i32) -> (i32, i32) {
    %c0_i32 = arith.constant 0 : i32
    %c0_i32_0 = arith.constant 0 : i32
    %c0_i32_1 = arith.constant 0 : i32
    return %c0_i32, %c0_i32_0 : i32, i32
  }
  func.func @transform_11(%arg0: i32) -> (i32, i32) {
    %c0_i32 = arith.constant 0 : i32
    %c0_i32_0 = arith.constant 0 : i32
    %c0_i32_1 = arith.constant 0 : i32
    return %c0_i32, %c0_i32_0 : i32, i32
  }
  func.func @transform_12(%arg0: i32) -> (i32, i32) {
    %c0_i32 = arith.constant 0 : i32
    %c0_i32_0 = arith.constant 0 : i32
    %c0_i32_1 = arith.constant 0 : i32
    return %c0_i32, %c0_i32_0 : i32, i32
  }
  func.func @transform_13(%arg0: i32) -> (i32, i32) {
    %c0_i32 = arith.constant 0 : i32
    %c0_i32_0 = arith.constant 0 : i32
    %c0_i32_1 = arith.constant 0 : i32
    return %c0_i32, %c0_i32_0 : i32, i32
  }
  func.func @transform_14(%arg0: i32) -> (i32, i32, i32) {
    %c0_i32 = arith.constant 0 : i32
    %c0_i32_0 = arith.constant 0 : i32
    %c0_i32_1 = arith.constant 0 : i32
    return %arg0, %c0_i32, %c0_i32_0 : i32, i32, i32
  }
}

module attributes {stable_mosaic.version = 11 : i64} {
  func.func @_linear_kernel(%arg0: i32, %arg1: memref<8x32xf32, #tpu.memory_space<vmem>>, %arg2: memref<32x32xbf16, #tpu.memory_space<vmem>>, %arg3: memref<1x32xf32, #tpu.memory_space<vmem>>, %arg4: memref<8x32xf32, #tpu.memory_space<vmem>>) attributes {dimension_semantics = [#tpu.dimension_semantics<parallel>], iteration_bounds = array<i64: 1>, scalar_prefetch = 0 : i64, scratch_operands = 0 : i64, tpu.core_type = #tpu.core_type<tc>, window_params = [{transform_indices = @transform_0, window_bounds = array<i64: 8, 32>}, {pipeline_mode = #tpu.pipeline_mode<synchronous>, transform_indices = @transform_1, window_bounds = array<i64: 32, 32>}, {pipeline_mode = #tpu.pipeline_mode<synchronous>, transform_indices = @transform_2, window_bounds = array<i64: 1, 32>}, {transform_indices = @transform_3, window_bounds = array<i64: 8, 32>}]} {
    %c0 = arith.constant 0 : index
    %c0_0 = arith.constant 0 : index
    %0 = vector.load %arg1[%c0, %c0_0] : memref<8x32xf32, #tpu.memory_space<vmem>>, vector<8x32xf32>
    %1 = arith.truncf %0 : vector<8x32xf32> to vector<8x32xbf16>
    %c0_1 = arith.constant 0 : index
    %c0_2 = arith.constant 0 : index
    %2 = vector.load %arg2[%c0_1, %c0_2] : memref<32x32xbf16, #tpu.memory_space<vmem>>, vector<32x32xbf16>
    %cst = arith.constant dense<0.000000e+00> : vector<8x32xf32>
    %3 = tpu.matmul %1, %2, %cst {dimension_numbers = #tpu.dot_dimension_numbers<[1], [0], [0], [1], [0, 0, 1, 1], [], []>} : vector<8x32xbf16>, vector<32x32xbf16>, vector<8x32xf32> -> vector<8x32xf32>
    %c0_3 = arith.constant 0 : index
    %c0_4 = arith.constant 0 : index
    %4 = vector.load %arg3[%c0_3, %c0_4] : memref<1x32xf32, #tpu.memory_space<vmem>>, vector<1x32xf32>
    %5 = vector.broadcast %4 : vector<1x32xf32> to vector<8x32xf32>
    %6 = arith.addf %3, %5 : vector<8x32xf32>
    %c0_5 = arith.constant 0 : index
    %c0_6 = arith.constant 0 : index
    %7 = vector.load %arg4[%c0_5, %c0_6] : memref<8x32xf32, #tpu.memory_space<vmem>>, vector<8x32xf32>
    tpu.vector_store %arg4[%c0_5, %c0_6], %6 {strides = array<i32>} : memref<8x32xf32, #tpu.memory_space<vmem>>, vector<8x32xf32>,
    return
  }
  func.func @transform_0(%arg0: i32) -> (i32, i32) {
    %c0_i32 = arith.constant 0 : i32
    %c0_i32_0 = arith.constant 0 : i32
    return %arg0, %c0_i32 : i32, i32
  }
  func.func @transform_1(%arg0: i32) -> (i32, i32) {
    %c0_i32 = arith.constant 0 : i32
    %c0_i32_0 = arith.constant 0 : i32
    %c0_i32_1 = arith.constant 0 : i32
    return %c0_i32, %c0_i32_0 : i32, i32
  }
  func.func @transform_2(%arg0: i32) -> (i32, i32) {
    %c0_i32 = arith.constant 0 : i32
    %c0_i32_0 = arith.constant 0 : i32
    %c0_i32_1 = arith.constant 0 : i32
    return %c0_i32, %c0_i32_0 : i32, i32
  }
  func.func @transform_3(%arg0: i32) -> (i32, i32) {
    %c0_i32 = arith.constant 0 : i32
    %c0_i32_0 = arith.constant 0 : i32
    return %arg0, %c0_i32 : i32, i32
  }
}

module attributes {stable_mosaic.version = 11 : i64} {
  func.func @_linear_kernel(%arg0: i32, %arg1: memref<8x32xf32, #tpu.memory_space<vmem>>, %arg2: memref<32x128xbf16, #tpu.memory_space<vmem>>, %arg3: memref<1x128xf32, #tpu.memory_space<vmem>>, %arg4: memref<8x128xf32, #tpu.memory_space<vmem>>) attributes {dimension_semantics = [#tpu.dimension_semantics<parallel>], iteration_bounds = array<i64: 1>, scalar_prefetch = 0 : i64, scratch_operands = 0 : i64, tpu.core_type = #tpu.core_type<tc>, window_params = [{transform_indices = @transform_0, window_bounds = array<i64: 8, 32>}, {pipeline_mode = #tpu.pipeline_mode<synchronous>, transform_indices = @transform_1, window_bounds = array<i64: 32, 128>}, {pipeline_mode = #tpu.pipeline_mode<synchronous>, transform_indices = @transform_2, window_bounds = array<i64: 1, 128>}, {transform_indices = @transform_3, window_bounds = array<i64: 8, 128>}]} {
    %c0 = arith.constant 0 : index
    %c0_0 = arith.constant 0 : index
    %0 = vector.load %arg1[%c0, %c0_0] : memref<8x32xf32, #tpu.memory_space<vmem>>, vector<8x32xf32>
    %cst = arith.constant 5.000000e-01 : f32
    %1 = vector.broadcast %cst : f32 to vector<8x32xf32>
    %2 = arith.mulf %1, %0 : vector<8x32xf32>
    %cst_1 = arith.constant 4.471500e-02 : f32
    %3 = vector.broadcast %cst_1 : f32 to vector<8x32xf32>
    %4 = arith.mulf %3, %0 : vector<8x32xf32>
    %5 = arith.mulf %4, %0 : vector<8x32xf32>
    %6 = arith.mulf %5, %0 : vector<8x32xf32>
    %7 = arith.addf %0, %6 : vector<8x32xf32>
    %cst_2 = arith.constant 0.797884583 : f32
    %8 = vector.broadcast %cst_2 : f32 to vector<8x32xf32>
    %9 = arith.mulf %8, %7 : vector<8x32xf32>
    %10 = math.tanh %9 : vector<8x32xf32>
    %cst_3 = arith.constant 1.000000e+00 : f32
    %11 = vector.broadcast %cst_3 : f32 to vector<8x32xf32>
    %12 = arith.addf %11, %10 : vector<8x32xf32>
    %13 = arith.mulf %2, %12 : vector<8x32xf32>
    %14 = arith.truncf %13 : vector<8x32xf32> to vector<8x32xbf16>
    %c0_4 = arith.constant 0 : index
    %c0_5 = arith.constant 0 : index
    %15 = vector.load %arg2[%c0_4, %c0_5] : memref<32x128xbf16, #tpu.memory_space<vmem>>, vector<32x128xbf16>
    %cst_6 = arith.constant dense<0.000000e+00> : vector<8x128xf32>
    %16 = tpu.matmul %14, %15, %cst_6 {dimension_numbers = #tpu.dot_dimension_numbers<[1], [0], [0], [1], [0, 0, 1, 1], [], []>} : vector<8x32xbf16>, vector<32x128xbf16>, vector<8x128xf32> -> vector<8x128xf32>
    %c0_7 = arith.constant 0 : index
    %c0_8 = arith.constant 0 : index
    %17 = vector.load %arg3[%c0_7, %c0_8] : memref<1x128xf32, #tpu.memory_space<vmem>>, vector<1x128xf32>
    %18 = vector.broadcast %17 : vector<1x128xf32> to vector<8x128xf32>
    %19 = arith.addf %16, %18 : vector<8x128xf32>
    %c0_9 = arith.constant 0 : index
    %c0_10 = arith.constant 0 : index
    %20 = vector.load %arg4[%c0_9, %c0_10] : memref<8x128xf32, #tpu.memory_space<vmem>>, vector<8x128xf32>
    tpu.vector_store %arg4[%c0_9, %c0_10], %19 {strides = array<i32>} : memref<8x128xf32, #tpu.memory_space<vmem>>, vector<8x128xf32>,
    return
  }
  func.func @transform_0(%arg0: i32) -> (i32, i32) {
    %c0_i32 = arith.constant 0 : i32
    %c0_i32_0 = arith.constant 0 : i32
    return %arg0, %c0_i32 : i32, i32
  }
  func.func @transform_1(%arg0: i32) -> (i32, i32) {
    %c0_i32 = arith.constant 0 : i32
    %c0_i32_0 = arith.constant 0 : i32
    %c0_i32_1 = arith.constant 0 : i32
    return %c0_i32, %c0_i32_0 : i32, i32
  }
  func.func @transform_2(%arg0: i32) -> (i32, i32) {
    %c0_i32 = arith.constant 0 : i32
    %c0_i32_0 = arith.constant 0 : i32
    %c0_i32_1 = arith.constant 0 : i32
    return %c0_i32, %c0_i32_0 : i32, i32
  }
  func.func @transform_3(%arg0: i32) -> (i32, i32) {
    %c0_i32 = arith.constant 0 : i32
    %c0_i32_0 = arith.constant 0 : i32
    return %arg0, %c0_i32 : i32, i32
  }
}

module attributes {stable_mosaic.version = 11 : i64} {
  func.func @_bert_layer_kernel(%arg0: i32, %arg1: memref<1x4x32xf32, #tpu.memory_space<vmem>>, %arg2: memref<1x1x4xf32, #tpu.memory_space<vmem>>, %arg3: memref<32x96xbf16, #tpu.memory_space<vmem>>, %arg4: memref<1x96xf32, #tpu.memory_space<vmem>>, %arg5: memref<32x32xbf16, #tpu.memory_space<vmem>>, %arg6: memref<1x32xf32, #tpu.memory_space<vmem>>, %arg7: memref<1x32xf32, #tpu.memory_space<vmem>>, %arg8: memref<1x32xf32, #tpu.memory_space<vmem>>, %arg9: memref<32x64xbf16, #tpu.memory_space<vmem>>, %arg10: memref<1x64xf32, #tpu.memory_space<vmem>>, %arg11: memref<64x32xbf16, #tpu.memory_space<vmem>>, %arg12: memref<1x32xf32, #tpu.memory_space<vmem>>, %arg13: memref<1x32xf32, #tpu.memory_space<vmem>>, %arg14: memref<1x32xf32, #tpu.memory_space<vmem>>, %arg15: memref<1x4x32xf32, #tpu.memory_space<vmem>>) attributes {dimension_semantics = [#tpu.dimension_semantics<parallel>], iteration_bounds = array<i64: 2>, scalar_prefetch = 0 : i64, scratch_operands = 0 : i64, tpu.core_type = #tpu.core_type<tc>, window_params = [{transform_indices = @transform_0, window_bounds = array<i64: 1, 4, 32>}, {transform_indices = @transform_1, window_bounds = array<i64: 1, 1, 4>}, {pipeline_mode = #tpu.pipeline_mode<synchronous>, transform_indices = @transform_2, window_bounds = array<i64: 32, 96>}, {pipeline_mode = #tpu.pipeline_mode<synchronous>, transform_indices = @transform_3, window_bounds = array<i64: 1, 96>}, {pipeline_mode = #tpu.pipeline_mode<synchronous>, transform_indices = @transform_4, window_bounds = array<i64: 32, 32>}, {pipeline_mode = #tpu.pipeline_mode<synchronous>, transform_indices = @transform_5, window_bounds = array<i64: 1, 32>}, {pipeline_mode = #tpu.pipeline_mode<synchronous>, transform_indices = @transform_6, window_bounds = array<i64: 1, 32>}, {pipeline_mode = #tpu.pipeline_mode<synchronous>, transform_indices = @transform_7, window_bounds = array<i64: 1, 32>}, {pipeline_mode = #tpu.pipeline_mode<synchronous>, transform_indices = @transform_8, window_bounds = array<i64: 32, 64>}, {pipeline_mode = #tpu.pipeline_mode<synchronous>, transform_indices = @transform_9, window_bounds = array<i64: 1, 64>}, {pipeline_mode = #tpu.pipeline_mode<synchronous>, transform_indices = @transform_10, window_bounds = array<i64: 64, 32>}, {pipeline_mode = #tpu.pipeline_mode<synchronous>, transform_indices = @transform_11, window_bounds = array<i64: 1, 32>}, {pipeline_mode = #tpu.pipeline_mode<synchronous>, transform_indices = @transform_12, window_bounds = array<i64: 1, 32>}, {pipeline_mode = #tpu.pipeline_mode<synchronous>, transform_indices = @transform_13, window_bounds = array<i64: 1, 32>}, {transform_indices = @transform_14, window_bounds = array<i64: 1, 4, 32>}]} {
    %c0 = arith.constant 0 : index
    %c0_0 = arith.constant 0 : index
    %c0_1 = arith.constant 0 : index
    %0 = vector.load %arg1[%c0, %c0_0, %c0_1] : memref<1x4x32xf32, #tpu.memory_space<vmem>>, vector<1x4x32xf32>
    %1 = vector.shape_cast %0 : vector<1x4x32xf32> to vector<4x32xf32>
    %2 = arith.truncf %1 : vector<4x32xf32> to vector<4x32xbf16>
    %c0_2 = arith.constant 0 : index
    %c0_3 = arith.constant 0 : index
    %3 = vector.load %arg3[%c0_2, %c0_3] : memref<32x96xbf16, #tpu.memory_space<vmem>>, vector<32x96xbf16>
    %cst = arith.constant dense<0.000000e+00> : vector<4x96xf32>
    %4 = tpu.matmul %2, %3, %cst {dimension_numbers = #tpu.dot_dimension_numbers<[1], [0], [0], [1], [0, 0, 1, 1], [], []>} : vector<4x32xbf16>, vector<32x96xbf16>, vector<4x96xf32> -> vector<4x96xf32>
    %c0_4 = arith.constant 0 : index
    %c0_5 = arith.constant 0 : index
    %5 = vector.load %arg4[%c0_4, %c0_5] : memref<1x96xf32, #tpu.memory_space<vmem>>, vector<1x96xf32>
    %6 = vector.broadcast %5 : vector<1x96xf32> to vector<4x96xf32>
    %7 = arith.addf %4, %6 : vector<4x96xf32>
    %c0_6 = arith.constant 0 : index
    %c0_7 = arith.constant 0 : index
    %c0_8 = arith.constant 0 : index
    %8 = vector.load %arg2[%c0_6, %c0_7, %c0_8] : memref<1x1x4xf32, #tpu.memory_space<vmem>>, vector<1x1x4xf32>
    %9 = vector.extract_strided_slice %7 {offsets = [0, 0], sizes = [4, 16], strides = [1, 1]} : vector<4x96xf32> to vector<4x16xf32>
    %10 = vector.shape_cast %9 : vector<4x16xf32> to vector<1x4x16xf32>
    %11 = vector.extract_strided_slice %7 {offsets = [0, 32], sizes = [4, 16], strides = [1, 1]} : vector<4x96xf32> to vector<4x16xf32>
    %12 = vector.shape_cast %11 : vector<4x16xf32> to vector<1x4x16xf32>
    %13 = vector.extract_strided_slice %7 {offsets = [0, 64], sizes = [4, 16], strides = [1, 1]} : vector<4x96xf32> to vector<4x16xf32>
    %14 = vector.shape_cast %13 : vector<4x16xf32> to vector<1x4x16xf32>
    %15 = arith.truncf %10 : vector<1x4x16xf32> to vector<1x4x16xbf16>
    %16 = arith.truncf %12 : vector<1x4x16xf32> to vector<1x4x16xbf16>
    "tpu.trace_start"() <{level = 10 : i32, message = "bqd,bkd->bqk"}> : () -> ()
    %cst_9 = arith.constant dense<0.000000e+00> : vector<1x4x4xf32>
    %17 = tpu.matmul %15, %16, %cst_9 {dimension_numbers = #tpu.dot_dimension_numbers<[2], [2], [1], [1], [0, 0, 0, 1, 1, 1], [0], [0]>} : vector<1x4x16xbf16>, vector<1x4x16xbf16>, vector<1x4x4xf32> -> vector<1x4x4xf32>
    "tpu.trace_stop"() : () -> ()
    %cst_10 = arith.constant 2.500000e-01 : f32
    %18 = vector.broadcast %cst_10 : f32 to vector<1x4x4xf32>
    %19 = arith.mulf %17, %18 : vector<1x4x4xf32>
    %20 = vector.broadcast %8 : vector<1x1x4xf32> to vector<1x4x4xf32>
    %21 = arith.addf %19, %20 : vector<1x4x4xf32>
    %cst_11 = arith.constant dense<0xFF800000> : vector<1x4xf32>
    %22 = vector.multi_reduction <maximumf>, %21, %cst_11 [2] : vector<1x4x4xf32> to vector<1x4xf32>
    %23 = vector.shape_cast %22 : vector<1x4xf32> to vector<1x4x1xf32>
    %24 = vector.broadcast %23 : vector<1x4x1xf32> to vector<1x4x4xf32>
    %25 = arith.subf %21, %24 : vector<1x4x4xf32>
    %26 = math.exp %25 : vector<1x4x4xf32>
    %cst_12 = arith.constant dense<0.000000e+00> : vector<1x4xf32>
    %27 = vector.multi_reduction <add>, %26, %cst_12 [2] : vector<1x4x4xf32> to vector<1x4xf32>
    %28 = vector.shape_cast %27 : vector<1x4xf32> to vector<1x4x1xf32>
    %29 = tpu.reciprocal %28 {approx = true} : vector<1x4x1xf32> -> vector<1x4x1xf32>
    %30 = vector.broadcast %29 : vector<1x4x1xf32> to vector<1x4x4xf32>
    %31 = arith.mulf %26, %30 : vector<1x4x4xf32>
    %32 = arith.truncf %31 : vector<1x4x4xf32> to vector<1x4x4xbf16>
    %33 = arith.truncf %14 : vector<1x4x16xf32> to vector<1x4x16xbf16>
    "tpu.trace_start"() <{level = 10 : i32, message = "bqk,bkd->bqd"}> : () -> ()
    %cst_13 = arith.constant dense<0.000000e+00> : vector<1x4x16xf32>
    %34 = tpu.matmul %32, %33, %cst_13 {dimension_numbers = #tpu.dot_dimension_numbers<[2], [1], [1], [2], [0, 0, 0, 1, 1, 2], [0], [0]>} : vector<1x4x4xbf16>, vector<1x4x16xbf16>, vector<1x4x16xf32> -> vector<1x4x16xf32>
    "tpu.trace_stop"() : () -> ()
    %35 = vector.shape_cast %34 : vector<1x4x16xf32> to vector<4x16xf32>
    %36 = vector.extract_strided_slice %7 {offsets = [0, 16], sizes = [4, 16], strides = [1, 1]} : vector<4x96xf32> to vector<4x16xf32>
    %37 = vector.shape_cast %36 : vector<4x16xf32> to vector<1x4x16xf32>
    %38 = vector.extract_strided_slice %7 {offsets = [0, 48], sizes = [4, 16], strides = [1, 1]} : vector<4x96xf32> to vector<4x16xf32>
    %39 = vector.shape_cast %38 : vector<4x16xf32> to vector<1x4x16xf32>
    %40 = vector.extract_strided_slice %7 {offsets = [0, 80], sizes = [4, 16], strides = [1, 1]} : vector<4x96xf32> to vector<4x16xf32>
    %41 = vector.shape_cast %40 : vector<4x16xf32> to vector<1x4x16xf32>
    %42 = arith.truncf %37 : vector<1x4x16xf32> to vector<1x4x16xbf16>
    %43 = arith.truncf %39 : vector<1x4x16xf32> to vector<1x4x16xbf16>
    "tpu.trace_start"() <{level = 10 : i32, message = "bqd,bkd->bqk"}> : () -> ()
    %cst_14 = arith.constant dense<0.000000e+00> : vector<1x4x4xf32>
    %44 = tpu.matmul %42, %43, %cst_14 {dimension_numbers = #tpu.dot_dimension_numbers<[2], [2], [1], [1], [0, 0, 0, 1, 1, 1], [0], [0]>} : vector<1x4x16xbf16>, vector<1x4x16xbf16>, vector<1x4x4xf32> -> vector<1x4x4xf32>
    "tpu.trace_stop"() : () -> ()
    %cst_15 = arith.constant 2.500000e-01 : f32
    %45 = vector.broadcast %cst_15 : f32 to vector<1x4x4xf32>
    %46 = arith.mulf %44, %45 : vector<1x4x4xf32>
    %47 = vector.broadcast %8 : vector<1x1x4xf32> to vector<1x4x4xf32>
    %48 = arith.addf %46, %47 : vector<1x4x4xf32>
    %cst_16 = arith.constant dense<0xFF800000> : vector<1x4xf32>
    %49 = vector.multi_reduction <maximumf>, %48, %cst_16 [2] : vector<1x4x4xf32> to vector<1x4xf32>
    %50 = vector.shape_cast %49 : vector<1x4xf32> to vector<1x4x1xf32>
    %51 = vector.broadcast %50 : vector<1x4x1xf32> to vector<1x4x4xf32>
    %52 = arith.subf %48, %51 : vector<1x4x4xf32>
    %53 = math.exp %52 : vector<1x4x4xf32>
    %cst_17 = arith.constant dense<0.000000e+00> : vector<1x4xf32>
    %54 = vector.multi_reduction <add>, %53, %cst_17 [2] : vector<1x4x4xf32> to vector<1x4xf32>
    %55 = vector.shape_cast %54 : vector<1x4xf32> to vector<1x4x1xf32>
    %56 = tpu.reciprocal %55 {approx = true} : vector<1x4x1xf32> -> vector<1x4x1xf32>
    %57 = vector.broadcast %56 : vector<1x4x1xf32> to vector<1x4x4xf32>
    %58 = arith.mulf %53, %57 : vector<1x4x4xf32>
    %59 = arith.truncf %58 : vector<1x4x4xf32> to vector<1x4x4xbf16>
    %60 = arith.truncf %41 : vector<1x4x16xf32> to vector<1x4x16xbf16>
    "tpu.trace_start"() <{level = 10 : i32, message = "bqk,bkd->bqd"}> : () -> ()
    %cst_18 = arith.constant dense<0.000000e+00> : vector<1x4x16xf32>
    %61 = tpu.matmul %59, %60, %cst_18 {dimension_numbers = #tpu.dot_dimension_numbers<[2], [1], [1], [2], [0, 0, 0, 1, 1, 2], [0], [0]>} : vector<1x4x4xbf16>, vector<1x4x16xbf16>, vector<1x4x16xf32> -> vector<1x4x16xf32>
    "tpu.trace_stop"() : () -> ()
    %62 = vector.shape_cast %61 : vector<1x4x16xf32> to vector<4x16xf32>
    %63 = tpu.concatenate %35, %62 in 1 : vector<4x16xf32>, vector<4x16xf32> -> vector<4x32xf32>
    %64 = arith.truncf %63 : vector<4x32xf32> to vector<4x32xbf16>
    %c0_19 = arith.constant 0 : index
    %c0_20 = arith.constant 0 : index
    %65 = vector.load %arg5[%c0_19, %c0_20] : memref<32x32xbf16, #tpu.memory_space<vmem>>, vector<32x32xbf16>
    %cst_21 = arith.constant dense<0.000000e+00> : vector<4x32xf32>
    %66 = tpu.matmul %64, %65, %cst_21 {dimension_numbers = #tpu.dot_dimension_numbers<[1], [0], [0], [1], [0, 0, 1, 1], [], []>} : vector<4x32xbf16>, vector<32x32xbf16>, vector<4x32xf32> -> vector<4x32xf32>
    %c0_22 = arith.constant 0 : index
    %c0_23 = arith.constant 0 : index
    %67 = vector.load %arg6[%c0_22, %c0_23] : memref<1x32xf32, #tpu.memory_space<vmem>>, vector<1x32xf32>
    %68 = vector.broadcast %67 : vector<1x32xf32> to vector<4x32xf32>
    %69 = arith.addf %66, %68 : vector<4x32xf32>
    %70 = arith.addf %69, %1 : vector<4x32xf32>
    %c0_24 = arith.constant 0 : index
    %c0_25 = arith.constant 0 : index
    %71 = vector.load %arg7[%c0_24, %c0_25] : memref<1x32xf32, #tpu.memory_space<vmem>>, vector<1x32xf32>
    %c0_26 = arith.constant 0 : index
    %c0_27 = arith.constant 0 : index
    %72 = vector.load %arg8[%c0_26, %c0_27] : memref<1x32xf32, #tpu.memory_space<vmem>>, vector<1x32xf32>
    %cst_28 = arith.constant dense<0.000000e+00> : vector<4xf32>
    %73 = vector.multi_reduction <add>, %70, %cst_28 [1] : vector<4x32xf32> to vector<4xf32>
    %74 = vector.shape_cast %73 : vector<4xf32> to vector<4x1xf32>
    %cst_29 = arith.constant 3.200000e+01 : f32
    %75 = vector.broadcast %cst_29 : f32 to vector<4x1xf32>
    %76 = arith.divf %74, %75 : vector<4x1xf32>
    %77 = vector.broadcast %76 : vector<4x1xf32> to vector<4x32xf32>
    %78 = arith.subf %70, %77 : vector<4x32xf32>
    %79 = arith.mulf %78, %78 : vector<4x32xf32>
    %cst_30 = arith.constant dense<0.000000e+00> : vector<4xf32>
    %80 = vector.multi_reduction <add>, %79, %cst_30 [1] : vector<4x32xf32> to vector<4xf32>
    %81 = vector.shape_cast %80 : vector<4xf32> to vector<4x1xf32>
    %cst_31 = arith.constant 3.200000e+01 : f32
    %82 = vector.broadcast %cst_31 : f32 to vector<4x1xf32>
    %83 = arith.divf %81, %82 : vector<4x1xf32>
    %cst_32 = arith.constant 9.99999996E-13 : f32
    %84 = vector.broadcast %cst_32 : f32 to vector<4x1xf32>
    %85 = arith.addf %83, %84 : vector<4x1xf32>
    %86 = math.rsqrt %85 : vector<4x1xf32>
    %87 = vector.broadcast %86 : vector<4x1xf32> to vector<4x32xf32>
    %88 = arith.mulf %78, %87 : vector<4x32xf32>
    %89 = vector.broadcast %71 : vector<1x32xf32> to vector<4x32xf32>
    %90 = arith.mulf %88, %89 : vector<4x32xf32>
    %91 = vector.broadcast %72 : vector<1x32xf32> to vector<4x32xf32>
    %92 = arith.addf %90, %91 : vector<4x32xf32>
    %93 = arith.truncf %92 : vector<4x32xf32> to vector<4x32xbf16>
    %c0_33 = arith.constant 0 : index
    %c0_34 = arith.constant 0 : index
    %94 = vector.load %arg9[%c0_33, %c0_34] : memref<32x64xbf16, #tpu.memory_space<vmem>>, vector<32x64xbf16>
    %cst_35 = arith.constant dense<0.000000e+00> : vector<4x64xf32>
    %95 = tpu.matmul %93, %94, %cst_35 {dimension_numbers = #tpu.dot_dimension_numbers<[1], [0], [0], [1], [0, 0, 1, 1], [], []>} : vector<4x32xbf16>, vector<32x64xbf16>, vector<4x64xf32> -> vector<4x64xf32>
    %c0_36 = arith.constant 0 : index
    %c0_37 = arith.constant 0 : index
    %96 = vector.load %arg10[%c0_36, %c0_37] : memref<1x64xf32, #tpu.memory_space<vmem>>, vector<1x64xf32>
    %97 = vector.broadcast %96 : vector<1x64xf32> to vector<4x64xf32>
    %98 = arith.addf %95, %97 : vector<4x64xf32>
    %cst_38 = arith.constant 5.000000e-01 : f32
    %99 = vector.broadcast %cst_38 : f32 to vector<4x64xf32>
    %100 = arith.mulf %99, %98 : vector<4x64xf32>
    %cst_39 = arith.constant 4.471500e-02 : f32
    %101 = vector.broadcast %cst_39 : f32 to vector<4x64xf32>
    %102 = arith.mulf %101, %98 : vector<4x64xf32>
    %103 = arith.mulf %102, %98 : vector<4x64xf32>
    %104 = arith.mulf %103, %98 : vector<4x64xf32>
    %105 = arith.addf %98, %104 : vector<4x64xf32>
    %cst_40 = arith.constant 0.797884583 : f32
    %106 = vector.broadcast %cst_40 : f32 to vector<4x64xf32>
    %107 = arith.mulf %106, %105 : vector<4x64xf32>
    %108 = math.tanh %107 : vector<4x64xf32>
    %cst_41 = arith.constant 1.000000e+00 : f32
    %109 = vector.broadcast %cst_41 : f32 to vector<4x64xf32>
    %110 = arith.addf %109, %108 : vector<4x64xf32>
    %111 = arith.mulf %100, %110 : vector<4x64xf32>
    %112 = arith.truncf %111 : vector<4x64xf32> to vector<4x64xbf16>
    %c0_42 = arith.constant 0 : index
    %c0_43 = arith.constant 0 : index
    %113 = vector.load %arg11[%c0_42, %c0_43] : memref<64x32xbf16, #tpu.memory_space<vmem>>, vector<64x32xbf16>
    %cst_44 = arith.constant dense<0.000000e+00> : vector<4x32xf32>
    %114 = tpu.matmul %112, %113, %cst_44 {dimension_numbers = #tpu.dot_dimension_numbers<[1], [0], [0], [1], [0, 0, 1, 1], [], []>} : vector<4x64xbf16>, vector<64x32xbf16>, vector<4x32xf32> -> vector<4x32xf32>
    %c0_45 = arith.constant 0 : index
    %c0_46 = arith.constant 0 : index
    %115 = vector.load %arg12[%c0_45, %c0_46] : memref<1x32xf32, #tpu.memory_space<vmem>>, vector<1x32xf32>
    %116 = vector.broadcast %115 : vector<1x32xf32> to vector<4x32xf32>
    %117 = arith.addf %114, %116 : vector<4x32xf32>
    %118 = arith.addf %117, %92 : vector<4x32xf32>
    %c0_47 = arith.constant 0 : index
    %c0_48 = arith.constant 0 : index
    %119 = vector.load %arg13[%c0_47, %c0_48] : memref<1x32xf32, #tpu.memory_space<vmem>>, vector<1x32xf32>
    %c0_49 = arith.constant 0 : index
    %c0_50 = arith.constant 0 : index
    %120 = vector.load %arg14[%c0_49, %c0_50] : memref<1x32xf32, #tpu.memory_space<vmem>>, vector<1x32xf32>
    %cst_51 = arith.constant dense<0.000000e+00> : vector<4xf32>
    %121 = vector.multi_reduction <add>, %118, %cst_51 [1] : vector<4x32xf32> to vector<4xf32>
    %122 = vector.shape_cast %121 : vector<4xf32> to vector<4x1xf32>
    %cst_52 = arith.constant 3.200000e+01 : f32
    %123 = vector.broadcast %cst_52 : f32 to vector<4x1xf32>
    %124 = arith.divf %122, %123 : vector<4x1xf32>
    %125 = vector.broadcast %124 : vector<4x1xf32> to vector<4x32xf32>
    %126 = arith.subf %118, %125 : vector<4x32xf32>
    %127 = arith.mulf %126, %126 : vector<4x32xf32>
    %cst_53 = arith.constant dense<0.000000e+00> : vector<4xf32>
    %128 = vector.multi_reduction <add>, %127, %cst_53 [1] : vector<4x32xf32> to vector<4xf32>
    %129 = vector.shape_cast %128 : vector<4xf32> to vector<4x1xf32>
    %cst_54 = arith.constant 3.200000e+01 : f32
    %130 = vector.broadcast %cst_54 : f32 to vector<4x1xf32>
    %131 = arith.divf %129, %130 : vector<4x1xf32>
    %cst_55 = arith.constant 9.99999996E-13 : f32
    %132 = vector.broadcast %cst_55 : f32 to vector<4x1xf32>
    %133 = arith.addf %131, %132 : vector<4x1xf32>
    %134 = math.rsqrt %133 : vector<4x1xf32>
    %135 = vector.broadcast %134 : vector<4x1xf32> to vector<4x32xf32>
    %136 = arith.mulf %126, %135 : vector<4x32xf32>
    %137 = vector.broadcast %119 : vector<1x32xf32> to vector<4x32xf32>
    %138 = arith.mulf %136, %137 : vector<4x32xf32>
    %139 = vector.broadcast %120 : vector<1x32xf32> to vector<4x32xf32>
    %140 = arith.addf %138, %139 : vector<4x32xf32>
    %141 = vector.shape_cast %140 : vector<4x32xf32> to vector<1x4x32xf32>
    %c0_56 = arith.constant 0 : index
    %c0_57 = arith.constant 0 : index
    %c0_58 = arith.constant 0 : index
    %142 = vector.load %arg15[%c0_56, %c0_57, %c0_58] : memref<1x4x32xf32, #tpu.memory_space<vmem>>, vector<1x4x32xf32>
    tpu.vector_store %arg15[%c0_56, %c0_57, %c0_58], %141 {strides = array<i32>} : memref<1x4x32xf32, #tpu.memory_space<vmem>>, vector<1x4x32xf32>,
    return
  }
  func.func @transform_0(%arg0: i32) -> (i32, i32, i32) {
    %c0_i32 = arith.constant 0 : i32
    %c0_i32_0 = arith.constant 0 : i32
    %c0_i32_1 = arith.constant 0 : i32
    return %arg0, %c0_i32, %c0_i32_0 : i32, i32, i32
  }
  func.func @transform_1(%arg0: i32) -> (i32, i32, i32) {
    %c0_i32 = arith.constant 0 : i32
    %c0_i32_0 = arith.constant 0 : i32
    %c0_i32_1 = arith.constant 0 : i32
    return %arg0, %c0_i32, %c0_i32_0 : i32, i32, i32
  }
  func.func @transform_2(%arg0: i32) -> (i32, i32) {
    %c0_i32 = arith.constant 0 : i32
    %c0_i32_0 = arith.constant 0 : i32
    %c0_i32_1 = arith.constant 0 : i32
    return %c0_i32, %c0_i32_0 : i32, i32
  }
  func.func @transform_3(%arg0: i32) -> (i32, i32) {
    %c0_i32 = arith.constant 0 : i32
    %c0_i32_0 = arith.constant 0 : i32
    %c0_i32_1 = arith.constant 0 : i32
    return %c0_i32, %c0_i32_0 : i32, i32
  }
  func.func @transform_4(%arg0: i32) -> (i32, i32) {
    %c0_i32 = arith.constant 0 : i32
    %c0_i32_0 = arith.constant 0 : i32
    %c0_i32_1 = arith.constant 0 : i32
    return %c0_i32, %c0_i32_0 : i32, i32
  }
  func.func @transform_5(%arg0: i32) -> (i32, i32) {
    %c0_i32 = arith.constant 0 : i32
    %c0_i32_0 = arith.constant 0 : i32
    %c0_i32_1 = arith.constant 0 : i32
    return %c0_i32, %c0_i32_0 : i32, i32
  }
  func.func @transform_6(%arg0: i32) -> (i32, i32) {
    %c0_i32 = arith.constant 0 : i32
    %c0_i32_0 = arith.constant 0 : i32
    %c0_i32_1 = arith.constant 0 : i32
    return %c0_i32, %c0_i32_0 : i32, i32
  }
  func.func @transform_7(%arg0: i32) -> (i32, i32) {
    %c0_i32 = arith.constant 0 : i32
    %c0_i32_0 = arith.constant 0 : i32
    %c0_i32_1 = arith.constant 0 : i32
    return %c0_i32, %c0_i32_0 : i32, i32
  }
  func.func @transform_8(%arg0: i32) -> (i32, i32) {
    %c0_i32 = arith.constant 0 : i32
    %c0_i32_0 = arith.constant 0 : i32
    %c0_i32_1 = arith.constant 0 : i32
    return %c0_i32, %c0_i32_0 : i32, i32
  }
  func.func @transform_9(%arg0: i32) -> (i32, i32) {
    %c0_i32 = arith.constant 0 : i32
    %c0_i32_0 = arith.constant 0 : i32
    %c0_i32_1 = arith.constant 0 : i32
    return %c0_i32, %c0_i32_0 : i32, i32
  }
  func.func @transform_10(%arg0: i32) -> (i32, i32) {
    %c0_i32 = arith.constant 0 : i32
    %c0_i32_0 = arith.constant 0 : i32
    %c0_i32_1 = arith.constant 0 : i32
    return %c0_i32, %c0_i32_0 : i32, i32
  }
  func.func @transform_11(%arg0: i32) -> (i32, i32) {
    %c0_i32 = arith.constant 0 : i32
    %c0_i32_0 = arith.constant 0 : i32
    %c0_i32_1 = arith.constant 0 : i32
    return %c0_i32, %c0_i32_0 : i32, i32
  }
  func.func @transform_12(%arg0: i32) -> (i32, i32) {
    %c0_i32 = arith.constant 0 : i32
    %c0_i32_0 = arith.constant 0 : i32
    %c0_i32_1 = arith.constant 0 : i32
    return %c0_i32, %c0_i32_0 : i32, i32
  }
  func.func @transform_13(%arg0: i32) -> (i32, i32) {
    %c0_i32 = arith.constant 0 : i32
    %c0_i32_0 = arith.constant 0 : i32
    %c0_i32_1 = arith.constant 0 : i32
    return %c0_i32, %c0_i32_0 : i32, i32
  }
  func.func @transform_14(%arg0: i32) -> (i32, i32, i32) {
    %c0_i32 = arith.constant 0 : i32
    %c0_i32_0 = arith.constant 0 : i32
    %c0_i32_1 = arith.constant 0 : i32
    return %arg0, %c0_i32, %c0_i32_0 : i32, i32, i32
  }
}

</mosaic_0001>

<bundles_post_ra>
// kernel: _lambda_.8
= control target key start
LH: loop header
LB: loop body
LE: loop exit
PB: predicated region body
PF: predicated region fallthrough
CT: control target
= control target key end

     0   :  { %v111_v0 = vmov 0.0   ;;  %vm112_vm0 = vmmov 0   ;;  %vm40_vm1 = vcmask 261120   ;;  %s148_s1 = inlined_call_operand.vmem [shape: bf16[32,32], index: 1, kind: input, shape index: {}]   ;;  %s149_s0 = inlined_call_operand.vmem [shape: f32[8,32], index: 0, kind: input, shape index: {}]   ;;  %s150_s2 = inlined_call_operand.vmem [shape: f32[1,32], index: 2, kind: input, shape index: {}]   ;;  %s151_s3 = inlined_call_operand.vmem [shape: f32[8,32], index: 3, kind: output, shape index: {}]  }
   0x1   :  { %97 = vmatprep.subr.bf16.mxu0 %v111_v0  ;;  %v107_v1 = vld [vmem:[%s148_s1 + $0x8] sm:$0xff]   ;;  %101 = vmatprep.mubr.msk.bf16.mxu0 %vm112_vm0, %v111_v0  ;;  %v108_v2 = vld [vmem:[%s148_s1] sm:$0xff]  }
   0x2   :  { %98 = vmatpush3.bf16.msra.mxu0 %v107_v1  ;;  %v15_v3 = vld [vmem:[%s149_s0] sm:$0xff] }
   0x3   :  { %99 = vmatprep.subr.bf16.mxu0 %v111_v0  ;;  %v16_v4 = vpack.c.bf16 %v15_v3, %v15_v3  ;;  %v90_v5 = vld [vmem:[%s150_s2] ss:$0 sm:$0xff] }
   0x6   :  { %100 = vmatpush3.bf16.msra.mxu0 %v108_v2 }
   0x9   :  { %102 = vmatmul.mubr.msk.bf16.vlgmr.msra.gmra.mxu0 %vm40_vm1, %v16_v4 }
  0xc9   :  { %v78_v6 = vpop.f32.mrf.mxu0 }
  0xca   :  { %v79_v7 = vadd.f32 %v90_v5, %v78_v6 }
  0xcb   :  { %v103_v8 = vpop.f32.mrf.mxu0 }
  0xcc   :  { %109 = vtanh.f32 %v79_v7 }
  0xcd   :  { %v81_v9 = vpop.f32.mrf.mxu0 }
  0xcf   :  { %v104_v10 = vpop.f32.mrf.mxu0 }
  0xd9   :  { %v110_v11 = vpop.eup %109 }
  0xda   :  { %85 = vst.msk [vmem:[%s151_s3] sm:$0xff] %vm40_vm1, %v110_v11 }

// kernel: _lambda_.9
= control target key start
LH: loop header
LB: loop body
LE: loop exit
PB: predicated region body
PF: predicated region fallthrough
CT: control target
= control target key end

     0   :  { %v108_v0 = vmov 0.0   ;;  %vm109_vm0 = vmmov 0   ;;  %vm40_vm1 = vcmask 261120   ;;  %s145_s1 = inlined_call_operand.vmem [shape: bf16[32,32], index: 1, kind: input, shape index: {}]   ;;  %s146_s0 = inlined_call_operand.vmem [shape: f32[8,32], index: 0, kind: input, shape index: {}]   ;;  %s147_s2 = inlined_call_operand.vmem [shape: f32[1,32], index: 2, kind: input, shape index: {}]   ;;  %s148_s3 = inlined_call_operand.vmem [shape: f32[8,32], index: 3, kind: output, shape index: {}]  }
   0x1   :  { %96 = vmatprep.subr.bf16.mxu0 %v108_v0  ;;  %v106_v1 = vld [vmem:[%s145_s1 + $0x8] sm:$0xff]   ;;  %100 = vmatprep.mubr.msk.bf16.mxu0 %vm109_vm0, %v108_v0  ;;  %v107_v2 = vld [vmem:[%s145_s1] sm:$0xff]  }
   0x2   :  { %97 = vmatpush3.bf16.msra.mxu0 %v106_v1  ;;  %v15_v3 = vld [vmem:[%s146_s0] sm:$0xff] }
   0x3   :  { %98 = vmatprep.subr.bf16.mxu0 %v108_v0  ;;  %v16_v4 = vpack.c.bf16 %v15_v3, %v15_v3  ;;  %v89_v5 = vld [vmem:[%s147_s2] ss:$0 sm:$0xff] }
   0x6   :  { %99 = vmatpush3.bf16.msra.mxu0 %v107_v2 }
   0x9   :  { %101 = vmatmul.mubr.msk.bf16.vlgmr.msra.gmra.mxu0 %vm40_vm1, %v16_v4 }
  0xc9   :  { %v78_v6 = vpop.f32.mrf.mxu0 }
  0xca   :  { %v79_v7 = vadd.f32 %v89_v5, %v78_v6 }
  0xcb   :  { %v102_v8 = vpop.f32.mrf.mxu0 }
  0xcc   :  { %84 = vst.msk [vmem:[%s148_s3] sm:$0xff] %vm40_vm1, %v79_v7 }
  0xcd   :  { %v81_v9 = vpop.f32.mrf.mxu0 }
  0xcf   :  { %v103_v10 = vpop.f32.mrf.mxu0 }

// kernel: _lambda_.6
= control target key start
LH: loop header
LB: loop body
LE: loop exit
PB: predicated region body
PF: predicated region fallthrough
CT: control target
= control target key end

     0   :  { %vm24_vm0 = vcmask 261120   ;;  %s326_s0 = inlined_call_operand.vmem [shape: f32[64,32], index: 0, kind: input, shape index: {}]   ;;  %s327_s1 = inlined_call_operand.vmem [shape: f32[1,32], index: 1, kind: input, shape index: {}]   ;;  %s328_s2 = inlined_call_operand.vmem [shape: f32[1,32], index: 2, kind: input, shape index: {}]   ;;  %s329_s3 = inlined_call_operand.vmem [shape: f32[64,32], index: 3, kind: output, shape index: {}]  }
   0x1   :  { %v14_v0 = vld [vmem:[%s326_s0] sm:$0xff]  ;;  %v16_v1 = vld [vmem:[%s326_s0 + $0x10] sm:$0xff]  ;;  %v15_v2 = vld [vmem:[%s326_s0 + $0x8] sm:$0xff] }
   0x2   :  { %v25_v3 = vsel %vm24_vm0, %v14_v0, 0.0  ;;  %v31_v4 = vsel %vm24_vm0, %v16_v1, 0.0  ;;  %v17_v5 = vld [vmem:[%s326_s0 + $0x18] sm:$0xff]  ;;  %v28_v6 = vsel %vm24_vm0, %v15_v2, 0.0  ;;  %v18_v8 = vld [vmem:[%s326_s0 + $0x20] sm:$0xff]  ;;  %v19_v9 = vld [vmem:[%s326_s0 + $0x28] sm:$0xff] }
   0x3   :  { %26 = vadd.xlane.f32.xlu0 %v25_v3  ;;  %32 = vadd.xlane.f32.xlu1 %v31_v4  ;;  %v34_v7 = vsel %vm24_vm0, %v17_v5, 0.0  ;;  %v37_v10 = vsel %vm24_vm0, %v18_v8, 0.0  ;;  %v40_v11 = vsel %vm24_vm0, %v19_v9, 0.0  ;;  %v20_v12 = vld [vmem:[%s326_s0 + $0x30] sm:$0xff]  ;;  %v21_v13 = vld [vmem:[%s326_s0 + $0x38] sm:$0xff] }
   0x4   :  { %v43_v14 = vsel %vm24_vm0, %v20_v12, 0.0  ;;  %v46_v15 = vsel %vm24_vm0, %v21_v13, 0.0 }
   0x7   :  { %29 = vadd.xlane.f32.xlu0 %v28_v6  ;;  %35 = vadd.xlane.f32.xlu1 %v34_v7 }
   0xb   :  { %38 = vadd.xlane.f32.xlu0 %v37_v10  ;;  %41 = vadd.xlane.f32.xlu1 %v40_v11 }
   0xf   :  { %44 = vadd.xlane.f32.xlu0 %v43_v14  ;;  %47 = vadd.xlane.f32.xlu1 %v46_v15 }
  0x8c   :  { %v27_v16 = vpop.xlane.xlu0 %26  ;;  %v33_v17 = vpop.xlane.xlu1 %32 }
  0x8d   :  { %v50_v18 = vmul.f32 0.03125, %v27_v16  ;;  %v52_v19 = vmul.f32 0.03125, %v33_v17  ;;  %v170_v16 = vld [vmem:[%s327_s1] ss:$0 sm:$0xff] }
  0x8f   :  { %v240_v20 = vsub.f32 %v14_v0, %v50_v18  ;;  %v242_v21 = vsub.f32 %v16_v1, %v52_v19  ;;  %v171_v19 = vld [vmem:[%s328_s2] ss:$0 sm:$0xff] }
  0x90   :  { %v30_v22 = vpop.xlane.xlu0 %29  ;;  %v36_v23 = vpop.xlane.xlu1 %35 }
  0x91   :  { %v51_v24 = vmul.f32 0.03125, %v30_v22  ;;  %v53_v25 = vmul.f32 0.03125, %v36_v23  ;;  %v66_v26 = vmul.f32 %v240_v20, %v240_v20  ;;  %v68_v27 = vmul.f32 %v242_v21, %v242_v21 }
  0x93   :  { %v248_v28 = vsub.f32 %v15_v2, %v51_v24  ;;  %v250_v29 = vsub.f32 %v17_v5, %v53_v25  ;;  %v74_v30 = vsel %vm24_vm0, %v66_v26, 0.0  ;;  %v80_v33 = vsel %vm24_vm0, %v68_v27, 0.0 }
  0x94   :  { %75 = vadd.xlane.f32.xlu0 %v74_v30  ;;  %v39_v31 = vpop.xlane.xlu0 %38  ;;  %v42_v32 = vpop.xlane.xlu1 %41 }
  0x95   :  { %v54_v34 = vmul.f32 0.03125, %v39_v31  ;;  %v55_v35 = vmul.f32 0.03125, %v42_v32  ;;  %v67_v36 = vmul.f32 %v248_v28, %v248_v28  ;;  %v69_v37 = vmul.f32 %v250_v29, %v250_v29 }
  0x97   :  { %v258_v38 = vsub.f32 %v18_v8, %v54_v34  ;;  %v260_v39 = vsub.f32 %v19_v9, %v55_v35  ;;  %v77_v40 = vsel %vm24_vm0, %v67_v36, 0.0  ;;  %v83_v43 = vsel %vm24_vm0, %v69_v37, 0.0 }
  0x98   :  { %81 = vadd.xlane.f32.xlu0 %v80_v33  ;;  %78 = vadd.xlane.f32.xlu1 %v77_v40  ;;  %v45_v41 = vpop.xlane.xlu0 %44  ;;  %v48_v42 = vpop.xlane.xlu1 %47 }
  0x99   :  { %v56_v44 = vmul.f32 0.03125, %v45_v41  ;;  %v57_v45 = vmul.f32 0.03125, %v48_v42  ;;  %v70_v46 = vmul.f32 %v258_v38, %v258_v38  ;;  %v71_v47 = vmul.f32 %v260_v39, %v260_v39 }
  0x9b   :  { %v268_v48 = vsub.f32 %v20_v12, %v56_v44  ;;  %v270_v49 = vsub.f32 %v21_v13, %v57_v45  ;;  %v86_v50 = vsel %vm24_vm0, %v70_v46, 0.0  ;;  %v89_v51 = vsel %vm24_vm0, %v71_v47, 0.0 }
  0x9c   :  { %84 = vadd.xlane.f32.xlu1 %v83_v43  ;;  %87 = vadd.xlane.f32.xlu0 %v86_v50 }
  0x9d   :  { %v72_v52 = vmul.f32 %v268_v48, %v268_v48  ;;  %v73_v53 = vmul.f32 %v270_v49, %v270_v49 }
  0x9f   :  { %v92_v54 = vsel %vm24_vm0, %v72_v52, 0.0  ;;  %v95_v55 = vsel %vm24_vm0, %v73_v53, 0.0 }
  0xa0   :  { %90 = vadd.xlane.f32.xlu1 %v89_v51  ;;  %93 = vadd.xlane.f32.xlu0 %v92_v54 }
  0xa4   :  { %96 = vadd.xlane.f32.xlu1 %v95_v55 }
 0x11d   :  { %v76_v56 = vpop.xlane.xlu0 %75 }
 0x11e   :  { %v98_v57 = vmul.f32 0.03125, %v76_v56 }
 0x120   :  { %v106_v58 = vadd.f32 1e-12, %v98_v57 }
 0x121   :  { %v79_v59 = vpop.xlane.xlu1 %78  ;;  %v82_v60 = vpop.xlane.xlu0 %81 }
 0x122   :  { %172 = vrsqrt.f32 %v106_v58  ;;  %v99_v61 = vmul.f32 0.03125, %v79_v59  ;;  %v100_v62 = vmul.f32 0.03125, %v82_v60 }
 0x124   :  { %v107_v63 = vadd.f32 1e-12, %v99_v61  ;;  %v108_v0 = vadd.f32 1e-12, %v100_v62 }
 0x125   :  { %v85_v1 = vpop.xlane.xlu1 %84  ;;  %v88_v2 = vpop.xlane.xlu0 %87 }
 0x126   :  { %174 = vrsqrt.f32 %v107_v63  ;;  %v101_v3 = vmul.f32 0.03125, %v85_v1  ;;  %v102_v4 = vmul.f32 0.03125, %v88_v2 }
 0x127   :  { %176 = vrsqrt.f32 %v108_v0 }
 0x128   :  { %v109_v5 = vadd.f32 1e-12, %v101_v3  ;;  %v110_v6 = vadd.f32 1e-12, %v102_v4 }
 0x129   :  { %v91_v7 = vpop.xlane.xlu1 %90  ;;  %v94_v8 = vpop.xlane.xlu0 %93 }
 0x12a   :  { %178 = vrsqrt.f32 %v109_v5  ;;  %v103_v9 = vmul.f32 0.03125, %v91_v7  ;;  %v104_v10 = vmul.f32 0.03125, %v94_v8 }
 0x12b   :  { %180 = vrsqrt.f32 %v110_v6 }
 0x12c   :  { %v111_v11 = vadd.f32 1e-12, %v103_v9  ;;  %v112_v12 = vadd.f32 1e-12, %v104_v10 }
 0x12d   :  { %v97_v13 = vpop.xlane.xlu1 %96 }
 0x12e   :  { %182 = vrsqrt.f32 %v111_v11  ;;  %v105_v14 = vmul.f32 0.03125, %v97_v13 }
 0x12f   :  { %v173_v15 = vpop.eup %172  ;;  %184 = vrsqrt.f32 %v112_v12 }
 0x130   :  { %v122_v17 = vmul.f32 %v173_v15, %v240_v20  ;;  %v113_v18 = vadd.f32 1e-12, %v105_v14 }
 0x132   :  { %v136_v22 = vmul.f32 %v170_v16, %v122_v17  ;;  %186 = vrsqrt.f32 %v113_v18 }
 0x133   :  { %v175_v23 = vpop.eup %174 }
 0x134   :  { %v177_v24 = vpop.eup %176  ;;  %v150_v25 = vadd.f32 %v171_v19, %v136_v22  ;;  %v123_v26 = vmul.f32 %v175_v23, %v248_v28 }
 0x135   :  { %v124_v27 = vmul.f32 %v177_v24, %v242_v21 }
 0x136   :  { %158 = vst.msk [vmem:[%s329_s3] sm:$0xff] %vm24_vm0, %v150_v25  ;;  %v137_v20 = vmul.f32 %v170_v16, %v123_v26 }
 0x137   :  { %v179_v30 = vpop.eup %178  ;;  %v138_v31 = vmul.f32 %v170_v16, %v124_v27 }
 0x138   :  { %v181_v32 = vpop.eup %180  ;;  %v151_v33 = vadd.f32 %v171_v19, %v137_v20  ;;  %v125_v34 = vmul.f32 %v179_v30, %v250_v29 }
 0x139   :  { %v152_v35 = vadd.f32 %v171_v19, %v138_v31  ;;  %v126_v36 = vmul.f32 %v181_v32, %v258_v38 }
 0x13a   :  { %159 = vst.msk [vmem:[%s329_s3 + $0x8] sm:$0xff] %vm24_vm0, %v151_v33  ;;  %v139_v21 = vmul.f32 %v170_v16, %v125_v34 }
 0x13b   :  { %v183_v28 = vpop.eup %182  ;;  %160 = vst.msk [vmem:[%s329_s3 + $0x10] sm:$0xff] %vm24_vm0, %v152_v35  ;;  %v140_v37 = vmul.f32 %v170_v16, %v126_v36 }
 0x13c   :  { %v185_v40 = vpop.eup %184  ;;  %v153_v41 = vadd.f32 %v171_v19, %v139_v21  ;;  %v127_v29 = vmul.f32 %v183_v28, %v260_v39 }
 0x13d   :  { %v154_v42 = vadd.f32 %v171_v19, %v140_v37  ;;  %v128_v38 = vmul.f32 %v185_v40, %v268_v48 }
 0x13e   :  { %161 = vst.msk [vmem:[%s329_s3 + $0x18] sm:$0xff] %vm24_vm0, %v153_v41  ;;  %v141_v43 = vmul.f32 %v170_v16, %v127_v29 }
 0x13f   :  { %v187_v44 = vpop.eup %186  ;;  %162 = vst.msk [vmem:[%s329_s3 + $0x20] sm:$0xff] %vm24_vm0, %v154_v42  ;;  %v142_v45 = vmul.f32 %v170_v16, %v128_v38 }
 0x140   :  { %v155_v46 = vadd.f32 %v171_v19, %v141_v43  ;;  %v129_v47 = vmul.f32 %v187_v44, %v270_v49 }
 0x141   :  { %v156_v39 = vadd.f32 %v171_v19, %v142_v45 }
 0x142   :  { %163 = vst.msk [vmem:[%s329_s3 + $0x28] sm:$0xff] %vm24_vm0, %v155_v46  ;;  %v143_v48 = vmul.f32 %v170_v16, %v129_v47 }
 0x143   :  { %164 = vst.msk [vmem:[%s329_s3 + $0x30] sm:$0xff] %vm24_vm0, %v156_v39 }
 0x144   :  { %v157_v50 = vadd.f32 %v171_v19, %v143_v48 }
 0x146   :  { %165 = vst.msk [vmem:[%s329_s3 + $0x38] sm:$0xff] %vm24_vm0, %v157_v50 }

// kernel: squeeze.3
= control target key start
LH: loop header
LB: loop body
LE: loop exit
PB: predicated region body
PF: predicated region fallthrough
CT: control target
= control target key end

     0   :  { %s103_s0 = inlined_call_operand.vmem [shape: f32[8], index: 0, kind: input, shape index: {}]   ;;  %s104_s1 = inlined_call_operand.hbm [shape: f32[2,2,2], index: 1, kind: output, shape index: {}]  }
   0x1   :  { %v6_v0 = vld [vmem:[%s103_s0] sm:$0x1] }
   0x2   :  { %7 = vst [vmem:[#allocation3] sm:$0x1] %v6_v0 }
   0x3   :  { %2 = vsyncpa [#allocation1], 0  ;;  %vm9_vm0 = vcmask 15360   ;;  %s79_s0 = smov 126   ;;  %s80_s8 = smov 122  }
   0x4   :  { %s81_s9 = smov 124   ;;  %s82_s10 = smov [#allocation0]  }
   0x5   :  { %s47_s11 = sshll.u32 %s82_s10, 4  ;;  %s48_s11 = int_to_ptr.vmem [resolvable:$true] %s47_s11 }
   0x6   :  { %s57_s12 = scalar_lea.vmem %s48_s11, 64  ;;  %p62_p1 = scmp.lt.s32.totalorder %s48_s11, %s48_s11 }
   0x7   :  { %p58_p0 = scmp.ne.s32.totalorder %s48_s11, %s57_s12  ;;  %p63_p2 = scmp.lt.s32.totalorder %s57_s12, %s57_s12 }
   0x9   :  { %v11_v1 = vld [vmem:[#allocation3] sm:$0x1]   ;;  %p64_p3 = por %p63_p2, %p62_p1 }
   0xa   :  { %v23_v2 = vld [vmem:[#allocation3] sm:$0x1]   ;;  %12 = vrot.lane.b32.xlu0 %v11_v1, %s79_s0 }
   0xb   :  { %24 = vrot.lane.b32.xlu1 %v23_v2, %s80_s8  ;;  %v8_v3 = vld [vmem:[#allocation3] sm:$0x1]   ;;  %p65_p4 = pnand %p64_p3, %p58_p0 }
   0xc   :  { %v17_v4 = vld [vmem:[#allocation3] sm:$0x1]   ;;  %10 = vst.msk [vmem:[#allocation2] sm:$0x1] %vm9_vm0, %v8_v3  }
   0xe   :  { %18 = vrot.lane.b32.xlu0 %v17_v4, %s81_s9 }
  0x7c   :  { %v13_v5 = vpop.permute.xlu0 %12  }
  0x7d   :  { %v25_v6 = vpop.permute.xlu1 %24   ;;  %16 = vst.msk [vmem:[#allocation2 + $0x1] sm:$0x1] %vm9_vm0, %v13_v5  }
  0x7e   :  { %28 = vst.msk [vmem:[#allocation2 + $0x9] sm:$0x1] %vm9_vm0, %v25_v6  }
  0x80   :  { %v19_v7 = vpop.permute.xlu0 %18  }
  0x81   :  { %22 = vst.msk [vmem:[#allocation2 + $0x8] sm:$0x1] %vm9_vm0, %v19_v7  }
  0x84   :  { %v33_v8 = vld [vmem:[#allocation2] sm:$0x3] }
  0x85   :  { %36 = vst [vmem:[#allocation0] sm:$0x3] %v33_v8 }
  0x88   :  { %v38_v9 = vld [vmem:[#allocation2 + $0x8] sm:$0x3] }
  0x89   :  { %42 = vst [vmem:[#allocation0 + $0x2] sm:$0x3] %v38_v9 }
  0x8a   :  { %68 = shalt.err (!%p65_p4)
}
  0x8b   :  { %50 = dma.vmem_to_hbm [thread:$0]  %s48_s11, 64, %s104_s1, [#allocation1]  }
  0x8c   :  { %77 = dma.done.wait [#allocation1], 64  }
  0x8d   :  { %78 = vsyncadd [#allocation1], 4294967232 }
  0x8e   :  { %52 = vsyncpa [#allocation1], 1 }

// kernel: _lambda_.7
= control target key start
LH: loop header
LB: loop body
LE: loop exit
PB: predicated region body
PF: predicated region fallthrough
CT: control target
= control target key end

     0   :  { %s2465_s29 = smov 0   ;;  %s2769_s0 = inlined_call_operand.vmem [shape: f32[8,8,32], index: 0, kind: input, shape index: {}]   ;;  %s2770_s1 = inlined_call_operand.vmem [shape: f32[8,1,8], index: 1, kind: input, shape index: {}]   ;;  %s2771_s2 = inlined_call_operand.vmem [shape: bf16[32,96], index: 2, kind: input, shape index: {}]   ;;  %s2772_s3 = inlined_call_operand.vmem [shape: f32[1,96], index: 3, kind: input, shape index: {}]   ;;  %s2773_s4 = inlined_call_operand.vmem [shape: bf16[32,32], index: 4, kind: input, shape index: {}]   ;;  %s2774_s5 = inlined_call_operand.vmem [shape: f32[1,32], index: 5, kind: input, shape index: {}, may-alias: {5,7,11,13}]   ;;  %s2775_s6 = inlined_call_operand.vmem [shape: f32[1,32], index: 6, kind: input, shape index: {}, may-alias: {6,12}]   ;;  %s2776_s7 = inlined_call_operand.vmem [shape: f32[1,32], index: 7, kind: input, shape index: {}, may-alias: {5,7,11,13}]   ;;  %s2777_s8 = inlined_call_operand.vmem [shape: bf16[32,64], index: 8, kind: input, shape index: {}]   ;;  %s2778_s9 = inlined_call_operand.vmem [shape: f32[1,64], index: 9, kind: input, shape index: {}]   ;;  %s2779_s10 = inlined_call_operand.vmem [shape: bf16[64,32], index: 10, kind: input, shape index: {}]   ;;  %s2780_s11 = inlined_call_operand.vmem [shape: f32[1,32], index: 11, kind: input, shape index: {}, may-alias: {5,7,11,13}]   ;;  %s2781_s12 = inlined_call_operand.vmem [shape: f32[1,32], index: 12, kind: input, shape index: {}, may-alias: {6,12}]   ;;  %s2782_s13 = inlined_call_operand.vmem [shape: f32[1,32], index: 13, kind: input, shape index: {}, may-alias: {5,7,11,13}]   ;;  %s2783_s14 = inlined_call_operand.vmem [shape: f32[8,8,32], index: 14, kind: output, shape index: {}]  }
   0x1 LB: > { %s2042_s30 = sadd.s32 4294967295, %s2380_s29   ;;  %p2046_p0 = scmp.ge.s32.totalorder %s2380_s29, 1  ;;  %s2380_s29 = sphi %s2465_s29, %s24_s29  }
   0x2   : > { %p423_p1 = scmp.lt.s32.totalorder %s2380_s29, 3 }
   0x4   : > { %p424_p2 = pnand %p2046_p0, %p423_p1 }
   0x5   : > { %s2047_s17 = sshll.u32 (!%p424_p2), %s2042_s30, 2  ;;  %s2384_s26 = smov (!%p424_p2), 96  }
   0x6   : > { %427 = sbr.rel (%p424_p2) target bundleno = 3021 (0xbcd), region = 76  ;;  %p474_p3 = scmp.lt.s32.totalorder (!%p424_p2), %s2047_s17, 7 }
   0x7   : > { %s2385_s15 = smov (!%p424_p2), 64   ;;  %s2386_s16 = smov (!%p424_p2), 80  }
   0x8   : > { %s2387_s18 = smov (!%p424_p2), 112   ;;  %s2388_s19 = smov (!%p424_p2), 48  }
   0x9   : > { %s2389_s25 = smov (!%p424_p2), 16  }
   0xb   : > { %v2308_v0 = vld [vmem:[%s2771_s2 + $0x8] sm:$0xff]   ;;  %v2309_v1 = vld [vmem:[%s2771_s2] sm:$0xff]   ;;  %s2785_s17 = smov (!%p474_p3, %s2047_s17), 7  ;;  %vm520_vm0 = vcmask 261120   ;;  %v2382_v8 = vmov 0.0   ;;  %vm2383_vm1 = vmmov 0  }
   0xc   : > { %2150 = vmatprep.subr.bf16.mxu0 %v2308_v0  ;;  %s2048_s20 = sshll.u32 %s2785_s17, 3  ;;  %2158 = vmatprep.subr.bf16.mxu1 %v2382_v8  ;;  %v2052_v9 = vld [vmem:[%s2772_s3] ss:$0 sm:$0xff]  ;;  %vm587_vm2 = vcmask 130048   ;;  %s482_s30 = scalar_lea.vmem %s2770_s1, %s2785_s17  ;;  %vm813_vm3 = vcmask 64512   ;;  %vm867_vm4 = vcmask 1043456  }
   0xd   : > { %2151 = vmatpush3.bf16.msra.mxu0 %v2308_v0  ;;  %s477_s23 = scalar_lea.vmem %s2769_s0, %s2048_s20  ;;  %2160 = vmatprep.mubr.msk.bf16.mxu1 %vm2383_vm1, %v2382_v8  ;;  %v2550_v31 = vld [vmem:[%s482_s30] ss:$0 sm:$0xff]  ;;  %v2553_v37 = vld [vmem:[%s482_s30 + $0x1] ss:$0 sm:$0xff]  ;;  %v2557_v45 = vld [vmem:[%s482_s30 + $0x2] ss:$0 sm:$0xff]  ;;  %s488_s28 = scalar_lea.vmem %s2783_s14, %s2048_s20 }
   0xe   : > { %2152 = vmatprep.subr.bf16.mxu0 %v2309_v1  ;;  %v2487_v2 = vld [vmem:[%s477_s23] sm:$0xff]  ;;  %v2489_v3 = vld [vmem:[%s477_s23 + $0x8] sm:$0xff]  ;;  %v2491_v4 = vld [vmem:[%s477_s23 + $0x10] sm:$0xff]  ;;  %vm1839_vm5 = vcmask 523264  }
   0xf   : > { %v495_v5 = vpack.c.bf16 %v2489_v3, %v2487_v2  ;;  %v2495_v6 = vld [vmem:[%s477_s23 + $0x18] sm:$0xff]  ;;  %v2561_v53 = vld [vmem:[%s482_s30 + $0x3] ss:$0 sm:$0xff] }
  0x10   : > { %v496_v7 = vpack.c.bf16 %v2495_v6, %v2491_v4 }
  0x11   : > { %2153 = vmatpush3.bf16.msra.mxu0 %v2309_v1  ;;  %2154 = vmatprep.mubr.msk.bf16.mxu0 %vm520_vm0, %v495_v5 }
  0x12   : > { %2164 = vmatprep.subr.bf16.mxu0 %v2382_v8 }
  0x14   : > { %2155 = vmatmul.mubr.msk.bf16.vlgmr.msra.gmra.mxu0 %vm520_vm0, %v496_v7 }
  0x15   : > { %2166 = vmatprep.mubr.msk.bf16.mxu0 %vm2383_vm1, %v2382_v8 }
  0xd4   : > { %v2156_v10 = vpop.f32.mrf.mxu0 }
  0xd5   : > { %v570_v11 = vadd.f32 %v2156_v10, %v2052_v9 }
  0xd6   : > { %v561_v12 = vpop.f32.mrf.mxu0 }
  0xd7   : > { %v2510_v13 = vpack.c.bf16 %v570_v11, %v570_v11  ;;  %v562_v14 = vadd.f32 %v2052_v9, %v561_v12 }
  0xd8   : > { %v2157_v15 = vpop.f32.mrf.mxu0 }
  0xd9   : > { %v2512_v16 = vpack.c.bf16 %v562_v14, %v562_v14  ;;  %v573_v17 = vadd.f32 %v2157_v15, %v2052_v9  ;;  %684 = vrot.lane.b32.xlu1 %v2510_v13, %s2384_s26 }
  0xda   : > { %v564_v18 = vpop.f32.mrf.mxu0 }
  0xdb   : > { %v2515_v19 = vpack.c.bf16 %v573_v17, %v573_v17  ;;  %v565_v20 = vadd.f32 %v2052_v9, %v564_v18  ;;  %585 = vrot.lane.b32.xlu0 %v2512_v16, %s2384_s26 }
  0xdd   : > { %v2518_v21 = vpack.c.bf16 %v565_v20, %v565_v20  ;;  %733 = vrot.lane.b32.xlu1 %v2515_v19, %s2384_s26 }
  0xdf   : > { %635 = vrot.lane.b32.xlu0 %v2518_v21, %s2384_s26 }
 0x14b   : > { %v685_v24 = vpop.permute.xlu1 %684 }
 0x14c   : > { %v690_v27 = vsel %vm587_vm2, %v685_v24, 0 }
 0x14d   : > { %v586_v22 = vpop.permute.xlu0 %585 }
 0x14e   : > { %v592_v23 = vsel %vm587_vm2, %v586_v22, 0 }
 0x14f   : > { %2159 = vmatpush3.bf16.xpose.msra.mxu1 %v592_v23  ;;  %v734_v28 = vpop.permute.xlu1 %733 }
 0x150   : > { %2170 = vmatprep.subr.bf16.mxu1 %v2382_v8  ;;  %v739_v29 = vsel %vm587_vm2, %v734_v28, 0 }
 0x151   : > { %v636_v25 = vpop.permute.xlu0 %635 }
 0x152   : > { %v641_v26 = vsel %vm587_vm2, %v636_v25, 0 }
 0x153   : > { %2165 = vmatpush3.bf16.xpose.msra.mxu0 %v641_v26 }
 0x154   : > { %2176 = vmatprep.subr.bf16.mxu0 %v2382_v8 }
 0x156   : > { %2161 = vmatmul.mubr.msk.bf16.vlgmr.msra.gmra.mxu1 %vm587_vm2, %v2512_v16 }
 0x157   : > { %2171 = vmatpush3.bf16.xpose.msra.mxu1 %v690_v27  ;;  %2172 = vmatprep.mubr.msk.bf16.mxu1 %vm2383_vm1, %v2382_v8 }
 0x158   : > { %2182 = vmatprep.subr.bf16.mxu1 %v2382_v8 }
 0x15a   : > { %2167 = vmatmul.mubr.msk.bf16.vlgmr.msra.gmra.mxu0 %vm587_vm2, %v2518_v21 }
 0x15b   : > { %2177 = vmatpush3.bf16.xpose.msra.mxu0 %v739_v29  ;;  %2178 = vmatprep.mubr.msk.bf16.mxu0 %vm2383_vm1, %v2382_v8 }
 0x15c   : > { %2188 = vmatprep.subr.bf16.mxu0 %v2382_v8 }
 0x15e   : > { %2173 = vmatmul.mubr.msk.bf16.vlgmr.msra.gmra.mxu1 %vm587_vm2, %v2510_v13 }
 0x15f   : > { %2184 = vmatprep.mubr.msk.bf16.mxu1 %vm2383_vm1, %v2382_v8 }
 0x162   : > { %2179 = vmatmul.mubr.msk.bf16.vlgmr.msra.gmra.mxu0 %vm587_vm2, %v2515_v19 }
 0x163   : > { %2190 = vmatprep.mubr.msk.bf16.mxu0 %vm2383_vm1, %v2382_v8 }
 0x216   : > { %v628_v30 = vpop.f32.mrf.mxu1 }
 0x217   : > { %v781_v32 = vmul.f32 0.25, %v628_v30 }
 0x218   : > { %v2162_v33 = vpop.f32.mrf.mxu1 }
 0x219   : > { %v809_v34 = vadd.f32 %v2550_v31, %v781_v32 }
 0x21a   : > { %v631_v35 = vpop.f32.mrf.mxu1  ;;  %v677_v36 = vpop.f32.mrf.mxu0 }
 0x21b   : > { %v782_v38 = vmul.f32 0.25, %v677_v36  ;;  %v814_v39 = vsel %vm813_vm3, %v809_v34, -inf }
 0x21c   : > { %815 = vmax.xlane.f32.xlu0 %v814_v39  ;;  %v2163_v40 = vpop.f32.mrf.mxu1  ;;  %v2168_v41 = vpop.f32.mrf.mxu0 }
 0x21d   : > { %v810_v42 = vadd.f32 %v2553_v37, %v782_v38 }
 0x21e   : > { %v680_v43 = vpop.f32.mrf.mxu0  ;;  %v726_v44 = vpop.f32.mrf.mxu1 }
 0x21f   : > { %v783_v46 = vmul.f32 0.25, %v726_v44  ;;  %v817_v47 = vsel %vm813_vm3, %v810_v42, -inf }
 0x220   : > { %v2174_v48 = vpop.f32.mrf.mxu1  ;;  %818 = vmax.xlane.f32.xlu1 %v817_v47  ;;  %v2169_v49 = vpop.f32.mrf.mxu0 }
 0x221   : > { %v811_v50 = vadd.f32 %v2557_v45, %v783_v46 }
 0x222   : > { %v729_v51 = vpop.f32.mrf.mxu1  ;;  %v775_v52 = vpop.f32.mrf.mxu0 }
 0x223   : > { %v784_v54 = vmul.f32 0.25, %v775_v52  ;;  %v820_v55 = vsel %vm813_vm3, %v811_v50, -inf }
 0x224   : > { %821 = vmax.xlane.f32.xlu0 %v820_v55  ;;  %v2175_v56 = vpop.f32.mrf.mxu1  ;;  %v2180_v57 = vpop.f32.mrf.mxu0 }
 0x225   : > { %v812_v58 = vadd.f32 %v2561_v53, %v784_v54 }
 0x226   : > { %v778_v59 = vpop.f32.mrf.mxu0 }
 0x227   : > { %v823_v60 = vsel %vm813_vm3, %v812_v58, -inf }
 0x228   : > { %824 = vmax.xlane.f32.xlu0 %v823_v60  ;;  %v2181_v61 = vpop.f32.mrf.mxu0 }
 0x231   : > { %862 = vrot.lane.b32.xlu1 %v2512_v16, %s2385_s15 }
 0x2a5   : > { %v816_v62 = vpop.xlane.xlu0 %815 }
 0x2a6   : > { %v826_v63 = vsub.f32 %v809_v34, %v816_v62 }
 0x2a8   : > { %v830_v0 = vmul.f32 1.442695, %v826_v63 }
 0x2a9   : > { %v819_v1 = vpop.xlane.xlu1 %818 }
 0x2aa   : > { %2318 = vpow2.f32 %v830_v0  ;;  %v827_v5 = vsub.f32 %v810_v42, %v819_v1 }
 0x2ac   : > { %v832_v7 = vmul.f32 1.442695, %v827_v5 }
 0x2ad   : > { %v863_v9 = vpop.permute.xlu1 %862  ;;  %v822_v17 = vpop.xlane.xlu0 %821 }
 0x2ae   : > { %2320 = vpow2.f32 %v832_v7  ;;  %v869_v10 = vsel %vm867_vm4, %v863_v9, 0  ;;  %v828_v20 = vsub.f32 %v811_v50, %v822_v17 }
 0x2af   : > { %2183 = vmatpush3.bf16.msra.mxu1 %v869_v10 }
 0x2b0   : > { %2194 = vmatprep.subr.bf16.mxu1 %v2382_v8  ;;  %v834_v23 = vmul.f32 1.442695, %v828_v20 }
 0x2b1   : > { %v825_v18 = vpop.xlane.xlu0 %824 }
 0x2b2   : > { %v829_v22 = vsub.f32 %v812_v58, %v825_v18  ;;  %2322 = vpow2.f32 %v834_v23 }
 0x2b4   : > { %v836_v24 = vmul.f32 1.442695, %v829_v22 }
 0x2b6   : > { %2324 = vpow2.f32 %v836_v24 }
 0x2b7   : > { %v2319_v11 = vpop.eup %2318 }
 0x2b8   : > { %v838_v12 = vsel %vm813_vm3, %v2319_v11, 0.0 }
 0x2b9   : > { %839 = vadd.xlane.f32.xlu1 %v838_v12 }
 0x2bb   : > { %v2321_v14 = vpop.eup %2320 }
 0x2bc   : > { %v841_v15 = vsel %vm813_vm3, %v2321_v14, 0.0 }
 0x2bd   : > { %842 = vadd.xlane.f32.xlu0 %v841_v15 }
 0x2bf   : > { %v2323_v25 = vpop.eup %2322 }
 0x2c0   : > { %v844_v27 = vsel %vm813_vm3, %v2323_v25, 0.0 }
 0x2c3   : > { %v2325_v26 = vpop.eup %2324 }
 0x2c4   : > { %v847_v28 = vsel %vm813_vm3, %v2325_v26, 0.0 }
 0x2ca   : > { %959 = vrot.lane.b32.xlu1 %v2510_v13, %s2385_s15 }
 0x2ce   : > { %1007 = vrot.lane.b32.xlu1 %v2515_v19, %s2385_s15 }
 0x2d3   : > { %911 = vrot.lane.b32.xlu0 %v2518_v21, %s2385_s15 }
 0x2f2   : > { %845 = vadd.xlane.f32.xlu1 %v844_v27  ;;  %848 = vadd.xlane.f32.xlu0 %v847_v28 }
 0x303   : > { %1107 = vrot.lane.b32.xlu1 %v2518_v21, %s2386_s16 }
 0x307   : > { %1105 = vrot.lane.b32.xlu1 %v2518_v21, %s2387_s18 }
 0x308   : > { %1057 = vrot.lane.b32.xlu0 %v2512_v16, %s2386_s16 }
 0x30b   : > { %1207 = vrot.lane.b32.xlu1 %v2515_v19, %s2386_s16 }
 0x30c   : > { %1055 = vrot.lane.b32.xlu0 %v2512_v16, %s2387_s18 }
 0x30f   : > { %1205 = vrot.lane.b32.xlu1 %v2515_v19, %s2387_s18 }
 0x310   : > { %1157 = vrot.lane.b32.xlu0 %v2510_v13, %s2386_s16 }
 0x314   : > { %1155 = vrot.lane.b32.xlu0 %v2510_v13, %s2387_s18 }
 0x342   : > { %v840_v29 = vpop.xlane.xlu1 %839 }
 0x343   : > { %2326 = vrcp.f32 %v840_v29 }
 0x346   : > { %v843_v30 = vpop.xlane.xlu0 %842  ;;  %v960_v35 = vpop.permute.xlu1 %959 }
 0x347   : > { %2328 = vrcp.f32 %v843_v30  ;;  %v965_v40 = vsel %vm867_vm4, %v960_v35, 0 }
 0x34a   : > { %v912_v32 = vpop.permute.xlu0 %911  ;;  %v1008_v42 = vpop.permute.xlu1 %1007 }
 0x34b   : > { %v917_v33 = vsel %vm867_vm4, %v912_v32, 0  ;;  %v1013_v44 = vsel %vm867_vm4, %v1008_v42, 0 }
 0x34c   : > { %2189 = vmatpush3.bf16.msra.mxu0 %v917_v33 }
 0x34d   : > { %2200 = vmatprep.subr.bf16.mxu0 %v2382_v8 }
 0x350   : > { %v2327_v34 = vpop.eup %2326 }
 0x351   : > { %v854_v36 = vmul.f32 %v2327_v34, %v2319_v11 }
 0x353   : > { %v858_v38 = vpack.c.bf16 %v854_v36, %v854_v36 }
 0x354   : > { %v2329_v39 = vpop.eup %2328 }
 0x355   : > { %2185 = vmatmul.mubr.msk.bf16.vlgmr.msra.gmra.mxu1 %vm813_vm3, %v858_v38  ;;  %v855_v41 = vmul.f32 %v2329_v39, %v2321_v14 }
 0x356   : > { %2195 = vmatpush3.bf16.msra.mxu1 %v965_v40  ;;  %2196 = vmatprep.mubr.msk.bf16.mxu1 %vm2383_vm1, %v2382_v8 }
 0x357   : > { %v859_v43 = vpack.c.bf16 %v855_v41, %v855_v41  ;;  %2206 = vmatprep.subr.bf16.mxu1 %v2382_v8 }
 0x359   : > { %2191 = vmatmul.mubr.msk.bf16.vlgmr.msra.gmra.mxu0 %vm813_vm3, %v859_v43 }
 0x35a   : > { %2201 = vmatpush3.bf16.msra.mxu0 %v1013_v44  ;;  %2202 = vmatprep.mubr.msk.bf16.mxu0 %vm2383_vm1, %v2382_v8 }
 0x35b   : > { %2212 = vmatprep.subr.bf16.mxu0 %v2382_v8 }
 0x37b   : > { %v846_v46 = vpop.xlane.xlu1 %845  ;;  %v849_v47 = vpop.xlane.xlu0 %848 }
 0x37c   : > { %2330 = vrcp.f32 %v846_v46 }
 0x37d   : > { %2332 = vrcp.f32 %v849_v47 }
 0x37f   : > { %v1058_v48 = vpop.permute.xlu0 %1057  ;;  %v1108_v49 = vpop.permute.xlu1 %1107 }
 0x380   : > { %v1063_v58 = vsel %vm587_vm2, %v1058_v48, 0  ;;  %v1113_v60 = vsel %vm587_vm2, %v1108_v49, 0 }
 0x383   : > { %v1056_v56 = vpop.permute.xlu0 %1055  ;;  %v1106_v59 = vpop.permute.xlu1 %1105 }
 0x387   : > { %v1158_v61 = vpop.permute.xlu0 %1157  ;;  %v1208_v62 = vpop.permute.xlu1 %1207 }
 0x388   : > { %v1163_v63 = vsel %vm587_vm2, %v1158_v61, 0  ;;  %v1213_v0 = vsel %vm587_vm2, %v1208_v62, 0 }
 0x389   : > { %v2331_v50 = vpop.eup %2330 }
 0x38a   : > { %v2333_v51 = vpop.eup %2332  ;;  %v856_v52 = vmul.f32 %v2331_v50, %v2323_v25 }
 0x38b   : > { %v857_v54 = vmul.f32 %v2333_v51, %v2325_v26  ;;  %v1156_v1 = vpop.permute.xlu0 %1155  ;;  %v1206_v5 = vpop.permute.xlu1 %1205 }
 0x38c   : > { %v860_v55 = vpack.c.bf16 %v856_v52, %v856_v52 }
 0x38d   : > { %v861_v57 = vpack.c.bf16 %v857_v54, %v857_v54 }
 0x38e   : > { %2197 = vmatmul.mubr.msk.bf16.vlgmr.msra.gmra.mxu1 %vm813_vm3, %v860_v55 }
 0x38f   : > { %2203 = vmatmul.mubr.msk.bf16.vlgmr.msra.gmra.mxu0 %vm813_vm3, %v861_v57  ;;  %2207 = vmatpush3.bf16.xpose.msra.mxu1 %v1063_v58 }
 0x390   : > { %2213 = vmatpush3.bf16.xpose.msra.mxu0 %v1113_v60  ;;  %2208 = vmatprep.mubr.msk.bf16.mxu1 %vm2383_vm1, %v2382_v8 }
 0x391   : > { %2214 = vmatprep.mubr.msk.bf16.mxu0 %vm2383_vm1, %v2382_v8  ;;  %2218 = vmatprep.subr.bf16.mxu1 %v2382_v8 }
 0x392   : > { %2224 = vmatprep.subr.bf16.mxu0 %v2382_v8 }
 0x396   : > { %2209 = vmatmul.mubr.msk.bf16.vlgmr.msra.gmra.mxu1 %vm587_vm2, %v1056_v56 }
 0x397   : > { %2215 = vmatmul.mubr.msk.bf16.vlgmr.msra.gmra.mxu0 %vm587_vm2, %v1106_v59  ;;  %2219 = vmatpush3.bf16.xpose.msra.mxu1 %v1163_v63 }
 0x398   : > { %2225 = vmatpush3.bf16.xpose.msra.mxu0 %v1213_v0  ;;  %2220 = vmatprep.mubr.msk.bf16.mxu1 %vm2383_vm1, %v2382_v8 }
 0x399   : > { %2226 = vmatprep.mubr.msk.bf16.mxu0 %vm2383_vm1, %v2382_v8  ;;  %2230 = vmatprep.subr.bf16.mxu1 %v2382_v8 }
 0x39a   : > { %2236 = vmatprep.subr.bf16.mxu0 %v2382_v8 }
 0x39e   : > { %2221 = vmatmul.mubr.msk.bf16.vlgmr.msra.gmra.mxu1 %vm587_vm2, %v1156_v1 }
 0x39f   : > { %2227 = vmatmul.mubr.msk.bf16.vlgmr.msra.gmra.mxu0 %vm587_vm2, %v1206_v5  ;;  %2232 = vmatprep.mubr.msk.bf16.mxu1 %vm2383_vm1, %v2382_v8 }
 0x3a0   : > { %2238 = vmatprep.mubr.msk.bf16.mxu0 %vm2383_vm1, %v2382_v8 }
 0x415   : > { %v2622_v7 = vpop.f32.mrf.mxu1 }
 0x417   : > { %v2186_v9 = vpop.f32.mrf.mxu1 }
 0x419   : > { %v908_v10 = vpop.f32.mrf.mxu1  ;;  %v2624_v11 = vpop.f32.mrf.mxu0 }
 0x41b   : > { %v2187_v12 = vpop.f32.mrf.mxu1  ;;  %v2192_v14 = vpop.f32.mrf.mxu0 }
 0x41d   : > { %v956_v15 = vpop.f32.mrf.mxu0 }
 0x41f   : > { %v2193_v17 = vpop.f32.mrf.mxu0 }
 0x44e   : > { %v2626_v18 = vpop.f32.mrf.mxu1 }
 0x44f   : > { %v2628_v20 = vpop.f32.mrf.mxu0 }
 0x450   : > { %v2198_v22 = vpop.f32.mrf.mxu1 }
 0x451   : > { %v2204_v23 = vpop.f32.mrf.mxu0 }
 0x452   : > { %v1004_v24 = vpop.f32.mrf.mxu1 }
 0x453   : > { %v1052_v25 = vpop.f32.mrf.mxu0 }
 0x454   : > { %v2199_v26 = vpop.f32.mrf.mxu1 }
 0x455   : > { %v2205_v27 = vpop.f32.mrf.mxu0 }
 0x456   : > { %v1099_v28 = vpop.f32.mrf.mxu1 }
 0x457   : > { %v1255_v29 = vmul.f32 0.25, %v1099_v28  ;;  %v1149_v30 = vpop.f32.mrf.mxu0 }
 0x458   : > { %v1256_v32 = vmul.f32 0.25, %v1149_v30  ;;  %v2210_v33 = vpop.f32.mrf.mxu1 }
 0x459   : > { %v2216_v34 = vpop.f32.mrf.mxu0  ;;  %v1259_v35 = vadd.f32 %v2550_v31, %v1255_v29 }
 0x45a   : > { %v1102_v36 = vpop.f32.mrf.mxu1  ;;  %v1260_v38 = vadd.f32 %v2553_v37, %v1256_v32 }
 0x45b   : > { %v1152_v39 = vpop.f32.mrf.mxu0  ;;  %v1263_v40 = vsel %vm813_vm3, %v1259_v35, -inf }
 0x45c   : > { %v1266_v41 = vsel %vm813_vm3, %v1260_v38, -inf  ;;  %1264 = vmax.xlane.f32.xlu0 %v1263_v40  ;;  %v2211_v42 = vpop.f32.mrf.mxu1 }
 0x45d   : > { %1267 = vmax.xlane.f32.xlu1 %v1266_v41  ;;  %v2217_v43 = vpop.f32.mrf.mxu0 }
 0x45e   : > { %v1199_v44 = vpop.f32.mrf.mxu1 }
 0x45f   : > { %v1257_v46 = vmul.f32 0.25, %v1199_v44  ;;  %v1249_v47 = vpop.f32.mrf.mxu0 }
 0x460   : > { %v1258_v48 = vmul.f32 0.25, %v1249_v47  ;;  %v2222_v49 = vpop.f32.mrf.mxu1 }
 0x461   : > { %v2228_v50 = vpop.f32.mrf.mxu0  ;;  %v1261_v31 = vadd.f32 %v2557_v45, %v1257_v46 }
 0x462   : > { %v1202_v51 = vpop.f32.mrf.mxu1  ;;  %v1262_v54 = vadd.f32 %v2561_v53, %v1258_v48  ;;  %v2310_v48 = vld [vmem:[%s2773_s4 + $0x8] sm:$0xff]  }
 0x463   : > { %v1252_v52 = vpop.f32.mrf.mxu0  ;;  %v1269_v37 = vsel %vm813_vm3, %v1261_v31, -inf }
 0x464   : > { %1270 = vmax.xlane.f32.xlu0 %v1269_v37  ;;  %v2223_v55 = vpop.f32.mrf.mxu1  ;;  %v1272_v57 = vsel %vm813_vm3, %v1262_v54, -inf }
 0x465   : > { %v2229_v56 = vpop.f32.mrf.mxu0 }
 0x468   : > { %1273 = vmax.xlane.f32.xlu0 %v1272_v57 }
 0x46e   : > { %1311 = vrot.lane.b32.xlu1 %v2512_v16, %s2388_s19 }
 0x4e5   : > { %v1265_v58 = vpop.xlane.xlu0 %1264 }
 0x4e6   : > { %v1268_v59 = vpop.xlane.xlu1 %1267  ;;  %v1275_v60 = vsub.f32 %v1259_v35, %v1265_v58 }
 0x4e7   : > { %v1276_v45 = vsub.f32 %v1260_v38, %v1268_v59 }
 0x4e8   : > { %v1279_v61 = vmul.f32 1.442695, %v1275_v60 }
 0x4e9   : > { %v1281_v62 = vmul.f32 1.442695, %v1276_v45 }
 0x4ea   : > { %2334 = vpow2.f32 %v1279_v61  ;;  %v1312_v63 = vpop.permute.xlu1 %1311 }
 0x4eb   : > { %2336 = vpow2.f32 %v1281_v62  ;;  %v1317_v53 = vsel %vm867_vm4, %v1312_v63, 0 }
 0x4ec   : > { %2231 = vmatpush3.bf16.msra.mxu1 %v1317_v53 }
 0x4ed   : > { %v1271_v0 = vpop.xlane.xlu0 %1270  ;;  %2242 = vmatprep.subr.bf16.mxu1 %v2382_v8 }
 0x4ee   : > { %v1277_v1 = vsub.f32 %v1261_v31, %v1271_v0 }
 0x4f0   : > { %v1283_v5 = vmul.f32 1.442695, %v1277_v1 }
 0x4f1   : > { %v1274_v9 = vpop.xlane.xlu0 %1273 }
 0x4f2   : > { %2338 = vpow2.f32 %v1283_v5  ;;  %v1278_v16 = vsub.f32 %v1262_v54, %v1274_v9 }
 0x4f4   : > { %v1285_v10 = vmul.f32 1.442695, %v1278_v16 }
 0x4f6   : > { %2340 = vpow2.f32 %v1285_v10 }
 0x4f7   : > { %v2335_v12 = vpop.eup %2334 }
 0x4f8   : > { %v2337_v14 = vpop.eup %2336  ;;  %v1287_v15 = vsel %vm813_vm3, %v2335_v12, 0.0 }
 0x4f9   : > { %v1290_v17 = vsel %vm813_vm3, %v2337_v14, 0.0  ;;  %1288 = vadd.xlane.f32.xlu1 %v1287_v15 }
 0x4fa   : > { %1291 = vadd.xlane.f32.xlu0 %v1290_v17 }
 0x4ff   : > { %v2339_v22 = vpop.eup %2338 }
 0x500   : > { %v1293_v23 = vsel %vm813_vm3, %v2339_v22, 0.0 }
 0x501   : > { %1294 = vadd.xlane.f32.xlu1 %v1293_v23 }
 0x503   : > { %v2341_v24 = vpop.eup %2340 }
 0x504   : > { %v1296_v25 = vsel %vm813_vm3, %v2341_v24, 0.0 }
 0x505   : > { %1297 = vadd.xlane.f32.xlu0 %v1296_v25 }
 0x512   : > { %1407 = vrot.lane.b32.xlu1 %v2510_v13, %s2388_s19 }
 0x516   : > { %1455 = vrot.lane.b32.xlu1 %v2515_v19, %s2388_s19 }
 0x51b   : > { %1359 = vrot.lane.b32.xlu0 %v2518_v21, %s2388_s19 }
 0x582   : > { %v1289_v26 = vpop.xlane.xlu1 %1288 }
 0x583   : > { %2342 = vrcp.f32 %v1289_v26  ;;  %v1292_v27 = vpop.xlane.xlu0 %1291 }
 0x584   : > { %2344 = vrcp.f32 %v1292_v27 }
 0x58a   : > { %v1295_v28 = vpop.xlane.xlu1 %1294 }
 0x58b   : > { %2346 = vrcp.f32 %v1295_v28 }
 0x58e   : > { %v1408_v29 = vpop.permute.xlu1 %1407  ;;  %v1298_v30 = vpop.xlane.xlu0 %1297 }
 0x58f   : > { %2348 = vrcp.f32 %v1298_v30  ;;  %v1413_v21 = vsel %vm867_vm4, %v1408_v29, 0 }
 0x590   : > { %v2343_v32 = vpop.eup %2342 }
 0x591   : > { %v2345_v33 = vpop.eup %2344  ;;  %v1303_v34 = vmul.f32 %v2343_v32, %v2335_v12 }
 0x592   : > { %v1360_v35 = vpop.permute.xlu0 %1359  ;;  %v1304_v13 = vmul.f32 %v2345_v33, %v2337_v14  ;;  %v1456_v38 = vpop.permute.xlu1 %1455 }
 0x593   : > { %v1365_v36 = vsel %vm867_vm4, %v1360_v35, 0  ;;  %v1307_v19 = vpack.c.bf16 %v1303_v34, %v1303_v34  ;;  %v1461_v40 = vsel %vm867_vm4, %v1456_v38, 0 }
 0x594   : > { %2237 = vmatpush3.bf16.msra.mxu0 %v1365_v36  ;;  %v1308_v39 = vpack.c.bf16 %v1304_v13, %v1304_v13 }
 0x595   : > { %2233 = vmatmul.mubr.msk.bf16.vlgmr.msra.gmra.mxu1 %vm813_vm3, %v1307_v19  ;;  %2248 = vmatprep.subr.bf16.mxu0 %v2382_v8 }
 0x596   : > { %2243 = vmatpush3.bf16.msra.mxu1 %v1413_v21  ;;  %2244 = vmatprep.mubr.msk.bf16.mxu1 %vm2383_vm1, %v2382_v8 }
 0x597   : > { %2239 = vmatmul.mubr.msk.bf16.vlgmr.msra.gmra.mxu0 %vm813_vm3, %v1308_v39  ;;  %2254 = vmatprep.subr.bf16.mxu1 %v2310_v48 }
 0x598   : > { %v2347_v41 = vpop.eup %2346  ;;  %2249 = vmatpush3.bf16.msra.mxu0 %v1461_v40  ;;  %2250 = vmatprep.mubr.msk.bf16.mxu0 %vm2383_vm1, %v2382_v8  ;;  %v2311_v8 = vld [vmem:[%s2773_s4] sm:$0xff]  }
 0x599   : > { %v1305_v42 = vmul.f32 %v2347_v41, %v2339_v22 }
 0x59b   : > { %v1309_v43 = vpack.c.bf16 %v1305_v42, %v1305_v42 }
 0x59c   : > { %v2349_v44 = vpop.eup %2348 }
 0x59d   : > { %2245 = vmatmul.mubr.msk.bf16.vlgmr.msra.gmra.mxu1 %vm813_vm3, %v1309_v43  ;;  %v1306_v46 = vmul.f32 %v2349_v44, %v2341_v24 }
 0x59e   : > { %2255 = vmatpush3.bf16.msra.mxu1 %v2310_v48 }
 0x59f   : > { %v1310_v47 = vpack.c.bf16 %v1306_v46, %v1306_v46  ;;  %2256 = vmatprep.subr.bf16.mxu1 %v2311_v8 }
 0x5a1   : > { %2251 = vmatmul.mubr.msk.bf16.vlgmr.msra.gmra.mxu0 %vm813_vm3, %v1310_v47 }
 0x5a2   : > { %2257 = vmatpush3.bf16.msra.mxu1 %v2311_v8  ;;  %v2312_v8 = vld [vmem:[%s2777_s8 + $0x8] sm:$0xff]  }
 0x5a3   : > { %2262 = vmatprep.subr.bf16.mxu0 %v2312_v8 }
 0x5a4   : > { %2263 = vmatpush3.bf16.msra.mxu0 %v2312_v8 }
 0x655   : > { %v1353_v49 = vpop.f32.mrf.mxu1 }
 0x657   : > { %v2234_v50 = vpop.f32.mrf.mxu1  ;;  %v1401_v31 = vpop.f32.mrf.mxu0 }
 0x658   : > { %v2298_v51 = vpack.i.bf16 %v1401_v31, %v1353_v49 }
 0x659   : > { %v1356_v52 = vpop.f32.mrf.mxu1  ;;  %v2240_v37 = vpop.f32.mrf.mxu0 }
 0x65a   : > { %2299 = vrot.lane.b32.xlu0 %v2298_v51, %s2389_s25  ;;  %v2313_v52 = vld [vmem:[%s2777_s8] sm:$0xff]  }
 0x65b   : > { %v2235_v54 = vpop.f32.mrf.mxu1  ;;  %v1404_v55 = vpop.f32.mrf.mxu0  ;;  %2264 = vmatprep.subr.bf16.mxu0 %v2313_v52 }
 0x65c   : > { %2265 = vmatpush3.bf16.msra.mxu0 %v2313_v52 }
 0x65d   : > { %v2241_v56 = vpop.f32.mrf.mxu0  ;;  %v1449_v57 = vpop.f32.mrf.mxu1 }
 0x65f   : > { %v2246_v58 = vpop.f32.mrf.mxu1 }
 0x661   : > { %v1452_v59 = vpop.f32.mrf.mxu1  ;;  %v1497_v60 = vpop.f32.mrf.mxu0 }
 0x662   : > { %v2303_v45 = vpack.i.bf16 %v1497_v60, %v1449_v57 }
 0x663   : > { %v2247_v61 = vpop.f32.mrf.mxu1  ;;  %v2252_v62 = vpop.f32.mrf.mxu0 }
 0x664   : > { %2304 = vrot.lane.b32.xlu1 %v2303_v45, %s2389_s25 }
 0x665   : > { %v1500_v63 = vpop.f32.mrf.mxu0 }
 0x667   : > { %v2253_v53 = vpop.f32.mrf.mxu0 }
 0x6cc   : > { %v2300_v0 = vpop.permute.xlu0 %2299 }
 0x6cd   : > { %v2302_v1 = vunpack.i.h.bf16 %v2300_v0  ;;  %v2301_v5 = vunpack.i.l.bf16 %v2300_v0 }
 0x6cf   : > { %v1520_v9 = vsel %vm587_vm2, %v2624_v11, %v2302_v1  ;;  %v1519_v16 = vsel %vm587_vm2, %v2622_v7, %v2301_v5  ;;  %v2077_v7 = vld [vmem:[%s2774_s5] ss:$0 sm:$0xff] }
 0x6d0   : > { %v1523_v10 = vpack.c.bf16 %v1520_v9, %v1519_v16  ;;  %v2082_v1 = vld [vmem:[%s2775_s6] ss:$0 sm:$0xff] }
 0x6d2   : > { %2258 = vmatprep.mubr.msk.bf16.mxu1 %vm520_vm0, %v1523_v10 }
 0x6d6   : > { %v2305_v12 = vpop.permute.xlu1 %2304 }
 0x6d7   : > { %v2307_v14 = vunpack.i.h.bf16 %v2305_v12  ;;  %v2306_v15 = vunpack.i.l.bf16 %v2305_v12 }
 0x6d9   : > { %v1522_v17 = vsel %vm587_vm2, %v2628_v20, %v2307_v14  ;;  %v1521_v22 = vsel %vm587_vm2, %v2626_v18, %v2306_v15  ;;  %v2083_v14 = vld [vmem:[%s2776_s7] ss:$0 sm:$0xff] }
 0x6da   : > { %v1524_v23 = vpack.c.bf16 %v1522_v17, %v1521_v22 }
 0x6dc   : > { %2259 = vmatmul.mubr.msk.bf16.vlgmr.msra.gmra.mxu1 %vm520_vm0, %v1524_v23 }
 0x79c   : > { %v2260_v24 = vpop.f32.mrf.mxu1 }
 0x79d   : > { %v1597_v25 = vadd.f32 %v2260_v24, %v2077_v7 }
 0x79e   : > { %v1588_v11 = vpop.f32.mrf.mxu1 }
 0x79f   : > { %v1589_v26 = vadd.f32 %v2077_v7, %v1588_v11  ;;  %v1605_v18 = vadd.f32 %v1597_v25, %v2491_v4 }
 0x7a0   : > { %v2261_v27 = vpop.f32.mrf.mxu1 }
 0x7a1   : > { %v1603_v28 = vadd.f32 %v1589_v26, %v2487_v2  ;;  %v1600_v30 = vadd.f32 %v2261_v27, %v2077_v7  ;;  %v1615_v35 = vsel %vm520_vm0, %v1605_v18, 0.0 }
 0x7a2   : > { %v1591_v29 = vpop.f32.mrf.mxu1 }
 0x7a3   : > { %v1592_v20 = vadd.f32 %v2077_v7, %v1591_v29  ;;  %v1609_v32 = vsel %vm520_vm0, %v1603_v28, 0.0  ;;  %v1606_v13 = vadd.f32 %v1600_v30, %v2495_v6  ;;  %v2314_v29 = vld [vmem:[%s2779_s10 + $0x18] sm:$0xff]   ;;  %v2315_v30 = vld [vmem:[%s2779_s10 + $0x10] sm:$0xff]  }
 0x7a4   : > { %1610 = vadd.xlane.f32.xlu0 %v1609_v32  ;;  %2270 = vmatprep.subr.bf16.mxu1 %v2314_v29  ;;  %v2317_v32 = vld [vmem:[%s2779_s10] sm:$0xff]  }
 0x7a5   : > { %v1604_v33 = vadd.f32 %v1592_v20, %v2489_v3  ;;  %v1618_v2 = vsel %vm520_vm0, %v1606_v13, 0.0  ;;  %2271 = vmatpush3.bf16.msra.mxu1 %v2314_v29  ;;  %v2316_v20 = vld [vmem:[%s2779_s10 + $0x8] sm:$0xff]  }
 0x7a6   : > { %2272 = vmatprep.subr.bf16.mxu1 %v2315_v30 }
 0x7a7   : > { %v1612_v34 = vsel %vm520_vm0, %v1604_v33, 0.0 }
 0x7a8   : > { %1613 = vadd.xlane.f32.xlu1 %v1612_v34  ;;  %1616 = vadd.xlane.f32.xlu0 %v1615_v35 }
 0x7a9   : > { %2273 = vmatpush3.bf16.msra.mxu1 %v2315_v30 }
 0x7aa   : > { %2274 = vmatprep.subr.bf16.mxu1 %v2316_v20 }
 0x7ac   : > { %1619 = vadd.xlane.f32.xlu0 %v1618_v2 }
 0x7ad   : > { %2275 = vmatpush3.bf16.msra.mxu1 %v2316_v20 }
 0x7ae   : > { %2276 = vmatprep.subr.bf16.mxu1 %v2317_v32 }
 0x7b1   : > { %2277 = vmatpush3.bf16.msra.mxu1 %v2317_v32 }
 0x82d   : > { %v1611_v36 = vpop.xlane.xlu0 %1610 }
 0x82e   : > { %v1622_v19 = vmul.f32 0.03125, %v1611_v36 }
 0x830   : > { %v1626_v38 = vsub.f32 %v1603_v28, %v1622_v19 }
 0x831   : > { %v1614_v21 = vpop.xlane.xlu1 %1613  ;;  %v1617_v39 = vpop.xlane.xlu0 %1616 }
 0x832   : > { %v1623_v4 = vmul.f32 0.03125, %v1614_v21  ;;  %v1624_v40 = vmul.f32 0.03125, %v1617_v39  ;;  %v1630_v41 = vmul.f32 %v1626_v38, %v1626_v38 }
 0x834   : > { %v1627_v3 = vsub.f32 %v1604_v33, %v1623_v4  ;;  %v1628_v42 = vsub.f32 %v1605_v18, %v1624_v40  ;;  %v1634_v43 = vsel %vm520_vm0, %v1630_v41, 0.0  ;;  %v2084_v18 = vld [vmem:[%s2778_s9] ss:$0 sm:$0xff] }
 0x835   : > { %1635 = vadd.xlane.f32.xlu1 %v1634_v43  ;;  %v1620_v44 = vpop.xlane.xlu0 %1619 }
 0x836   : > { %v1625_v6 = vmul.f32 0.03125, %v1620_v44  ;;  %v1631_v46 = vmul.f32 %v1627_v3, %v1627_v3  ;;  %v1632_v47 = vmul.f32 %v1628_v42, %v1628_v42 }
 0x838   : > { %v1629_v48 = vsub.f32 %v1606_v13, %v1625_v6  ;;  %v1637_v49 = vsel %vm520_vm0, %v1631_v46, 0.0  ;;  %v1640_v50 = vsel %vm520_vm0, %v1632_v47, 0.0 }
 0x839   : > { %1638 = vadd.xlane.f32.xlu0 %v1637_v49  ;;  %1641 = vadd.xlane.f32.xlu1 %v1640_v50 }
 0x83a   : > { %v1633_v31 = vmul.f32 %v1629_v48, %v1629_v48 }
 0x83c   : > { %v1643_v51 = vsel %vm520_vm0, %v1633_v31, 0.0 }
 0x83d   : > { %1644 = vadd.xlane.f32.xlu0 %v1643_v51 }
 0x8be   : > { %v1636_v37 = vpop.xlane.xlu1 %1635 }
 0x8bf   : > { %v1646_v54 = vmul.f32 0.03125, %v1636_v37 }
 0x8c1   : > { %v1650_v55 = vadd.f32 1e-12, %v1646_v54 }
 0x8c2   : > { %v1642_v56 = vpop.xlane.xlu1 %1641  ;;  %v1639_v57 = vpop.xlane.xlu0 %1638 }
 0x8c3   : > { %2350 = vrsqrt.f32 %v1650_v55  ;;  %v1648_v58 = vmul.f32 0.03125, %v1642_v56  ;;  %v1647_v59 = vmul.f32 0.03125, %v1639_v57 }
 0x8c5   : > { %v1652_v60 = vadd.f32 1e-12, %v1648_v58  ;;  %v1651_v45 = vadd.f32 1e-12, %v1647_v59 }
 0x8c6   : > { %v1645_v61 = vpop.xlane.xlu0 %1644 }
 0x8c7   : > { %2352 = vrsqrt.f32 %v1652_v60  ;;  %v1649_v62 = vmul.f32 0.03125, %v1645_v61 }
 0x8c8   : > { %2354 = vrsqrt.f32 %v1651_v45 }
 0x8c9   : > { %v1653_v63 = vadd.f32 1e-12, %v1649_v62 }
 0x8cb   : > { %2356 = vrsqrt.f32 %v1653_v63 }
 0x8d0   : > { %v2351_v53 = vpop.eup %2350 }
 0x8d1   : > { %v1658_v0 = vmul.f32 %v2351_v53, %v1626_v38 }
 0x8d3   : > { %v1668_v12 = vmul.f32 %v2082_v1, %v1658_v0 }
 0x8d4   : > { %v2353_v5 = vpop.eup %2352 }
 0x8d5   : > { %v2355_v9 = vpop.eup %2354  ;;  %v1660_v16 = vmul.f32 %v2353_v5, %v1628_v42  ;;  %v2707_v24 = vadd.f32 %v2083_v14, %v1668_v12 }
 0x8d6   : > { %v1659_v10 = vmul.f32 %v2355_v9, %v1627_v3 }
 0x8d7   : > { %v1670_v23 = vmul.f32 %v2082_v1, %v1660_v16 }
 0x8d8   : > { %v2357_v15 = vpop.eup %2356  ;;  %v1669_v17 = vmul.f32 %v2082_v1, %v1659_v10 }
 0x8d9   : > { %v1661_v22 = vmul.f32 %v2357_v15, %v1629_v48  ;;  %v2713_v26 = vadd.f32 %v2083_v14, %v1670_v23 }
 0x8da   : > { %v2709_v7 = vadd.f32 %v2083_v14, %v1669_v17 }
 0x8db   : > { %v1671_v11 = vmul.f32 %v2082_v1, %v1661_v22 }
 0x8dc   : > { %v1682_v25 = vpack.c.bf16 %v2709_v7, %v2707_v24 }
 0x8dd   : > { %v2715_v27 = vadd.f32 %v2083_v14, %v1671_v11  ;;  %v2089_v14 = vld [vmem:[%s2780_s11] ss:$0 sm:$0xff] }
 0x8de   : > { %2266 = vmatprep.mubr.msk.bf16.mxu0 %vm520_vm0, %v1682_v25 }
 0x8df   : > { %v1683_v28 = vpack.c.bf16 %v2715_v27, %v2713_v26 }
 0x8e1   : > { %2267 = vmatmul.mubr.msk.bf16.vlgmr.msra.gmra.mxu0 %vm520_vm0, %v1683_v28 }
 0x9a1   : > { %v2268_v33 = vpop.f32.mrf.mxu0 }
 0x9a2   : > { %v1756_v34 = vadd.f32 %v2268_v33, %v2084_v18 }
 0x9a3   : > { %v1747_v35 = vpop.f32.mrf.mxu0 }
 0x9a4   : > { %v1768_v13 = vmul.f32 0.044715, %v1756_v34  ;;  %v1748_v2 = vadd.f32 %v2084_v18, %v1747_v35  ;;  %v1764_v53 = vmul.f32 0.5, %v1756_v34 }
 0x9a5   : > { %v2269_v36 = vpop.f32.mrf.mxu0 }
 0x9a6   : > { %v1772_v19 = vmul.f32 %v1768_v13, %v1756_v34  ;;  %v1766_v38 = vmul.f32 0.044715, %v1748_v2  ;;  %v1759_v21 = vadd.f32 %v2269_v36, %v2084_v18  ;;  %v1762_v61 = vmul.f32 0.5, %v1748_v2 }
 0x9a7   : > { %v1750_v39 = vpop.f32.mrf.mxu0 }
 0x9a8   : > { %v1776_v4 = vmul.f32 %v1772_v19, %v1756_v34  ;;  %v1770_v40 = vmul.f32 %v1766_v38, %v1748_v2  ;;  %v1769_v41 = vmul.f32 0.044715, %v1759_v21  ;;  %v1751_v3 = vadd.f32 %v2084_v18, %v1750_v39 }
 0x9a9   : > { %v1765_v60 = vmul.f32 0.5, %v1759_v21 }
 0x9aa   : > { %v1780_v42 = vadd.f32 %v1776_v4, %v1756_v34  ;;  %v1774_v43 = vmul.f32 %v1770_v40, %v1748_v2  ;;  %v1773_v44 = vmul.f32 %v1769_v41, %v1759_v21  ;;  %v1767_v6 = vmul.f32 0.044715, %v1751_v3 }
 0x9ab   : > { %v1763_v62 = vmul.f32 0.5, %v1751_v3 }
 0x9ac   : > { %v1784_v46 = vmul.f32 0.7978846, %v1780_v42  ;;  %v1778_v47 = vadd.f32 %v1774_v43, %v1748_v2  ;;  %v1777_v48 = vmul.f32 %v1773_v44, %v1759_v21  ;;  %v1771_v49 = vmul.f32 %v1767_v6, %v1751_v3 }
 0x9ae   : > { %v1782_v50 = vmul.f32 0.7978846, %v1778_v47  ;;  %v1781_v31 = vadd.f32 %v1777_v48, %v1759_v21  ;;  %v1775_v51 = vmul.f32 %v1771_v49, %v1751_v3  ;;  %2358 = vtanh.f32 %v1784_v46 }
 0x9b0   : > { %v1785_v8 = vmul.f32 0.7978846, %v1781_v31  ;;  %2360 = vtanh.f32 %v1782_v50  ;;  %v1779_v52 = vadd.f32 %v1775_v51, %v1751_v3 }
 0x9b2   : > { %2362 = vtanh.f32 %v1785_v8  ;;  %v1783_v37 = vmul.f32 0.7978846, %v1779_v52 }
 0x9b4   : > { %2364 = vtanh.f32 %v1783_v37 }
 0x9bb   : > { %v2359_v54 = vpop.eup %2358 }
 0x9bc   : > { %v1792_v45 = vadd.f32 1.0, %v2359_v54 }
 0x9bd   : > { %v2361_v55 = vpop.eup %2360 }
 0x9be   : > { %v1790_v58 = vadd.f32 1.0, %v2361_v55  ;;  %v1796_v9 = vmul.f32 %v1792_v45, %v1764_v53 }
 0x9bf   : > { %v2363_v56 = vpop.eup %2362 }
 0x9c0   : > { %v1793_v57 = vadd.f32 1.0, %v2363_v56  ;;  %v1794_v1 = vmul.f32 %v1790_v58, %v1762_v61  ;;  %v2096_v58 = vld [vmem:[%s2781_s12] ss:$0 sm:$0xff] }
 0x9c1   : > { %v2365_v59 = vpop.eup %2364 }
 0x9c2   : > { %v1791_v63 = vadd.f32 1.0, %v2365_v59  ;;  %v1797_v0 = vmul.f32 %v1793_v57, %v1765_v60  ;;  %v2097_v60 = vld [vmem:[%s2782_s13] ss:$0 sm:$0xff] }
 0x9c4   : > { %v1795_v5 = vmul.f32 %v1791_v63, %v1763_v62  ;;  %v1799_v10 = vpack.c.bf16 %v1797_v0, %v1796_v9 }
 0x9c6   : > { %v1798_v16 = vpack.c.bf16 %v1795_v5, %v1794_v1 }
 0x9c8   : > { %2278 = vmatprep.mubr.msk.bf16.mxu1 %vm1839_vm5, %v1798_v16 }
 0x9c9   : > { %2279 = vmatmul.mubr.msk.bf16.vlgmr.msra.gmra.mxu1 %vm1839_vm5, %v1799_v10 }
 0xa89   : > { %v2280_v12 = vpop.f32.mrf.mxu1 }
 0xa8a   : > { %v1889_v17 = vadd.f32 %v2280_v12, %v2089_v14 }
 0xa8b   : > { %v1880_v15 = vpop.f32.mrf.mxu1 }
 0xa8c   : > { %v1881_v22 = vadd.f32 %v2089_v14, %v1880_v15  ;;  %v1897_v20 = vadd.f32 %v1889_v17, %v2713_v26 }
 0xa8d   : > { %v2281_v23 = vpop.f32.mrf.mxu1 }
 0xa8e   : > { %v1895_v11 = vadd.f32 %v1881_v22, %v2707_v24  ;;  %v1892_v28 = vadd.f32 %v2281_v23, %v2089_v14  ;;  %v1907_v33 = vsel %vm520_vm0, %v1897_v20, 0.0 }
 0xa8f   : > { %v1883_v25 = vpop.f32.mrf.mxu1 }
 0xa90   : > { %v1884_v29 = vadd.f32 %v2089_v14, %v1883_v25  ;;  %v1901_v30 = vsel %vm520_vm0, %v1895_v11, 0.0  ;;  %v1898_v34 = vadd.f32 %v1892_v28, %v2715_v27 }
 0xa91   : > { %1902 = vadd.xlane.f32.xlu1 %v1901_v30 }
 0xa92   : > { %v1896_v32 = vadd.f32 %v1884_v29, %v2709_v7  ;;  %v1910_v24 = vsel %vm520_vm0, %v1898_v34, 0.0 }
 0xa94   : > { %v1904_v18 = vsel %vm520_vm0, %v1896_v32, 0.0 }
 0xa95   : > { %1905 = vadd.xlane.f32.xlu0 %v1904_v18  ;;  %1908 = vadd.xlane.f32.xlu1 %v1907_v33 }
 0xa99   : > { %1911 = vadd.xlane.f32.xlu0 %v1910_v24 }
 0xb1a   : > { %v1903_v35 = vpop.xlane.xlu1 %1902 }
 0xb1b   : > { %v1913_v13 = vmul.f32 0.03125, %v1903_v35 }
 0xb1d   : > { %v1917_v2 = vsub.f32 %v1895_v11, %v1913_v13 }
 0xb1e   : > { %v1906_v36 = vpop.xlane.xlu0 %1905  ;;  %v1909_v19 = vpop.xlane.xlu1 %1908 }
 0xb1f   : > { %v1914_v26 = vmul.f32 0.03125, %v1906_v36  ;;  %v1915_v38 = vmul.f32 0.03125, %v1909_v19  ;;  %v1921_v21 = vmul.f32 %v1917_v2, %v1917_v2 }
 0xb21   : > { %v1918_v7 = vsub.f32 %v1896_v32, %v1914_v26  ;;  %v1919_v39 = vsub.f32 %v1897_v20, %v1915_v38  ;;  %v1925_v4 = vsel %vm520_vm0, %v1921_v21, 0.0 }
 0xb22   : > { %v1912_v40 = vpop.xlane.xlu0 %1911  ;;  %1926 = vadd.xlane.f32.xlu1 %v1925_v4 }
 0xb23   : > { %v1916_v27 = vmul.f32 0.03125, %v1912_v40  ;;  %v1922_v41 = vmul.f32 %v1918_v7, %v1918_v7  ;;  %v1923_v3 = vmul.f32 %v1919_v39, %v1919_v39 }
 0xb25   : > { %v1920_v42 = vsub.f32 %v1898_v34, %v1916_v27  ;;  %v1928_v43 = vsel %vm520_vm0, %v1922_v41, 0.0  ;;  %v1931_v44 = vsel %vm520_vm0, %v1923_v3, 0.0 }
 0xb26   : > { %1929 = vadd.xlane.f32.xlu0 %v1928_v43  ;;  %1932 = vadd.xlane.f32.xlu1 %v1931_v44 }
 0xb27   : > { %v1924_v6 = vmul.f32 %v1920_v42, %v1920_v42 }
 0xb29   : > { %v1934_v46 = vsel %vm520_vm0, %v1924_v6, 0.0 }
 0xb2a   : > { %1935 = vadd.xlane.f32.xlu0 %v1934_v46 }
 0xbab   : > { %v1927_v47 = vpop.xlane.xlu1 %1926 }
 0xbac   : > { %v1937_v48 = vmul.f32 0.03125, %v1927_v47 }
 0xbae   : > { %v1941_v49 = vadd.f32 1e-12, %v1937_v48 }
 0xbaf   : > { %v1930_v50 = vpop.xlane.xlu0 %1929  ;;  %v1933_v31 = vpop.xlane.xlu1 %1932 }
 0xbb0   : > { %2366 = vrsqrt.f32 %v1941_v49  ;;  %v1938_v51 = vmul.f32 0.03125, %v1930_v50  ;;  %v1939_v8 = vmul.f32 0.03125, %v1933_v31 }
 0xbb2   : > { %v1942_v52 = vadd.f32 1e-12, %v1938_v51  ;;  %v1943_v37 = vadd.f32 1e-12, %v1939_v8 }
 0xbb3   : > { %v1936_v54 = vpop.xlane.xlu0 %1935 }
 0xbb4   : > { %2368 = vrsqrt.f32 %v1942_v52  ;;  %v1940_v55 = vmul.f32 0.03125, %v1936_v54 }
 0xbb5   : > { %2370 = vrsqrt.f32 %v1943_v37 }
 0xbb6   : > { %v1944_v56 = vadd.f32 1e-12, %v1940_v55 }
 0xbb8   : > { %2372 = vrsqrt.f32 %v1944_v56 }
 0xbbd   : > { %v2367_v57 = vpop.eup %2366 }
 0xbbe   : > { %v1949_v59 = vmul.f32 %v2367_v57, %v1917_v2 }
 0xbc0   : > { %v1959_v45 = vmul.f32 %v2096_v58, %v1949_v59 }
 0xbc1   : > { %v2369_v61 = vpop.eup %2368 }
 0xbc2   : > { %v2371_v62 = vpop.eup %2370  ;;  %v1969_v63 = vadd.f32 %v2097_v60, %v1959_v45  ;;  %v1950_v53 = vmul.f32 %v2369_v61, %v1918_v7 }
 0xbc3   : > { %v1951_v0 = vmul.f32 %v2371_v62, %v1919_v39 }
 0xbc4   : > { %1973 = vst.msk [vmem:[%s488_s28] sm:$0xff] %vm520_vm0, %v1969_v63  ;;  %v1960_v1 = vmul.f32 %v2096_v58, %v1950_v53 }
 0xbc5   : > { %v2373_v5 = vpop.eup %2372  ;;  %v1961_v9 = vmul.f32 %v2096_v58, %v1951_v0 }
 0xbc6   : > { %v1970_v16 = vadd.f32 %v2097_v60, %v1960_v1  ;;  %v1952_v10 = vmul.f32 %v2373_v5, %v1920_v42 }
 0xbc7   : > { %v1971_v12 = vadd.f32 %v2097_v60, %v1961_v9 }
 0xbc8   : > { %1974 = vst.msk [vmem:[%s488_s28 + $0x8] sm:$0xff] %vm520_vm0, %v1970_v16  ;;  %v1962_v14 = vmul.f32 %v2096_v58, %v1952_v10 }
 0xbc9   : > { %1975 = vst.msk [vmem:[%s488_s28 + $0x10] sm:$0xff] %vm520_vm0, %v1971_v12 }
 0xbca   : > { %v1972_v15 = vadd.f32 %v2097_v60, %v1962_v14 }
 0xbcc   : > { %1976 = vst.msk [vmem:[%s488_s28 + $0x18] sm:$0xff] %vm520_vm0, %v1972_v15 }
 0xbcd PF: > { %s24_s29 = sadd.s32 1, %s2380_s29  }
 0xbce   : > { %p21_p4 = scmp.ge.s32.totalorder %s24_s29, 4  }
 0xbd0   :  { %23 = sbr.rel (!%p21_p4) target bundleno = 1 (0x1), region = 109 }

// kernel: _lambda_.11
= control target key start
LH: loop header
LB: loop body
LE: loop exit
PB: predicated region body
PF: predicated region fallthrough
CT: control target
= control target key end

     0   :  { %v119_v0 = vmov 0.0   ;;  %vm120_vm0 = vmmov 0   ;;  %vm49_vm1 = vcmask 261120   ;;  %s156_s1 = inlined_call_operand.vmem [shape: bf16[32,128], index: 1, kind: input, shape index: {}]   ;;  %s157_s0 = inlined_call_operand.vmem [shape: f32[8,32], index: 0, kind: input, shape index: {}]   ;;  %s158_s2 = inlined_call_operand.vmem [shape: f32[1,128], index: 2, kind: input, shape index: {}]   ;;  %s159_s3 = inlined_call_operand.vmem [shape: f32[8,128], index: 3, kind: output, shape index: {}]  }
   0x1   :  { %105 = vmatprep.subr.bf16.mxu0 %v119_v0  ;;  %v115_v1 = vld [vmem:[%s156_s1 + $0x8] sm:$0xff]   ;;  %109 = vmatprep.mubr.msk.bf16.mxu0 %vm120_vm0, %v119_v0  ;;  %v116_v2 = vld [vmem:[%s156_s1] sm:$0xff]  }
   0x2   :  { %106 = vmatpush3.bf16.msra.mxu0 %v115_v1  ;;  %v15_v3 = vld [vmem:[%s157_s0] sm:$0xff] }
   0x3   :  { %107 = vmatprep.subr.bf16.mxu0 %v119_v0  ;;  %v17_v4 = vmul.f32 0.044715, %v15_v3  ;;  %v16_v9 = vmul.f32 0.5, %v15_v3  ;;  %v98_v14 = vld [vmem:[%s158_s2] ss:$0 sm:$0xff] }
   0x5   :  { %v18_v5 = vmul.f32 %v17_v4, %v15_v3 }
   0x6   :  { %108 = vmatpush3.bf16.msra.mxu0 %v116_v2 }
   0x7   :  { %v19_v6 = vmul.f32 %v18_v5, %v15_v3 }
   0x9   :  { %v20_v7 = vadd.f32 %v19_v6, %v15_v3 }
   0xb   :  { %v21_v8 = vmul.f32 0.7978846, %v20_v7 }
   0xd   :  { %117 = vtanh.f32 %v21_v8 }
  0x1a   :  { %v118_v10 = vpop.eup %117 }
  0x1b   :  { %v23_v11 = vadd.f32 1.0, %v118_v10 }
  0x1d   :  { %v24_v12 = vmul.f32 %v23_v11, %v16_v9 }
  0x1f   :  { %v25_v13 = vpack.c.bf16 %v24_v12, %v24_v12 }
  0x21   :  { %110 = vmatmul.mubr.msk.bf16.vlgmr.msra.gmra.mxu0 %vm49_vm1, %v25_v13 }
  0xe1   :  { %v87_v15 = vpop.f32.mrf.mxu0 }
  0xe2   :  { %v88_v16 = vadd.f32 %v98_v14, %v87_v15 }
  0xe3   :  { %v111_v17 = vpop.f32.mrf.mxu0 }
  0xe4   :  { %93 = vst [vmem:[%s159_s3] sm:$0xff] %v88_v16 }
  0xe5   :  { %v90_v18 = vpop.f32.mrf.mxu0 }
  0xe7   :  { %v112_v19 = vpop.f32.mrf.mxu0 }

// kernel: _lambda_.10
= control target key start
LH: loop header
LB: loop body
LE: loop exit
PB: predicated region body
PF: predicated region fallthrough
CT: control target
= control target key end

     0   :  { %s1388_s29 = smov 0   ;;  %s1522_s0 = inlined_call_operand.vmem [shape: f32[2,4,32], index: 0, kind: input, shape index: {}]   ;;  %s1523_s1 = inlined_call_operand.vmem [shape: f32[2,1,4], index: 1, kind: input, shape index: {}]   ;;  %s1524_s2 = inlined_call_operand.vmem [shape: bf16[32,96], index: 2, kind: input, shape index: {}]   ;;  %s1525_s3 = inlined_call_operand.vmem [shape: f32[1,96], index: 3, kind: input, shape index: {}]   ;;  %s1526_s4 = inlined_call_operand.vmem [shape: bf16[32,32], index: 4, kind: input, shape index: {}]   ;;  %s1527_s5 = inlined_call_operand.vmem [shape: f32[1,32], index: 5, kind: input, shape index: {}, may-alias: {5,7,11,13}]   ;;  %s1528_s6 = inlined_call_operand.vmem [shape: f32[1,32], index: 6, kind: input, shape index: {}, may-alias: {6,12}]   ;;  %s1529_s7 = inlined_call_operand.vmem [shape: f32[1,32], index: 7, kind: input, shape index: {}, may-alias: {5,7,11,13}]   ;;  %s1530_s8 = inlined_call_operand.vmem [shape: bf16[32,64], index: 8, kind: input, shape index: {}]   ;;  %s1531_s9 = inlined_call_operand.vmem [shape: f32[1,64], index: 9, kind: input, shape index: {}]   ;;  %s1532_s10 = inlined_call_operand.vmem [shape: bf16[64,32], index: 10, kind: input, shape index: {}]   ;;  %s1533_s11 = inlined_call_operand.vmem [shape: f32[1,32], index: 11, kind: input, shape index: {}, may-alias: {5,7,11,13}]   ;;  %s1534_s12 = inlined_call_operand.vmem [shape: f32[1,32], index: 12, kind: input, shape index: {}, may-alias: {6,12}]   ;;  %s1535_s13 = inlined_call_operand.vmem [shape: f32[1,32], index: 13, kind: input, shape index: {}, may-alias: {5,7,11,13}]   ;;  %s1536_s14 = inlined_call_operand.vmem [shape: f32[2,4,32], index: 14, kind: output, shape index: {}]  }
   0x1 LB: > { %s1139_s30 = sadd.s32 4294967295, %s1303_s29   ;;  %p1143_p0 = scmp.ge.s32.totalorder %s1303_s29, 1  ;;  %s1303_s29 = sphi %s1388_s29, %s24_s29  }
   0x2   : > { %p419_p1 = scmp.lt.s32.totalorder %s1303_s29, 3 }
   0x4   : > { %p420_p2 = pnand %p1143_p0, %p419_p1 }
   0x5   : > { %p466_p3 = scmp.lt.s32.totalorder (!%p420_p2), %s1139_s30, 1  ;;  %s1307_s25 = smov (!%p420_p2), 112  }
   0x6   : > { %423 = sbr.rel (%p420_p2) target bundleno = 2408 (0x968), region = 76  ;;  %s1308_s26 = smov (!%p420_p2), 96  }
   0x7   : > { %s1309_s27 = smov (!%p420_p2), 80   ;;  %s1310_s17 = smov (!%p420_p2), 64  }
   0x8   : > { %s1311_s18 = smov (!%p420_p2), 48   ;;  %s1312_s24 = smov (!%p420_p2), 16  }
   0xb   : > { %v1273_v0 = vld [vmem:[%s1524_s2 + $0x8] sm:$0xff]   ;;  %v1305_v1 = vmov 0.0   ;;  %v1274_v2 = vld [vmem:[%s1524_s2] sm:$0xff]   ;;  %vm1306_vm0 = vmmov 0   ;;  %s1538_s30 = smov (!%p466_p3, %s1139_s30), 1  ;;  %vm503_vm1 = vcmask 261120  }
   0xc   : > { %1197 = vmatprep.subr.bf16.mxu0 %v1305_v1  ;;  %1205 = vmatprep.subr.bf16.mxu1 %v1305_v1  ;;  %s1144_s19 = sshll.u32 %s1538_s30, 2  ;;  %v1146_v5 = vld [vmem:[%s1525_s3] ss:$0 sm:$0xff]  ;;  %vm552_vm2 = vcmask 130048   ;;  %s472_s16 = scalar_lea.vmem %s1523_s1, %s1538_s30  ;;  %vm607_vm3 = vcmask 27648   ;;  %vm626_vm4 = vcmask 1041408  }
   0xd   : > { %1198 = vmatpush3.bf16.msra.mxu0 %v1273_v0  ;;  %1201 = vmatprep.mubr.msk.bf16.mxu0 %vm1306_vm0, %v1305_v1  ;;  %s469_s22 = scalar_lea.vmem %s1522_s0, %s1144_s19  ;;  %v1151_v18 = vld [vmem:[%s472_s16] ss:$0 sm:$0xff]  ;;  %vm622_vm5 = vcmask 31744   ;;  %v1275_v54 = vld [vmem:[%s1526_s4 + $0x8] sm:$0xff]   ;;  %vm857_vm6 = vcmask 257024   ;;  %vm1002_vm7 = vcmask 523264  }
   0xe   : > { %1199 = vmatprep.subr.bf16.mxu0 %v1305_v1  ;;  %1207 = vmatprep.mubr.msk.bf16.mxu1 %vm1306_vm0, %v1305_v1  ;;  %v1418_v3 = vld [vmem:[%s469_s22] sm:$0xf] }
   0xf   : > { %v479_v4 = vpack.c.bf16 %v1418_v3, %v1418_v3  ;;  %v1276_v55 = vld [vmem:[%s1526_s4] sm:$0xff]  }
  0x11   : > { %1200 = vmatpush3.bf16.msra.mxu0 %v1274_v2 }
  0x12   : > { %1211 = vmatprep.subr.bf16.mxu0 %v1305_v1 }
  0x14   : > { %1202 = vmatmul.mubr.msk.bf16.vlgmr.msra.gmra.mxu0 %vm503_vm1, %v479_v4 }
  0x15   : > { %1213 = vmatprep.mubr.msk.bf16.mxu0 %vm1306_vm0, %v1305_v1 }
  0xd4   : > { %v541_v6 = vpop.f32.mrf.mxu0 }
  0xd5   : > { %v542_v7 = vadd.f32 %v1146_v5, %v541_v6  ;;  %v1155_v5 = vld [vmem:[%s1527_s5] ss:$0 sm:$0xff] }
  0xd6   : > { %v1203_v8 = vpop.f32.mrf.mxu0 }
  0xd7   : > { %v548_v9 = vpack.c.bf16 %v542_v7, %v542_v7 }
  0xd8   : > { %v544_v10 = vpop.f32.mrf.mxu0 }
  0xd9   : > { %670 = vrot.lane.b32.xlu1 %v548_v9, %s1307_s25  ;;  %550 = vrot.lane.b32.xlu0 %v548_v9, %s1308_s26 }
  0xda   : > { %v1204_v11 = vpop.f32.mrf.mxu0 }
  0xdd   : > { %672 = vrot.lane.b32.xlu0 %v548_v9, %s1309_s27  ;;  %s476_s27 = scalar_lea.vmem %s1536_s14, %s1144_s19 }
 0x14b   : > { %v551_v12 = vpop.permute.xlu0 %550  ;;  %v671_v16 = vpop.permute.xlu1 %670 }
 0x14c   : > { %v557_v13 = vsel %vm552_vm2, %v551_v12, 0 }
 0x14d   : > { %1206 = vmatpush3.bf16.xpose.msra.mxu1 %v557_v13 }
 0x14e   : > { %1217 = vmatprep.subr.bf16.mxu1 %v1305_v1 }
 0x14f   : > { %v673_v14 = vpop.permute.xlu0 %672 }
 0x150   : > { %v678_v15 = vsel %vm552_vm2, %v673_v14, 0 }
 0x154   : > { %1208 = vmatmul.mubr.msk.bf16.vlgmr.msra.gmra.mxu1 %vm552_vm2, %v548_v9 }
 0x155   : > { %1218 = vmatpush3.bf16.xpose.msra.mxu1 %v678_v15  ;;  %1219 = vmatprep.mubr.msk.bf16.mxu1 %vm1306_vm0, %v1305_v1 }
 0x156   : > { %1229 = vmatprep.subr.bf16.mxu1 %v1305_v1 }
 0x15c   : > { %1220 = vmatmul.mubr.msk.bf16.vlgmr.msra.gmra.mxu1 %vm552_vm2, %v671_v16 }
 0x15d   : > { %1233 = vmatprep.mubr.msk.bf16.mxu1 %vm1306_vm0, %v1305_v1  ;;  %1230 = vmatpush3.bf16.msra.mxu1 %v1275_v54 }
 0x15e   : > { %1231 = vmatprep.subr.bf16.mxu1 %v1305_v1 }
 0x161   : > { %1232 = vmatpush3.bf16.msra.mxu1 %v1276_v55 }
 0x162   : > { %1245 = vmatprep.subr.bf16.mxu1 %v1305_v1 }
 0x214   : > { %v593_v17 = vpop.f32.mrf.mxu1 }
 0x215   : > { %v599_v19 = vmul.f32 0.25, %v593_v17 }
 0x216   : > { %v1209_v20 = vpop.f32.mrf.mxu1 }
 0x217   : > { %v606_v21 = vadd.f32 %v1151_v18, %v599_v19 }
 0x218   : > { %v596_v22 = vpop.f32.mrf.mxu1 }
 0x219   : > { %v608_v23 = vsel %vm607_vm3, %v606_v21, -inf }
 0x21a   : > { %609 = vmax.xlane.f32.xlu1 %v608_v23  ;;  %v1210_v24 = vpop.f32.mrf.mxu1  ;;  %v1159_v23 = vld [vmem:[%s1528_s6] ss:$0 sm:$0xff] }
 0x21c   : > { %v714_v25 = vpop.f32.mrf.mxu1 }
 0x21d   : > { %v720_v26 = vmul.f32 0.25, %v714_v25  ;;  %v1160_v25 = vld [vmem:[%s1529_s7] ss:$0 sm:$0xff] }
 0x21e   : > { %v1221_v27 = vpop.f32.mrf.mxu1 }
 0x21f   : > { %v721_v28 = vadd.f32 %v1151_v18, %v720_v26  ;;  %v1277_v18 = vld [vmem:[%s1530_s8 + $0x8] sm:$0xff]  }
 0x220   : > { %v717_v29 = vpop.f32.mrf.mxu1 }
 0x221   : > { %v722_v30 = vsel %vm607_vm3, %v721_v28, -inf  ;;  %v1279_v29 = vld [vmem:[%s1532_s10 + $0x18] sm:$0xff]  }
 0x222   : > { %723 = vmax.xlane.f32.xlu0 %v722_v30  ;;  %v1222_v31 = vpop.f32.mrf.mxu1  ;;  %v1280_v30 = vld [vmem:[%s1532_s10 + $0x10] sm:$0xff]  }
 0x223   : > { %v1281_v31 = vld [vmem:[%s1532_s10 + $0x8] sm:$0xff]  }
 0x2a3   : > { %v610_v32 = vpop.xlane.xlu1 %609 }
 0x2a4   : > { %v611_v33 = vsub.f32 %v606_v21, %v610_v32  ;;  %v1282_v32 = vld [vmem:[%s1532_s10] sm:$0xff]  }
 0x2a6   : > { %v612_v34 = vmul.f32 1.442695, %v611_v33  ;;  %v1161_v33 = vld [vmem:[%s1531_s9] ss:$0 sm:$0xff] }
 0x2a8   : > { %1283 = vpow2.f32 %v612_v34 }
 0x2ab   : > { %v724_v35 = vpop.xlane.xlu0 %723 }
 0x2ac   : > { %v725_v36 = vsub.f32 %v721_v28, %v724_v35 }
 0x2ae   : > { %v726_v37 = vmul.f32 1.442695, %v725_v36 }
 0x2b0   : > { %1285 = vpow2.f32 %v726_v37 }
 0x2b5   : > { %v1284_v38 = vpop.eup %1283 }
 0x2b6   : > { %v614_v39 = vsel %vm607_vm3, %v1284_v38, 0.0 }
 0x2b7   : > { %615 = vadd.xlane.f32.xlu0 %v614_v39 }
 0x2bd   : > { %v1286_v40 = vpop.eup %1285 }
 0x2be   : > { %v728_v41 = vsel %vm607_vm3, %v1286_v40, 0.0 }
 0x2bf   : > { %729 = vadd.xlane.f32.xlu1 %v728_v41 }
 0x2cd   : > { %620 = vrot.lane.b32.xlu0 %v548_v9, %s1310_s17 }
 0x2d0   : > { %734 = vrot.lane.b32.xlu1 %v548_v9, %s1311_s18 }
 0x340   : > { %v616_v42 = vpop.xlane.xlu0 %615 }
 0x341   : > { %1287 = vrcp.f32 %v616_v42 }
 0x344   : > { %v621_v43 = vpop.permute.xlu0 %620 }
 0x345   : > { %v628_v44 = vsel %vm626_vm4, %v621_v43, 0 }
 0x346   : > { %1212 = vmatpush3.bf16.msra.mxu0 %v628_v44 }
 0x347   : > { %1223 = vmatprep.subr.bf16.mxu0 %v1305_v1 }
 0x348   : > { %v730_v45 = vpop.xlane.xlu1 %729 }
 0x349   : > { %1289 = vrcp.f32 %v730_v45 }
 0x34c   : > { %v735_v48 = vpop.permute.xlu1 %734 }
 0x34d   : > { %v740_v50 = vsel %vm626_vm4, %v735_v48, 0  ;;  %v1165_v48 = vld [vmem:[%s1533_s11] ss:$0 sm:$0xff] }
 0x34e   : > { %v1288_v46 = vpop.eup %1287 }
 0x34f   : > { %v618_v47 = vmul.f32 %v1288_v46, %v1284_v38 }
 0x351   : > { %v619_v49 = vpack.c.bf16 %v618_v47, %v618_v47 }
 0x353   : > { %1214 = vmatmul.mubr.msk.bf16.vlgmr.msra.gmra.mxu0 %vm622_vm5, %v619_v49 }
 0x354   : > { %1224 = vmatpush3.bf16.msra.mxu0 %v740_v50  ;;  %1225 = vmatprep.mubr.msk.bf16.mxu0 %vm1306_vm0, %v1305_v1 }
 0x355   : > { %1237 = vmatprep.subr.bf16.mxu0 %v1305_v1 }
 0x356   : > { %v1290_v51 = vpop.eup %1289 }
 0x357   : > { %v732_v52 = vmul.f32 %v1290_v51, %v1286_v40 }
 0x359   : > { %v733_v53 = vpack.c.bf16 %v732_v52, %v732_v52 }
 0x35b   : > { %1226 = vmatmul.mubr.msk.bf16.vlgmr.msra.gmra.mxu0 %vm622_vm5, %v733_v53 }
 0x35c   : > { %1241 = vmatprep.mubr.msk.bf16.mxu0 %vm1306_vm0, %v1305_v1  ;;  %1238 = vmatpush3.bf16.msra.mxu0 %v1277_v18 }
 0x35d   : > { %1239 = vmatprep.subr.bf16.mxu0 %v1305_v1 }
 0x413   : > { %v664_v56 = vpop.f32.mrf.mxu0 }
 0x415   : > { %v1215_v57 = vpop.f32.mrf.mxu0 }
 0x417   : > { %v667_v58 = vpop.f32.mrf.mxu0 }
 0x419   : > { %v1216_v59 = vpop.f32.mrf.mxu0 }
 0x41b   : > { %v776_v60 = vpop.f32.mrf.mxu0 }
 0x41c   : > { %783 = vrot.lane.b32.xlu1 %v776_v60, %s1312_s24 }
 0x41d   : > { %v1227_v61 = vpop.f32.mrf.mxu0 }
 0x41f   : > { %v779_v62 = vpop.f32.mrf.mxu0 }
 0x421   : > { %v1228_v63 = vpop.f32.mrf.mxu0 }
 0x48e   : > { %v784_v0 = vpop.permute.xlu1 %783 }
 0x48f   : > { %v786_v2 = vsel %vm552_vm2, %v664_v56, %v784_v0 }
 0x490   : > { %v787_v4 = vpack.c.bf16 %v786_v2, %v786_v2  ;;  %v1171_v2 = vld [vmem:[%s1534_s12] ss:$0 sm:$0xff] }
 0x492   : > { %1234 = vmatmul.mubr.msk.bf16.vlgmr.msra.gmra.mxu1 %vm503_vm1, %v787_v4 }
 0x493   : > { %1253 = vmatprep.mubr.msk.bf16.mxu1 %vm1306_vm0, %v1305_v1  ;;  %1246 = vmatpush3.bf16.msra.mxu1 %v1279_v29 }
 0x494   : > { %1247 = vmatprep.subr.bf16.mxu1 %v1305_v1 }
 0x497   : > { %1248 = vmatpush3.bf16.msra.mxu1 %v1280_v30 }
 0x498   : > { %1249 = vmatprep.subr.bf16.mxu1 %v1305_v1 }
 0x49b   : > { %1250 = vmatpush3.bf16.msra.mxu1 %v1281_v31 }
 0x49c   : > { %1251 = vmatprep.subr.bf16.mxu1 %v1305_v1 }
 0x49f   : > { %1252 = vmatpush3.bf16.msra.mxu1 %v1282_v32 }
 0x552   : > { %v848_v6 = vpop.f32.mrf.mxu1 }
 0x553   : > { %v849_v7 = vadd.f32 %v1155_v5, %v848_v6  ;;  %v1172_v5 = vld [vmem:[%s1535_s13] ss:$0 sm:$0xff] }
 0x554   : > { %v1235_v8 = vpop.f32.mrf.mxu1 }
 0x555   : > { %v854_v9 = vadd.f32 %v849_v7, %v1418_v3  ;;  %v1278_v3 = vld [vmem:[%s1530_s8] sm:$0xff]  }
 0x556   : > { %v851_v10 = vpop.f32.mrf.mxu1  ;;  %1240 = vmatpush3.bf16.msra.mxu0 %v1278_v3 }
 0x557   : > { %v858_v11 = vsel %vm857_vm6, %v854_v9, 0.0 }
 0x558   : > { %859 = vadd.xlane.f32.xlu0 %v858_v11  ;;  %v1236_v12 = vpop.f32.mrf.mxu1 }
 0x5e1   : > { %v860_v13 = vpop.xlane.xlu0 %859 }
 0x5e2   : > { %v862_v14 = vmul.f32 0.03125, %v860_v13 }
 0x5e4   : > { %v863_v15 = vsub.f32 %v854_v9, %v862_v14 }
 0x5e6   : > { %v864_v16 = vmul.f32 %v863_v15, %v863_v15 }
 0x5e8   : > { %v865_v17 = vsel %vm857_vm6, %v864_v16, 0.0 }
 0x5e9   : > { %866 = vadd.xlane.f32.xlu1 %v865_v17 }
 0x672   : > { %v867_v19 = vpop.xlane.xlu1 %866 }
 0x673   : > { %v868_v20 = vmul.f32 0.03125, %v867_v19 }
 0x675   : > { %v869_v21 = vadd.f32 1e-12, %v868_v20 }
 0x677   : > { %1291 = vrsqrt.f32 %v869_v21 }
 0x684   : > { %v1292_v22 = vpop.eup %1291 }
 0x685   : > { %v871_v24 = vmul.f32 %v1292_v22, %v863_v15 }
 0x687   : > { %v878_v26 = vmul.f32 %v1159_v23, %v871_v24 }
 0x689   : > { %v885_v27 = vadd.f32 %v1160_v25, %v878_v26 }
 0x68b   : > { %v886_v28 = vpack.c.bf16 %v885_v27, %v885_v27 }
 0x68d   : > { %1242 = vmatmul.mubr.msk.bf16.vlgmr.msra.gmra.mxu0 %vm503_vm1, %v886_v28 }
 0x74d   : > { %v947_v34 = vpop.f32.mrf.mxu0 }
 0x74e   : > { %v948_v35 = vadd.f32 %v1161_v33, %v947_v34 }
 0x74f   : > { %v1243_v36 = vpop.f32.mrf.mxu0 }
 0x750   : > { %v954_v37 = vmul.f32 0.044715, %v948_v35  ;;  %v953_v45 = vmul.f32 0.5, %v948_v35 }
 0x751   : > { %v950_v38 = vpop.f32.mrf.mxu0 }
 0x752   : > { %v955_v39 = vmul.f32 %v954_v37, %v948_v35 }
 0x753   : > { %v1244_v40 = vpop.f32.mrf.mxu0 }
 0x754   : > { %v956_v41 = vmul.f32 %v955_v39, %v948_v35 }
 0x756   : > { %v957_v42 = vadd.f32 %v956_v41, %v948_v35 }
 0x758   : > { %v958_v43 = vmul.f32 0.7978846, %v957_v42 }
 0x75a   : > { %1293 = vtanh.f32 %v958_v43 }
 0x767   : > { %v1294_v44 = vpop.eup %1293 }
 0x768   : > { %v960_v46 = vadd.f32 1.0, %v1294_v44 }
 0x76a   : > { %v961_v1 = vmul.f32 %v960_v46, %v953_v45 }
 0x76c   : > { %v962_v47 = vpack.c.bf16 %v961_v1, %v961_v1 }
 0x76e   : > { %1254 = vmatmul.mubr.msk.bf16.vlgmr.msra.gmra.mxu1 %vm1002_vm7, %v962_v47 }
 0x82e   : > { %v1040_v49 = vpop.f32.mrf.mxu1 }
 0x82f   : > { %v1041_v50 = vadd.f32 %v1165_v48, %v1040_v49 }
 0x830   : > { %v1255_v51 = vpop.f32.mrf.mxu1 }
 0x831   : > { %v1046_v52 = vadd.f32 %v1041_v50, %v885_v27 }
 0x832   : > { %v1043_v53 = vpop.f32.mrf.mxu1 }
 0x833   : > { %v1049_v54 = vsel %vm857_vm6, %v1046_v52, 0.0 }
 0x834   : > { %1050 = vadd.xlane.f32.xlu0 %v1049_v54  ;;  %v1256_v55 = vpop.f32.mrf.mxu1 }
 0x8bd   : > { %v1051_v56 = vpop.xlane.xlu0 %1050 }
 0x8be   : > { %v1052_v57 = vmul.f32 0.03125, %v1051_v56 }
 0x8c0   : > { %v1053_v58 = vsub.f32 %v1046_v52, %v1052_v57 }
 0x8c2   : > { %v1054_v59 = vmul.f32 %v1053_v58, %v1053_v58 }
 0x8c4   : > { %v1055_v60 = vsel %vm857_vm6, %v1054_v59, 0.0 }
 0x8c5   : > { %1056 = vadd.xlane.f32.xlu0 %v1055_v60 }
 0x94e   : > { %v1057_v61 = vpop.xlane.xlu0 %1056 }
 0x94f   : > { %v1058_v62 = vmul.f32 0.03125, %v1057_v61 }
 0x951   : > { %v1059_v63 = vadd.f32 1e-12, %v1058_v62 }
 0x953   : > { %1295 = vrsqrt.f32 %v1059_v63 }
 0x960   : > { %v1296_v0 = vpop.eup %1295 }
 0x961   : > { %v1061_v4 = vmul.f32 %v1296_v0, %v1053_v58 }
 0x963   : > { %v1068_v6 = vmul.f32 %v1171_v2, %v1061_v4 }
 0x965   : > { %v1075_v7 = vadd.f32 %v1172_v5, %v1068_v6 }
 0x967   : > { %1076 = vst.msk [vmem:[%s476_s27] sm:$0xf] %vm857_vm6, %v1075_v7 }
 0x968 PF: > { %s24_s29 = sadd.s32 1, %s1303_s29  }
 0x969   : > { %p21_p4 = scmp.ge.s32.totalorder %s24_s29, 4  }
 0x96b   :  { %23 = sbr.rel (!%p21_p4) target bundleno = 1 (0x1), region = 109 }

</bundles_post_ra>
